<compile_context>
chip_gen: v6e
topology: v6e:2x2x1
jax: 0.10.0
libtpu: 0.0.40
codegen_flags: <defaults>
</compile_context>

<pallas_src>
import functools

import jax
import jax.numpy as jnp
from jax.experimental import pallas as pl
from jax.experimental.pallas import tpu as pltpu


_MID_CHANS = (10, 20, 30, 40, 30, 20, 10)   # conv1..conv7 output channels


def _round_up(x, m):
    return (x + m - 1) // m * m


def _fused_ftp_psp2_kernel(x_ref, m_ref, w_ref, b_ref, o_ref, act_ref, slab_ref,
                           *, chans, width, lanes):
    """All 8 conv3x3(+ReLU) layers fused; activations stay resident in VMEM.

    x_ref   : (1, C, lanes)        n_b images packed along lanes (lanes = n_b*H*W)
    m_ref   : (9, lanes)           per-tap validity masks (zero where the tap
                                   would read outside its own zero-padded image)
    w_ref   : (8, cmax_p, kdim)    per-layer im2col weights, zero-padded,
                                   per-layer tap stride = round_up(cin, 8)
    b_ref   : (8, cmax_p, 1)       per-layer biases, zero-padded
    o_ref   : (1, C, lanes)        output images
    act_ref : VMEM (cmax_p, lanes) resident activation buffer (f32)
    slab_ref: VMEM (kdim, lanes)   im2col slab (f32), kdim = 9*cmax_p
    """
    c_in0 = chans[0]
    cin_p0 = _round_up(c_in0, 8)

    # Defensive one-time zero only (scratch persists across grid steps).
    # Not needed for correctness of the per-layer contraction — every layer
    # fully writes rows [0, 9*cin_p) before reading them — but guarantees the
    # MXU can never see uninitialized VMEM if the packing is changed later.
    @pl.when(pl.program_id(0) == 0)
    def _():
        slab_ref[...] = jnp.zeros_like(slab_ref)

    # Load this lane-packed image block and zero-pad channels to 8 sublanes,
    # so every later slab write is full-stride (no uninitialized holes).
    act_ref[0:c_in0, :] = x_ref[0]
    if c_in0 < cin_p0:
        act_ref[c_in0:cin_p0, :] = jnp.zeros((cin_p0 - c_in0, lanes), jnp.float32)

    # Hoist the 9 tap-mask loads out of the layer loop (reused by all 8 layers).
    m_taps = [m_ref[t:t + 1, :] for t in range(9)]

    for layer in range(8):
        cin, cout = chans[layer], chans[layer + 1]
        cin_p, cout_p = _round_up(cin, 8), _round_up(cout, 8)
        k_layer = 9 * cin_p

        x = act_ref[0:cin_p, :]                               # (cin_p, lanes)

        # Build the im2col slab with per-layer tap stride cin_p (8-aligned):
        # one XLU lane-roll + one VPU mask-multiply per 3x3 tap.
        for tap in range(9):
            dy, dx = divmod(tap, 3)
            off = (dy - 1) * width + (dx - 1)                 # flat-pixel shift
            shifted = x if off == 0 else pltpu.roll(x, shift=(-off) % lanes, axis=1)
            slab_ref[tap * cin_p:(tap + 1) * cin_p, :] = shifted * m_taps[tap]

        # One MXU matmul per layer, contracting only over the useful K rows.
        out = jnp.dot(w_ref[layer, 0:cout_p, 0:k_layer], slab_ref[0:k_layer, :],
                      preferred_element_type=jnp.float32)     # (cout_p, lanes)
        out = out + b_ref[layer, 0:cout_p, :]                 # lane-broadcast bias
        if layer < 6:                                         # ReLU on conv1..conv6
            out = jnp.maximum(out, 0.0)
        act_ref[0:cout_p, :] = out                            # pad rows stay exact zero

    o_ref[0, :, :] = act_ref[0:chans[8], :].astype(o_ref.dtype)


def _make_tap_masks(h, w):
    """(9, H*W) float32: 1 where tap (dy,dx) reads inside the image, else 0."""
    ys = jnp.arange(h * w, dtype=jnp.int32) // w
    xs = jnp.arange(h * w, dtype=jnp.int32) % w
    rows = []
    for dy in range(3):
        for dx in range(3):
            ok = ((ys + (dy - 1) >= 0) & (ys + (dy - 1) < h) &
                  (xs + (dx - 1) >= 0) & (xs + (dx - 1) < w))
            rows.append(ok.astype(jnp.float32))
    return jnp.stack(rows)                                    # (9, H*W)


def _pack_weight(w_hwio, cin_p, cmax_p, kdim):
    """HWIO (3,3,cin,cout) -> zero-padded im2col weight (cmax_p, kdim).

    Row o, column tap*cin_p + i  holds  w[dy, dx, i, o]  (tap = dy*3 + dx).
    Unused rows/columns are exact zeros.
    """
    _, _, cin, cout = w_hwio.shape
    w_o = jnp.transpose(w_hwio, (3, 0, 1, 2))                 # (cout, 3, 3, cin)
    wp = jnp.zeros((cmax_p, kdim), jnp.float32)
    for tap in range(9):
        dy, dx = divmod(tap, 3)
        wp = wp.at[:cout, tap * cin_p:tap * cin_p + cin].set(w_o[:, dy, dx, :])
    return wp


def _pack_bias(b, cmax_p):
    return jnp.zeros((cmax_p, 1), jnp.float32).at[:b.shape[0], 0].set(b)


def _choose_images_per_step(n, kdim, cmax_p, hw, vmem_budget_bytes=8 << 20):
    """Largest divisor n_b of n with >= 2 grid steps and scratch under budget.

    The 8 MiB scratch cap (+ small double-buffered I/O blocks and ~1 MiB of
    packed weights) keeps the kernel comfortably under v7x's 32 MiB default
    scoped-VMEM limit, and trivially under v5e/v6e's 128 MiB.
    """
    best = 1
    max_nb = max(1, n // 2)            # keep >= 2 grid steps for v7x's two TCs
    for nb in range(1, max_nb + 1):
        if n % nb:
            continue
        if (kdim + cmax_p) * nb * hw * 4 <= vmem_budget_bytes:
            best = nb
    return best


@jax.jit
def ftp_psp2_forward(x_nchw, params):
    """Forward pass matching ftp_psp2.forward. Input/output are NCHW, float32."""
    n, c, h, w = x_nchw.shape
    hw = h * w
    chans = (c,) + _MID_CHANS + (c,)
    cmax_p = _round_up(max(chans), 8)
    kdim = 9 * cmax_p                                         # no 128-rounding of K

    n_b = _choose_images_per_step(n, kdim, cmax_p, hw)
    grid = n // n_b
    lanes = n_b * hw

    # Pack n_b images per grid step along the lane axis: (grid, C, n_b*HW).
    x_pack = (x_nchw.astype(jnp.float32)
              .reshape(grid, n_b, c, hw)
              .transpose(0, 2, 1, 3)
              .reshape(grid, c, lanes))

    masks = jnp.tile(_make_tap_masks(h, w), (1, n_b))         # (9, n_b*HW)

    cin_pads = [_round_up(chans[i], 8) for i in range(8)]
    wpack = jnp.stack([_pack_weight(params[i][0], cin_pads[i], cmax_p, kdim)
                       for i in range(8)])                    # (8, cmax_p, kdim)
    bpack = jnp.stack([_pack_bias(params[i][1], cmax_p)
                       for i in range(8)])                    # (8, cmax_p, 1)

    flops = 2 * hw * n * sum(9 * chans[i] * chans[i + 1] for i in range(8))
    bytes_accessed = 4 * (2 * x_pack.size + wpack.size + bpack.size + masks.size)

    kernel = functools.partial(_fused_ftp_psp2_kernel,
                               chans=chans, width=w, lanes=lanes)

    out = pl.pallas_call(
        kernel,
        out_shape=jax.ShapeDtypeStruct((grid, c, lanes), jnp.float32),
        grid_spec=pltpu.PrefetchScalarGridSpec(
            num_scalar_prefetch=0,
            grid=(grid,),
            in_specs=[
                pl.BlockSpec((1, c, lanes), lambda i: (i, 0, 0)),
                pl.BlockSpec((9, lanes), lambda i: (0, 0)),
                pl.BlockSpec((8, cmax_p, kdim), lambda i: (0, 0, 0)),
                pl.BlockSpec((8, cmax_p, 1), lambda i: (0, 0, 0)),
            ],
            out_specs=pl.BlockSpec((1, c, lanes), lambda i: (i, 0, 0)),
            scratch_shapes=[
                pltpu.VMEM((cmax_p, lanes), jnp.float32),     # resident activation
                pltpu.VMEM((kdim, lanes), jnp.float32),       # im2col slab
            ],
        ),
        compiler_params=pltpu.CompilerParams(
            dimension_semantics=("parallel",)),
        cost_estimate=pl.CostEstimate(flops=flops, transcendentals=0,
                                      bytes_accessed=bytes_accessed),
    )(x_pack, masks, wpack, bpack)

    return (out.reshape(grid, c, n_b, hw)
               .transpose(0, 2, 1, 3)
               .reshape(n, c, h, w))


def init_params(key, inp_ch):
    """Deterministic synthetic parameters with the same shapes as ftp_psp2.

    PyTorch Conv2d weights are (Cout, Cin, kH, kW); we store HWIO (kH, kW, Cin, Cout).
    """
    chans = [inp_ch] + list(_MID_CHANS) + [inp_ch]
    params = []
    for i in range(8):
        cin, cout = chans[i], chans[i + 1]
        key, kw, kb = jax.random.split(key, 3)
        fan_in = cin * 9
        bound = 1.0 / jnp.sqrt(fan_in)
        w = jax.random.uniform(kw, (3, 3, cin, cout), jnp.float32,
                               minval=-bound, maxval=bound)
        b = jax.random.uniform(kb, (cout,), jnp.float32,
                               minval=-bound, maxval=bound)
        params.append((w, b))
    return params


if __name__ == "__main__":
    key = jax.random.PRNGKey(0)
    k_in, k_par = jax.random.split(key)

    N, C, H, W = 2, 4, 16, 16
    x = jax.random.normal(k_in, (N, C, H, W), jnp.float32)
    params = init_params(k_par, C)

    out = ftp_psp2_forward(x, params)
    out = jax.block_until_ready(out)
    assert out.shape == (N, C, H, W), out.shape

    # Cross-check against plain-JAX conv as a reference.
    def ref_forward(x_nchw, params):
        h = x_nchw
        for i, (w, b) in enumerate(params):
            w_oihw = jnp.transpose(w, (3, 2, 0, 1))           # HWIO -> OIHW
            h = jax.lax.conv_general_dilated(
                h, w_oihw, window_strides=(1, 1), padding=((1, 1), (1, 1)),
                dimension_numbers=("NCHW", "OIHW", "NCHW"))
            h = h + b.reshape(1, -1, 1, 1)
            if i < 6:
                h = jnp.maximum(h, 0.0)
        return h

    ref = jax.block_until_ready(ref_forward(x, params))
    if not jnp.allclose(out, ref, atol=1e-4, rtol=1e-4):
        raise AssertionError("Pallas output mismatch vs reference")

    print("KERNEL_OK")
</pallas_src>

<mosaic_0001>
module attributes {stable_mosaic.version = 11 : i64} {
  func.func @_fused_ftp_psp2_kernel(%arg0: i32, %arg1: memref<1x4x256xf32, #tpu.memory_space<vmem>>, %arg2: memref<9x256xf32, #tpu.memory_space<vmem>>, %arg3: memref<8x40x360xf32, #tpu.memory_space<vmem>>, %arg4: memref<8x40x1xf32, #tpu.memory_space<vmem>>, %arg5: memref<1x4x256xf32, #tpu.memory_space<vmem>>, %arg6: memref<40x256xf32, #tpu.memory_space<vmem>>, %arg7: memref<360x256xf32, #tpu.memory_space<vmem>>) attributes {dimension_semantics = [#tpu.dimension_semantics<parallel>], iteration_bounds = array<i64: 2>, scalar_prefetch = 0 : i64, scratch_operands = 2 : i64, tpu.core_type = #tpu.core_type<tc>, window_params = [{transform_indices = @transform_0, window_bounds = array<i64: 1, 4, 256>}, {pipeline_mode = #tpu.pipeline_mode<synchronous>, transform_indices = @transform_1, window_bounds = array<i64: 9, 256>}, {pipeline_mode = #tpu.pipeline_mode<synchronous>, transform_indices = @transform_2, window_bounds = array<i64: 8, 40, 360>}, {pipeline_mode = #tpu.pipeline_mode<synchronous>, transform_indices = @transform_3, window_bounds = array<i64: 8, 40, 1>}, {transform_indices = @transform_4, window_bounds = array<i64: 1, 4, 256>}]} {
    %c0_i32 = arith.constant 0 : i32
    %0 = arith.cmpi eq, %arg0, %c0_i32 : i32
    %1 = arith.extui %0 : i1 to i32
    %c0_i32_0 = arith.constant 0 : i32
    %2 = arith.cmpi ne, %1, %c0_i32_0 : i32
    scf.if %2 {
      %cst_309 = arith.constant 0.000000e+00 : f32
      %393 = vector.broadcast %cst_309 : f32 to vector<360x256xf32>
      %c0_310 = arith.constant 0 : index
      %c0_311 = arith.constant 0 : index
      %394 = vector.load %arg7[%c0_310, %c0_311] : memref<360x256xf32, #tpu.memory_space<vmem>>, vector<360x256xf32>
      tpu.vector_store %arg7[%c0_310, %c0_311], %393 {strides = array<i32>} : memref<360x256xf32, #tpu.memory_space<vmem>>, vector<360x256xf32>,
    } else {
    }
    %c0 = arith.constant 0 : index
    %c0_1 = arith.constant 0 : index
    %c0_2 = arith.constant 0 : index
    %3 = vector.load %arg1[%c0, %c0_1, %c0_2] : memref<1x4x256xf32, #tpu.memory_space<vmem>>, vector<1x4x256xf32>
    %4 = vector.shape_cast %3 : vector<1x4x256xf32> to vector<4x256xf32>
    %c0_3 = arith.constant 0 : index
    %c0_4 = arith.constant 0 : index
    %5 = vector.load %arg6[%c0_3, %c0_4] : memref<40x256xf32, #tpu.memory_space<vmem>>, vector<4x256xf32>
    tpu.vector_store %arg6[%c0_3, %c0_4], %4 {strides = array<i32>} : memref<40x256xf32, #tpu.memory_space<vmem>>, vector<4x256xf32>,
    %cst = arith.constant 0.000000e+00 : f32
    %6 = vector.broadcast %cst : f32 to vector<4x256xf32>
    %c4 = arith.constant 4 : index
    %c0_5 = arith.constant 0 : index
    %7 = vector.load %arg6[%c4, %c0_5] : memref<40x256xf32, #tpu.memory_space<vmem>>, vector<4x256xf32>
    tpu.vector_store %arg6[%c4, %c0_5], %6 {strides = array<i32>} : memref<40x256xf32, #tpu.memory_space<vmem>>, vector<4x256xf32>,
    %c0_6 = arith.constant 0 : index
    %c0_7 = arith.constant 0 : index
    %8 = vector.load %arg2[%c0_6, %c0_7] : memref<9x256xf32, #tpu.memory_space<vmem>>, vector<1x256xf32>
    %c1 = arith.constant 1 : index
    %c0_8 = arith.constant 0 : index
    %9 = vector.load %arg2[%c1, %c0_8] : memref<9x256xf32, #tpu.memory_space<vmem>>, vector<1x256xf32>
    %c2 = arith.constant 2 : index
    %c0_9 = arith.constant 0 : index
    %10 = vector.load %arg2[%c2, %c0_9] : memref<9x256xf32, #tpu.memory_space<vmem>>, vector<1x256xf32>
    %c3 = arith.constant 3 : index
    %c0_10 = arith.constant 0 : index
    %11 = vector.load %arg2[%c3, %c0_10] : memref<9x256xf32, #tpu.memory_space<vmem>>, vector<1x256xf32>
    %c4_11 = arith.constant 4 : index
    %c0_12 = arith.constant 0 : index
    %12 = vector.load %arg2[%c4_11, %c0_12] : memref<9x256xf32, #tpu.memory_space<vmem>>, vector<1x256xf32>
    %c5 = arith.constant 5 : index
    %c0_13 = arith.constant 0 : index
    %13 = vector.load %arg2[%c5, %c0_13] : memref<9x256xf32, #tpu.memory_space<vmem>>, vector<1x256xf32>
    %c6 = arith.constant 6 : index
    %c0_14 = arith.constant 0 : index
    %14 = vector.load %arg2[%c6, %c0_14] : memref<9x256xf32, #tpu.memory_space<vmem>>, vector<1x256xf32>
    %c7 = arith.constant 7 : index
    %c0_15 = arith.constant 0 : index
    %15 = vector.load %arg2[%c7, %c0_15] : memref<9x256xf32, #tpu.memory_space<vmem>>, vector<1x256xf32>
    %c8 = arith.constant 8 : index
    %c0_16 = arith.constant 0 : index
    %16 = vector.load %arg2[%c8, %c0_16] : memref<9x256xf32, #tpu.memory_space<vmem>>, vector<1x256xf32>
    %c0_17 = arith.constant 0 : index
    %c0_18 = arith.constant 0 : index
    %17 = vector.load %arg6[%c0_17, %c0_18] : memref<40x256xf32, #tpu.memory_space<vmem>>, vector<8x256xf32>
    %c17_i32 = arith.constant 17 : i32
    %18 = tpu.dynamic_rotate %17 by %c17_i32 dim 1 : vector<8x256xf32>, i32 -> vector<8x256xf32>
    %19 = vector.broadcast %8 : vector<1x256xf32> to vector<8x256xf32>
    %20 = arith.mulf %18, %19 : vector<8x256xf32>
    %c0_19 = arith.constant 0 : index
    %c0_20 = arith.constant 0 : index
    %21 = vector.load %arg7[%c0_19, %c0_20] : memref<360x256xf32, #tpu.memory_space<vmem>>, vector<8x256xf32>
    tpu.vector_store %arg7[%c0_19, %c0_20], %20 {strides = array<i32>} : memref<360x256xf32, #tpu.memory_space<vmem>>, vector<8x256xf32>,
    %c16_i32 = arith.constant 16 : i32
    %22 = tpu.dynamic_rotate %17 by %c16_i32 dim 1 : vector<8x256xf32>, i32 -> vector<8x256xf32>
    %23 = vector.broadcast %9 : vector<1x256xf32> to vector<8x256xf32>
    %24 = arith.mulf %22, %23 : vector<8x256xf32>
    %c8_21 = arith.constant 8 : index
    %c0_22 = arith.constant 0 : index
    %25 = vector.load %arg7[%c8_21, %c0_22] : memref<360x256xf32, #tpu.memory_space<vmem>>, vector<8x256xf32>
    tpu.vector_store %arg7[%c8_21, %c0_22], %24 {strides = array<i32>} : memref<360x256xf32, #tpu.memory_space<vmem>>, vector<8x256xf32>,
    %c15_i32 = arith.constant 15 : i32
    %26 = tpu.dynamic_rotate %17 by %c15_i32 dim 1 : vector<8x256xf32>, i32 -> vector<8x256xf32>
    %27 = vector.broadcast %10 : vector<1x256xf32> to vector<8x256xf32>
    %28 = arith.mulf %26, %27 : vector<8x256xf32>
    %c16 = arith.constant 16 : index
    %c0_23 = arith.constant 0 : index
    %29 = vector.load %arg7[%c16, %c0_23] : memref<360x256xf32, #tpu.memory_space<vmem>>, vector<8x256xf32>
    tpu.vector_store %arg7[%c16, %c0_23], %28 {strides = array<i32>} : memref<360x256xf32, #tpu.memory_space<vmem>>, vector<8x256xf32>,
    %c1_i32 = arith.constant 1 : i32
    %30 = tpu.dynamic_rotate %17 by %c1_i32 dim 1 : vector<8x256xf32>, i32 -> vector<8x256xf32>
    %31 = vector.broadcast %11 : vector<1x256xf32> to vector<8x256xf32>
    %32 = arith.mulf %30, %31 : vector<8x256xf32>
    %c24 = arith.constant 24 : index
    %c0_24 = arith.constant 0 : index
    %33 = vector.load %arg7[%c24, %c0_24] : memref<360x256xf32, #tpu.memory_space<vmem>>, vector<8x256xf32>
    tpu.vector_store %arg7[%c24, %c0_24], %32 {strides = array<i32>} : memref<360x256xf32, #tpu.memory_space<vmem>>, vector<8x256xf32>,
    %34 = vector.broadcast %12 : vector<1x256xf32> to vector<8x256xf32>
    %35 = arith.mulf %17, %34 : vector<8x256xf32>
    %c32 = arith.constant 32 : index
    %c0_25 = arith.constant 0 : index
    %36 = vector.load %arg7[%c32, %c0_25] : memref<360x256xf32, #tpu.memory_space<vmem>>, vector<8x256xf32>
    tpu.vector_store %arg7[%c32, %c0_25], %35 {strides = array<i32>} : memref<360x256xf32, #tpu.memory_space<vmem>>, vector<8x256xf32>,
    %c255_i32 = arith.constant 255 : i32
    %37 = tpu.dynamic_rotate %17 by %c255_i32 dim 1 : vector<8x256xf32>, i32 -> vector<8x256xf32>
    %38 = vector.broadcast %13 : vector<1x256xf32> to vector<8x256xf32>
    %39 = arith.mulf %37, %38 : vector<8x256xf32>
    %c40 = arith.constant 40 : index
    %c0_26 = arith.constant 0 : index
    %40 = vector.load %arg7[%c40, %c0_26] : memref<360x256xf32, #tpu.memory_space<vmem>>, vector<8x256xf32>
    tpu.vector_store %arg7[%c40, %c0_26], %39 {strides = array<i32>} : memref<360x256xf32, #tpu.memory_space<vmem>>, vector<8x256xf32>,
    %c241_i32 = arith.constant 241 : i32
    %41 = tpu.dynamic_rotate %17 by %c241_i32 dim 1 : vector<8x256xf32>, i32 -> vector<8x256xf32>
    %42 = vector.broadcast %14 : vector<1x256xf32> to vector<8x256xf32>
    %43 = arith.mulf %41, %42 : vector<8x256xf32>
    %c48 = arith.constant 48 : index
    %c0_27 = arith.constant 0 : index
    %44 = vector.load %arg7[%c48, %c0_27] : memref<360x256xf32, #tpu.memory_space<vmem>>, vector<8x256xf32>
    tpu.vector_store %arg7[%c48, %c0_27], %43 {strides = array<i32>} : memref<360x256xf32, #tpu.memory_space<vmem>>, vector<8x256xf32>,
    %c240_i32 = arith.constant 240 : i32
    %45 = tpu.dynamic_rotate %17 by %c240_i32 dim 1 : vector<8x256xf32>, i32 -> vector<8x256xf32>
    %46 = vector.broadcast %15 : vector<1x256xf32> to vector<8x256xf32>
    %47 = arith.mulf %45, %46 : vector<8x256xf32>
    %c56 = arith.constant 56 : index
    %c0_28 = arith.constant 0 : index
    %48 = vector.load %arg7[%c56, %c0_28] : memref<360x256xf32, #tpu.memory_space<vmem>>, vector<8x256xf32>
    tpu.vector_store %arg7[%c56, %c0_28], %47 {strides = array<i32>} : memref<360x256xf32, #tpu.memory_space<vmem>>, vector<8x256xf32>,
    %c239_i32 = arith.constant 239 : i32
    %49 = tpu.dynamic_rotate %17 by %c239_i32 dim 1 : vector<8x256xf32>, i32 -> vector<8x256xf32>
    %50 = vector.broadcast %16 : vector<1x256xf32> to vector<8x256xf32>
    %51 = arith.mulf %49, %50 : vector<8x256xf32>
    %c64 = arith.constant 64 : index
    %c0_29 = arith.constant 0 : index
    %52 = vector.load %arg7[%c64, %c0_29] : memref<360x256xf32, #tpu.memory_space<vmem>>, vector<8x256xf32>
    tpu.vector_store %arg7[%c64, %c0_29], %51 {strides = array<i32>} : memref<360x256xf32, #tpu.memory_space<vmem>>, vector<8x256xf32>,
    %c0_30 = arith.constant 0 : index
    %c0_31 = arith.constant 0 : index
    %c0_32 = arith.constant 0 : index
    %53 = vector.load %arg3[%c0_30, %c0_31, %c0_32] : memref<8x40x360xf32, #tpu.memory_space<vmem>>, vector<1x16x72xf32>
    %54 = vector.shape_cast %53 : vector<1x16x72xf32> to vector<16x72xf32>
    %c0_33 = arith.constant 0 : index
    %c0_34 = arith.constant 0 : index
    %55 = vector.load %arg7[%c0_33, %c0_34] : memref<360x256xf32, #tpu.memory_space<vmem>>, vector<72x256xf32>
    %cst_35 = arith.constant dense<0.000000e+00> : vector<16x256xf32>
    %56 = tpu.matmul %54, %55, %cst_35 {dimension_numbers = #tpu.dot_dimension_numbers<[1], [0], [0], [1], [0, 0, 1, 1], [], []>} : vector<16x72xf32>, vector<72x256xf32>, vector<16x256xf32> -> vector<16x256xf32>
    %c0_36 = arith.constant 0 : index
    %c0_37 = arith.constant 0 : index
    %c0_38 = arith.constant 0 : index
    %57 = vector.load %arg4[%c0_36, %c0_37, %c0_38] : memref<8x40x1xf32, #tpu.memory_space<vmem>>, vector<1x16x1xf32>
    %58 = vector.shape_cast %57 : vector<1x16x1xf32> to vector<16x1xf32>
    %59 = vector.broadcast %58 : vector<16x1xf32> to vector<16x256xf32>
    %60 = arith.addf %56, %59 : vector<16x256xf32>
    %cst_39 = arith.constant 0.000000e+00 : f32
    %61 = vector.broadcast %cst_39 : f32 to vector<16x256xf32>
    %62 = arith.maximumf %60, %61 : vector<16x256xf32>
    %c0_40 = arith.constant 0 : index
    %c0_41 = arith.constant 0 : index
    %63 = vector.load %arg6[%c0_40, %c0_41] : memref<40x256xf32, #tpu.memory_space<vmem>>, vector<16x256xf32>
    tpu.vector_store %arg6[%c0_40, %c0_41], %62 {strides = array<i32>} : memref<40x256xf32, #tpu.memory_space<vmem>>, vector<16x256xf32>,
    %c0_42 = arith.constant 0 : index
    %c0_43 = arith.constant 0 : index
    %64 = vector.load %arg6[%c0_42, %c0_43] : memref<40x256xf32, #tpu.memory_space<vmem>>, vector<16x256xf32>
    %c17_i32_44 = arith.constant 17 : i32
    %65 = tpu.dynamic_rotate %64 by %c17_i32_44 dim 1 : vector<16x256xf32>, i32 -> vector<16x256xf32>
    %66 = vector.broadcast %8 : vector<1x256xf32> to vector<16x256xf32>
    %67 = arith.mulf %65, %66 : vector<16x256xf32>
    %c0_45 = arith.constant 0 : index
    %c0_46 = arith.constant 0 : index
    %68 = vector.load %arg7[%c0_45, %c0_46] : memref<360x256xf32, #tpu.memory_space<vmem>>, vector<16x256xf32>
    tpu.vector_store %arg7[%c0_45, %c0_46], %67 {strides = array<i32>} : memref<360x256xf32, #tpu.memory_space<vmem>>, vector<16x256xf32>,
    %c16_i32_47 = arith.constant 16 : i32
    %69 = tpu.dynamic_rotate %64 by %c16_i32_47 dim 1 : vector<16x256xf32>, i32 -> vector<16x256xf32>
    %70 = vector.broadcast %9 : vector<1x256xf32> to vector<16x256xf32>
    %71 = arith.mulf %69, %70 : vector<16x256xf32>
    %c16_48 = arith.constant 16 : index
    %c0_49 = arith.constant 0 : index
    %72 = vector.load %arg7[%c16_48, %c0_49] : memref<360x256xf32, #tpu.memory_space<vmem>>, vector<16x256xf32>
    tpu.vector_store %arg7[%c16_48, %c0_49], %71 {strides = array<i32>} : memref<360x256xf32, #tpu.memory_space<vmem>>, vector<16x256xf32>,
    %c15_i32_50 = arith.constant 15 : i32
    %73 = tpu.dynamic_rotate %64 by %c15_i32_50 dim 1 : vector<16x256xf32>, i32 -> vector<16x256xf32>
    %74 = vector.broadcast %10 : vector<1x256xf32> to vector<16x256xf32>
    %75 = arith.mulf %73, %74 : vector<16x256xf32>
    %c32_51 = arith.constant 32 : index
    %c0_52 = arith.constant 0 : index
    %76 = vector.load %arg7[%c32_51, %c0_52] : memref<360x256xf32, #tpu.memory_space<vmem>>, vector<16x256xf32>
    tpu.vector_store %arg7[%c32_51, %c0_52], %75 {strides = array<i32>} : memref<360x256xf32, #tpu.memory_space<vmem>>, vector<16x256xf32>,
    %c1_i32_53 = arith.constant 1 : i32
    %77 = tpu.dynamic_rotate %64 by %c1_i32_53 dim 1 : vector<16x256xf32>, i32 -> vector<16x256xf32>
    %78 = vector.broadcast %11 : vector<1x256xf32> to vector<16x256xf32>
    %79 = arith.mulf %77, %78 : vector<16x256xf32>
    %c48_54 = arith.constant 48 : index
    %c0_55 = arith.constant 0 : index
    %80 = vector.load %arg7[%c48_54, %c0_55] : memref<360x256xf32, #tpu.memory_space<vmem>>, vector<16x256xf32>
    tpu.vector_store %arg7[%c48_54, %c0_55], %79 {strides = array<i32>} : memref<360x256xf32, #tpu.memory_space<vmem>>, vector<16x256xf32>,
    %81 = vector.broadcast %12 : vector<1x256xf32> to vector<16x256xf32>
    %82 = arith.mulf %64, %81 : vector<16x256xf32>
    %c64_56 = arith.constant 64 : index
    %c0_57 = arith.constant 0 : index
    %83 = vector.load %arg7[%c64_56, %c0_57] : memref<360x256xf32, #tpu.memory_space<vmem>>, vector<16x256xf32>
    tpu.vector_store %arg7[%c64_56, %c0_57], %82 {strides = array<i32>} : memref<360x256xf32, #tpu.memory_space<vmem>>, vector<16x256xf32>,
    %c255_i32_58 = arith.constant 255 : i32
    %84 = tpu.dynamic_rotate %64 by %c255_i32_58 dim 1 : vector<16x256xf32>, i32 -> vector<16x256xf32>
    %85 = vector.broadcast %13 : vector<1x256xf32> to vector<16x256xf32>
    %86 = arith.mulf %84, %85 : vector<16x256xf32>
    %c80 = arith.constant 80 : index
    %c0_59 = arith.constant 0 : index
    %87 = vector.load %arg7[%c80, %c0_59] : memref<360x256xf32, #tpu.memory_space<vmem>>, vector<16x256xf32>
    tpu.vector_store %arg7[%c80, %c0_59], %86 {strides = array<i32>} : memref<360x256xf32, #tpu.memory_space<vmem>>, vector<16x256xf32>,
    %c241_i32_60 = arith.constant 241 : i32
    %88 = tpu.dynamic_rotate %64 by %c241_i32_60 dim 1 : vector<16x256xf32>, i32 -> vector<16x256xf32>
    %89 = vector.broadcast %14 : vector<1x256xf32> to vector<16x256xf32>
    %90 = arith.mulf %88, %89 : vector<16x256xf32>
    %c96 = arith.constant 96 : index
    %c0_61 = arith.constant 0 : index
    %91 = vector.load %arg7[%c96, %c0_61] : memref<360x256xf32, #tpu.memory_space<vmem>>, vector<16x256xf32>
    tpu.vector_store %arg7[%c96, %c0_61], %90 {strides = array<i32>} : memref<360x256xf32, #tpu.memory_space<vmem>>, vector<16x256xf32>,
    %c240_i32_62 = arith.constant 240 : i32
    %92 = tpu.dynamic_rotate %64 by %c240_i32_62 dim 1 : vector<16x256xf32>, i32 -> vector<16x256xf32>
    %93 = vector.broadcast %15 : vector<1x256xf32> to vector<16x256xf32>
    %94 = arith.mulf %92, %93 : vector<16x256xf32>
    %c112 = arith.constant 112 : index
    %c0_63 = arith.constant 0 : index
    %95 = vector.load %arg7[%c112, %c0_63] : memref<360x256xf32, #tpu.memory_space<vmem>>, vector<16x256xf32>
    tpu.vector_store %arg7[%c112, %c0_63], %94 {strides = array<i32>} : memref<360x256xf32, #tpu.memory_space<vmem>>, vector<16x256xf32>,
    %c239_i32_64 = arith.constant 239 : i32
    %96 = tpu.dynamic_rotate %64 by %c239_i32_64 dim 1 : vector<16x256xf32>, i32 -> vector<16x256xf32>
    %97 = vector.broadcast %16 : vector<1x256xf32> to vector<16x256xf32>
    %98 = arith.mulf %96, %97 : vector<16x256xf32>
    %c128 = arith.constant 128 : index
    %c0_65 = arith.constant 0 : index
    %99 = vector.load %arg7[%c128, %c0_65] : memref<360x256xf32, #tpu.memory_space<vmem>>, vector<16x256xf32>
    tpu.vector_store %arg7[%c128, %c0_65], %98 {strides = array<i32>} : memref<360x256xf32, #tpu.memory_space<vmem>>, vector<16x256xf32>,
    %c1_66 = arith.constant 1 : index
    %c0_67 = arith.constant 0 : index
    %c0_68 = arith.constant 0 : index
    %100 = vector.load %arg3[%c1_66, %c0_67, %c0_68] : memref<8x40x360xf32, #tpu.memory_space<vmem>>, vector<1x24x144xf32>
    %101 = vector.shape_cast %100 : vector<1x24x144xf32> to vector<24x144xf32>
    %c0_69 = arith.constant 0 : index
    %c0_70 = arith.constant 0 : index
    %102 = vector.load %arg7[%c0_69, %c0_70] : memref<360x256xf32, #tpu.memory_space<vmem>>, vector<144x256xf32>
    %cst_71 = arith.constant dense<0.000000e+00> : vector<24x256xf32>
    %103 = tpu.matmul %101, %102, %cst_71 {dimension_numbers = #tpu.dot_dimension_numbers<[1], [0], [0], [1], [0, 0, 1, 1], [], []>} : vector<24x144xf32>, vector<144x256xf32>, vector<24x256xf32> -> vector<24x256xf32>
    %c1_72 = arith.constant 1 : index
    %c0_73 = arith.constant 0 : index
    %c0_74 = arith.constant 0 : index
    %104 = vector.load %arg4[%c1_72, %c0_73, %c0_74] : memref<8x40x1xf32, #tpu.memory_space<vmem>>, vector<1x24x1xf32>
    %105 = vector.shape_cast %104 : vector<1x24x1xf32> to vector<24x1xf32>
    %106 = vector.broadcast %105 : vector<24x1xf32> to vector<24x256xf32>
    %107 = arith.addf %103, %106 : vector<24x256xf32>
    %cst_75 = arith.constant 0.000000e+00 : f32
    %108 = vector.broadcast %cst_75 : f32 to vector<24x256xf32>
    %109 = arith.maximumf %107, %108 : vector<24x256xf32>
    %c0_76 = arith.constant 0 : index
    %c0_77 = arith.constant 0 : index
    %110 = vector.load %arg6[%c0_76, %c0_77] : memref<40x256xf32, #tpu.memory_space<vmem>>, vector<24x256xf32>
    tpu.vector_store %arg6[%c0_76, %c0_77], %109 {strides = array<i32>} : memref<40x256xf32, #tpu.memory_space<vmem>>, vector<24x256xf32>,
    %c0_78 = arith.constant 0 : index
    %c0_79 = arith.constant 0 : index
    %111 = vector.load %arg6[%c0_78, %c0_79] : memref<40x256xf32, #tpu.memory_space<vmem>>, vector<24x256xf32>
    %c17_i32_80 = arith.constant 17 : i32
    %112 = tpu.dynamic_rotate %111 by %c17_i32_80 dim 1 : vector<24x256xf32>, i32 -> vector<24x256xf32>
    %113 = vector.broadcast %8 : vector<1x256xf32> to vector<24x256xf32>
    %114 = arith.mulf %112, %113 : vector<24x256xf32>
    %c0_81 = arith.constant 0 : index
    %c0_82 = arith.constant 0 : index
    %115 = vector.load %arg7[%c0_81, %c0_82] : memref<360x256xf32, #tpu.memory_space<vmem>>, vector<24x256xf32>
    tpu.vector_store %arg7[%c0_81, %c0_82], %114 {strides = array<i32>} : memref<360x256xf32, #tpu.memory_space<vmem>>, vector<24x256xf32>,
    %c16_i32_83 = arith.constant 16 : i32
    %116 = tpu.dynamic_rotate %111 by %c16_i32_83 dim 1 : vector<24x256xf32>, i32 -> vector<24x256xf32>
    %117 = vector.broadcast %9 : vector<1x256xf32> to vector<24x256xf32>
    %118 = arith.mulf %116, %117 : vector<24x256xf32>
    %c24_84 = arith.constant 24 : index
    %c0_85 = arith.constant 0 : index
    %119 = vector.load %arg7[%c24_84, %c0_85] : memref<360x256xf32, #tpu.memory_space<vmem>>, vector<24x256xf32>
    tpu.vector_store %arg7[%c24_84, %c0_85], %118 {strides = array<i32>} : memref<360x256xf32, #tpu.memory_space<vmem>>, vector<24x256xf32>,
    %c15_i32_86 = arith.constant 15 : i32
    %120 = tpu.dynamic_rotate %111 by %c15_i32_86 dim 1 : vector<24x256xf32>, i32 -> vector<24x256xf32>
    %121 = vector.broadcast %10 : vector<1x256xf32> to vector<24x256xf32>
    %122 = arith.mulf %120, %121 : vector<24x256xf32>
    %c48_87 = arith.constant 48 : index
    %c0_88 = arith.constant 0 : index
    %123 = vector.load %arg7[%c48_87, %c0_88] : memref<360x256xf32, #tpu.memory_space<vmem>>, vector<24x256xf32>
    tpu.vector_store %arg7[%c48_87, %c0_88], %122 {strides = array<i32>} : memref<360x256xf32, #tpu.memory_space<vmem>>, vector<24x256xf32>,
    %c1_i32_89 = arith.constant 1 : i32
    %124 = tpu.dynamic_rotate %111 by %c1_i32_89 dim 1 : vector<24x256xf32>, i32 -> vector<24x256xf32>
    %125 = vector.broadcast %11 : vector<1x256xf32> to vector<24x256xf32>
    %126 = arith.mulf %124, %125 : vector<24x256xf32>
    %c72 = arith.constant 72 : index
    %c0_90 = arith.constant 0 : index
    %127 = vector.load %arg7[%c72, %c0_90] : memref<360x256xf32, #tpu.memory_space<vmem>>, vector<24x256xf32>
    tpu.vector_store %arg7[%c72, %c0_90], %126 {strides = array<i32>} : memref<360x256xf32, #tpu.memory_space<vmem>>, vector<24x256xf32>,
    %128 = vector.broadcast %12 : vector<1x256xf32> to vector<24x256xf32>
    %129 = arith.mulf %111, %128 : vector<24x256xf32>
    %c96_91 = arith.constant 96 : index
    %c0_92 = arith.constant 0 : index
    %130 = vector.load %arg7[%c96_91, %c0_92] : memref<360x256xf32, #tpu.memory_space<vmem>>, vector<24x256xf32>
    tpu.vector_store %arg7[%c96_91, %c0_92], %129 {strides = array<i32>} : memref<360x256xf32, #tpu.memory_space<vmem>>, vector<24x256xf32>,
    %c255_i32_93 = arith.constant 255 : i32
    %131 = tpu.dynamic_rotate %111 by %c255_i32_93 dim 1 : vector<24x256xf32>, i32 -> vector<24x256xf32>
    %132 = vector.broadcast %13 : vector<1x256xf32> to vector<24x256xf32>
    %133 = arith.mulf %131, %132 : vector<24x256xf32>
    %c120 = arith.constant 120 : index
    %c0_94 = arith.constant 0 : index
    %134 = vector.load %arg7[%c120, %c0_94] : memref<360x256xf32, #tpu.memory_space<vmem>>, vector<24x256xf32>
    tpu.vector_store %arg7[%c120, %c0_94], %133 {strides = array<i32>} : memref<360x256xf32, #tpu.memory_space<vmem>>, vector<24x256xf32>,
    %c241_i32_95 = arith.constant 241 : i32
    %135 = tpu.dynamic_rotate %111 by %c241_i32_95 dim 1 : vector<24x256xf32>, i32 -> vector<24x256xf32>
    %136 = vector.broadcast %14 : vector<1x256xf32> to vector<24x256xf32>
    %137 = arith.mulf %135, %136 : vector<24x256xf32>
    %c144 = arith.constant 144 : index
    %c0_96 = arith.constant 0 : index
    %138 = vector.load %arg7[%c144, %c0_96] : memref<360x256xf32, #tpu.memory_space<vmem>>, vector<24x256xf32>
    tpu.vector_store %arg7[%c144, %c0_96], %137 {strides = array<i32>} : memref<360x256xf32, #tpu.memory_space<vmem>>, vector<24x256xf32>,
    %c240_i32_97 = arith.constant 240 : i32
    %139 = tpu.dynamic_rotate %111 by %c240_i32_97 dim 1 : vector<24x256xf32>, i32 -> vector<24x256xf32>
    %140 = vector.broadcast %15 : vector<1x256xf32> to vector<24x256xf32>
    %141 = arith.mulf %139, %140 : vector<24x256xf32>
    %c168 = arith.constant 168 : index
    %c0_98 = arith.constant 0 : index
    %142 = vector.load %arg7[%c168, %c0_98] : memref<360x256xf32, #tpu.memory_space<vmem>>, vector<24x256xf32>
    tpu.vector_store %arg7[%c168, %c0_98], %141 {strides = array<i32>} : memref<360x256xf32, #tpu.memory_space<vmem>>, vector<24x256xf32>,
    %c239_i32_99 = arith.constant 239 : i32
    %143 = tpu.dynamic_rotate %111 by %c239_i32_99 dim 1 : vector<24x256xf32>, i32 -> vector<24x256xf32>
    %144 = vector.broadcast %16 : vector<1x256xf32> to vector<24x256xf32>
    %145 = arith.mulf %143, %144 : vector<24x256xf32>
    %c192 = arith.constant 192 : index
    %c0_100 = arith.constant 0 : index
    %146 = vector.load %arg7[%c192, %c0_100] : memref<360x256xf32, #tpu.memory_space<vmem>>, vector<24x256xf32>
    tpu.vector_store %arg7[%c192, %c0_100], %145 {strides = array<i32>} : memref<360x256xf32, #tpu.memory_space<vmem>>, vector<24x256xf32>,
    %c2_101 = arith.constant 2 : index
    %c0_102 = arith.constant 0 : index
    %c0_103 = arith.constant 0 : index
    %147 = vector.load %arg3[%c2_101, %c0_102, %c0_103] : memref<8x40x360xf32, #tpu.memory_space<vmem>>, vector<1x32x216xf32>
    %148 = vector.shape_cast %147 : vector<1x32x216xf32> to vector<32x216xf32>
    %c0_104 = arith.constant 0 : index
    %c0_105 = arith.constant 0 : index
    %149 = vector.load %arg7[%c0_104, %c0_105] : memref<360x256xf32, #tpu.memory_space<vmem>>, vector<216x256xf32>
    %cst_106 = arith.constant dense<0.000000e+00> : vector<32x256xf32>
    %150 = tpu.matmul %148, %149, %cst_106 {dimension_numbers = #tpu.dot_dimension_numbers<[1], [0], [0], [1], [0, 0, 1, 1], [], []>} : vector<32x216xf32>, vector<216x256xf32>, vector<32x256xf32> -> vector<32x256xf32>
    %c2_107 = arith.constant 2 : index
    %c0_108 = arith.constant 0 : index
    %c0_109 = arith.constant 0 : index
    %151 = vector.load %arg4[%c2_107, %c0_108, %c0_109] : memref<8x40x1xf32, #tpu.memory_space<vmem>>, vector<1x32x1xf32>
    %152 = vector.shape_cast %151 : vector<1x32x1xf32> to vector<32x1xf32>
    %153 = vector.broadcast %152 : vector<32x1xf32> to vector<32x256xf32>
    %154 = arith.addf %150, %153 : vector<32x256xf32>
    %cst_110 = arith.constant 0.000000e+00 : f32
    %155 = vector.broadcast %cst_110 : f32 to vector<32x256xf32>
    %156 = arith.maximumf %154, %155 : vector<32x256xf32>
    %c0_111 = arith.constant 0 : index
    %c0_112 = arith.constant 0 : index
    %157 = vector.load %arg6[%c0_111, %c0_112] : memref<40x256xf32, #tpu.memory_space<vmem>>, vector<32x256xf32>
    tpu.vector_store %arg6[%c0_111, %c0_112], %156 {strides = array<i32>} : memref<40x256xf32, #tpu.memory_space<vmem>>, vector<32x256xf32>,
    %c0_113 = arith.constant 0 : index
    %c0_114 = arith.constant 0 : index
    %158 = vector.load %arg6[%c0_113, %c0_114] : memref<40x256xf32, #tpu.memory_space<vmem>>, vector<32x256xf32>
    %c17_i32_115 = arith.constant 17 : i32
    %159 = tpu.dynamic_rotate %158 by %c17_i32_115 dim 1 : vector<32x256xf32>, i32 -> vector<32x256xf32>
    %160 = vector.broadcast %8 : vector<1x256xf32> to vector<32x256xf32>
    %161 = arith.mulf %159, %160 : vector<32x256xf32>
    %c0_116 = arith.constant 0 : index
    %c0_117 = arith.constant 0 : index
    %162 = vector.load %arg7[%c0_116, %c0_117] : memref<360x256xf32, #tpu.memory_space<vmem>>, vector<32x256xf32>
    tpu.vector_store %arg7[%c0_116, %c0_117], %161 {strides = array<i32>} : memref<360x256xf32, #tpu.memory_space<vmem>>, vector<32x256xf32>,
    %c16_i32_118 = arith.constant 16 : i32
    %163 = tpu.dynamic_rotate %158 by %c16_i32_118 dim 1 : vector<32x256xf32>, i32 -> vector<32x256xf32>
    %164 = vector.broadcast %9 : vector<1x256xf32> to vector<32x256xf32>
    %165 = arith.mulf %163, %164 : vector<32x256xf32>
    %c32_119 = arith.constant 32 : index
    %c0_120 = arith.constant 0 : index
    %166 = vector.load %arg7[%c32_119, %c0_120] : memref<360x256xf32, #tpu.memory_space<vmem>>, vector<32x256xf32>
    tpu.vector_store %arg7[%c32_119, %c0_120], %165 {strides = array<i32>} : memref<360x256xf32, #tpu.memory_space<vmem>>, vector<32x256xf32>,
    %c15_i32_121 = arith.constant 15 : i32
    %167 = tpu.dynamic_rotate %158 by %c15_i32_121 dim 1 : vector<32x256xf32>, i32 -> vector<32x256xf32>
    %168 = vector.broadcast %10 : vector<1x256xf32> to vector<32x256xf32>
    %169 = arith.mulf %167, %168 : vector<32x256xf32>
    %c64_122 = arith.constant 64 : index
    %c0_123 = arith.constant 0 : index
    %170 = vector.load %arg7[%c64_122, %c0_123] : memref<360x256xf32, #tpu.memory_space<vmem>>, vector<32x256xf32>
    tpu.vector_store %arg7[%c64_122, %c0_123], %169 {strides = array<i32>} : memref<360x256xf32, #tpu.memory_space<vmem>>, vector<32x256xf32>,
    %c1_i32_124 = arith.constant 1 : i32
    %171 = tpu.dynamic_rotate %158 by %c1_i32_124 dim 1 : vector<32x256xf32>, i32 -> vector<32x256xf32>
    %172 = vector.broadcast %11 : vector<1x256xf32> to vector<32x256xf32>
    %173 = arith.mulf %171, %172 : vector<32x256xf32>
    %c96_125 = arith.constant 96 : index
    %c0_126 = arith.constant 0 : index
    %174 = vector.load %arg7[%c96_125, %c0_126] : memref<360x256xf32, #tpu.memory_space<vmem>>, vector<32x256xf32>
    tpu.vector_store %arg7[%c96_125, %c0_126], %173 {strides = array<i32>} : memref<360x256xf32, #tpu.memory_space<vmem>>, vector<32x256xf32>,
    %175 = vector.broadcast %12 : vector<1x256xf32> to vector<32x256xf32>
    %176 = arith.mulf %158, %175 : vector<32x256xf32>
    %c128_127 = arith.constant 128 : index
    %c0_128 = arith.constant 0 : index
    %177 = vector.load %arg7[%c128_127, %c0_128] : memref<360x256xf32, #tpu.memory_space<vmem>>, vector<32x256xf32>
    tpu.vector_store %arg7[%c128_127, %c0_128], %176 {strides = array<i32>} : memref<360x256xf32, #tpu.memory_space<vmem>>, vector<32x256xf32>,
    %c255_i32_129 = arith.constant 255 : i32
    %178 = tpu.dynamic_rotate %158 by %c255_i32_129 dim 1 : vector<32x256xf32>, i32 -> vector<32x256xf32>
    %179 = vector.broadcast %13 : vector<1x256xf32> to vector<32x256xf32>
    %180 = arith.mulf %178, %179 : vector<32x256xf32>
    %c160 = arith.constant 160 : index
    %c0_130 = arith.constant 0 : index
    %181 = vector.load %arg7[%c160, %c0_130] : memref<360x256xf32, #tpu.memory_space<vmem>>, vector<32x256xf32>
    tpu.vector_store %arg7[%c160, %c0_130], %180 {strides = array<i32>} : memref<360x256xf32, #tpu.memory_space<vmem>>, vector<32x256xf32>,
    %c241_i32_131 = arith.constant 241 : i32
    %182 = tpu.dynamic_rotate %158 by %c241_i32_131 dim 1 : vector<32x256xf32>, i32 -> vector<32x256xf32>
    %183 = vector.broadcast %14 : vector<1x256xf32> to vector<32x256xf32>
    %184 = arith.mulf %182, %183 : vector<32x256xf32>
    %c192_132 = arith.constant 192 : index
    %c0_133 = arith.constant 0 : index
    %185 = vector.load %arg7[%c192_132, %c0_133] : memref<360x256xf32, #tpu.memory_space<vmem>>, vector<32x256xf32>
    tpu.vector_store %arg7[%c192_132, %c0_133], %184 {strides = array<i32>} : memref<360x256xf32, #tpu.memory_space<vmem>>, vector<32x256xf32>,
    %c240_i32_134 = arith.constant 240 : i32
    %186 = tpu.dynamic_rotate %158 by %c240_i32_134 dim 1 : vector<32x256xf32>, i32 -> vector<32x256xf32>
    %187 = vector.broadcast %15 : vector<1x256xf32> to vector<32x256xf32>
    %188 = arith.mulf %186, %187 : vector<32x256xf32>
    %c224 = arith.constant 224 : index
    %c0_135 = arith.constant 0 : index
    %189 = vector.load %arg7[%c224, %c0_135] : memref<360x256xf32, #tpu.memory_space<vmem>>, vector<32x256xf32>
    tpu.vector_store %arg7[%c224, %c0_135], %188 {strides = array<i32>} : memref<360x256xf32, #tpu.memory_space<vmem>>, vector<32x256xf32>,
    %c239_i32_136 = arith.constant 239 : i32
    %190 = tpu.dynamic_rotate %158 by %c239_i32_136 dim 1 : vector<32x256xf32>, i32 -> vector<32x256xf32>
    %191 = vector.broadcast %16 : vector<1x256xf32> to vector<32x256xf32>
    %192 = arith.mulf %190, %191 : vector<32x256xf32>
    %c256 = arith.constant 256 : index
    %c0_137 = arith.constant 0 : index
    %193 = vector.load %arg7[%c256, %c0_137] : memref<360x256xf32, #tpu.memory_space<vmem>>, vector<32x256xf32>
    tpu.vector_store %arg7[%c256, %c0_137], %192 {strides = array<i32>} : memref<360x256xf32, #tpu.memory_space<vmem>>, vector<32x256xf32>,
    %c3_138 = arith.constant 3 : index
    %c0_139 = arith.constant 0 : index
    %c0_140 = arith.constant 0 : index
    %194 = vector.load %arg3[%c3_138, %c0_139, %c0_140] : memref<8x40x360xf32, #tpu.memory_space<vmem>>, vector<1x40x288xf32>
    %195 = vector.shape_cast %194 : vector<1x40x288xf32> to vector<40x288xf32>
    %c0_141 = arith.constant 0 : index
    %c0_142 = arith.constant 0 : index
    %196 = vector.load %arg7[%c0_141, %c0_142] : memref<360x256xf32, #tpu.memory_space<vmem>>, vector<288x256xf32>
    %cst_143 = arith.constant dense<0.000000e+00> : vector<40x256xf32>
    %197 = tpu.matmul %195, %196, %cst_143 {dimension_numbers = #tpu.dot_dimension_numbers<[1], [0], [0], [1], [0, 0, 1, 1], [], []>} : vector<40x288xf32>, vector<288x256xf32>, vector<40x256xf32> -> vector<40x256xf32>
    %c3_144 = arith.constant 3 : index
    %c0_145 = arith.constant 0 : index
    %c0_146 = arith.constant 0 : index
    %198 = vector.load %arg4[%c3_144, %c0_145, %c0_146] : memref<8x40x1xf32, #tpu.memory_space<vmem>>, vector<1x40x1xf32>
    %199 = vector.shape_cast %198 : vector<1x40x1xf32> to vector<40x1xf32>
    %200 = vector.broadcast %199 : vector<40x1xf32> to vector<40x256xf32>
    %201 = arith.addf %197, %200 : vector<40x256xf32>
    %cst_147 = arith.constant 0.000000e+00 : f32
    %202 = vector.broadcast %cst_147 : f32 to vector<40x256xf32>
    %203 = arith.maximumf %201, %202 : vector<40x256xf32>
    %c0_148 = arith.constant 0 : index
    %c0_149 = arith.constant 0 : index
    %204 = vector.load %arg6[%c0_148, %c0_149] : memref<40x256xf32, #tpu.memory_space<vmem>>, vector<40x256xf32>
    tpu.vector_store %arg6[%c0_148, %c0_149], %203 {strides = array<i32>} : memref<40x256xf32, #tpu.memory_space<vmem>>, vector<40x256xf32>,
    %c0_150 = arith.constant 0 : index
    %c0_151 = arith.constant 0 : index
    %205 = vector.load %arg6[%c0_150, %c0_151] : memref<40x256xf32, #tpu.memory_space<vmem>>, vector<40x256xf32>
    %c17_i32_152 = arith.constant 17 : i32
    %206 = tpu.dynamic_rotate %205 by %c17_i32_152 dim 1 : vector<40x256xf32>, i32 -> vector<40x256xf32>
    %207 = vector.broadcast %8 : vector<1x256xf32> to vector<40x256xf32>
    %208 = arith.mulf %206, %207 : vector<40x256xf32>
    %c0_153 = arith.constant 0 : index
    %c0_154 = arith.constant 0 : index
    %209 = vector.load %arg7[%c0_153, %c0_154] : memref<360x256xf32, #tpu.memory_space<vmem>>, vector<40x256xf32>
    tpu.vector_store %arg7[%c0_153, %c0_154], %208 {strides = array<i32>} : memref<360x256xf32, #tpu.memory_space<vmem>>, vector<40x256xf32>,
    %c16_i32_155 = arith.constant 16 : i32
    %210 = tpu.dynamic_rotate %205 by %c16_i32_155 dim 1 : vector<40x256xf32>, i32 -> vector<40x256xf32>
    %211 = vector.broadcast %9 : vector<1x256xf32> to vector<40x256xf32>
    %212 = arith.mulf %210, %211 : vector<40x256xf32>
    %c40_156 = arith.constant 40 : index
    %c0_157 = arith.constant 0 : index
    %213 = vector.load %arg7[%c40_156, %c0_157] : memref<360x256xf32, #tpu.memory_space<vmem>>, vector<40x256xf32>
    tpu.vector_store %arg7[%c40_156, %c0_157], %212 {strides = array<i32>} : memref<360x256xf32, #tpu.memory_space<vmem>>, vector<40x256xf32>,
    %c15_i32_158 = arith.constant 15 : i32
    %214 = tpu.dynamic_rotate %205 by %c15_i32_158 dim 1 : vector<40x256xf32>, i32 -> vector<40x256xf32>
    %215 = vector.broadcast %10 : vector<1x256xf32> to vector<40x256xf32>
    %216 = arith.mulf %214, %215 : vector<40x256xf32>
    %c80_159 = arith.constant 80 : index
    %c0_160 = arith.constant 0 : index
    %217 = vector.load %arg7[%c80_159, %c0_160] : memref<360x256xf32, #tpu.memory_space<vmem>>, vector<40x256xf32>
    tpu.vector_store %arg7[%c80_159, %c0_160], %216 {strides = array<i32>} : memref<360x256xf32, #tpu.memory_space<vmem>>, vector<40x256xf32>,
    %c1_i32_161 = arith.constant 1 : i32
    %218 = tpu.dynamic_rotate %205 by %c1_i32_161 dim 1 : vector<40x256xf32>, i32 -> vector<40x256xf32>
    %219 = vector.broadcast %11 : vector<1x256xf32> to vector<40x256xf32>
    %220 = arith.mulf %218, %219 : vector<40x256xf32>
    %c120_162 = arith.constant 120 : index
    %c0_163 = arith.constant 0 : index
    %221 = vector.load %arg7[%c120_162, %c0_163] : memref<360x256xf32, #tpu.memory_space<vmem>>, vector<40x256xf32>
    tpu.vector_store %arg7[%c120_162, %c0_163], %220 {strides = array<i32>} : memref<360x256xf32, #tpu.memory_space<vmem>>, vector<40x256xf32>,
    %222 = vector.broadcast %12 : vector<1x256xf32> to vector<40x256xf32>
    %223 = arith.mulf %205, %222 : vector<40x256xf32>
    %c160_164 = arith.constant 160 : index
    %c0_165 = arith.constant 0 : index
    %224 = vector.load %arg7[%c160_164, %c0_165] : memref<360x256xf32, #tpu.memory_space<vmem>>, vector<40x256xf32>
    tpu.vector_store %arg7[%c160_164, %c0_165], %223 {strides = array<i32>} : memref<360x256xf32, #tpu.memory_space<vmem>>, vector<40x256xf32>,
    %c255_i32_166 = arith.constant 255 : i32
    %225 = tpu.dynamic_rotate %205 by %c255_i32_166 dim 1 : vector<40x256xf32>, i32 -> vector<40x256xf32>
    %226 = vector.broadcast %13 : vector<1x256xf32> to vector<40x256xf32>
    %227 = arith.mulf %225, %226 : vector<40x256xf32>
    %c200 = arith.constant 200 : index
    %c0_167 = arith.constant 0 : index
    %228 = vector.load %arg7[%c200, %c0_167] : memref<360x256xf32, #tpu.memory_space<vmem>>, vector<40x256xf32>
    tpu.vector_store %arg7[%c200, %c0_167], %227 {strides = array<i32>} : memref<360x256xf32, #tpu.memory_space<vmem>>, vector<40x256xf32>,
    %c241_i32_168 = arith.constant 241 : i32
    %229 = tpu.dynamic_rotate %205 by %c241_i32_168 dim 1 : vector<40x256xf32>, i32 -> vector<40x256xf32>
    %230 = vector.broadcast %14 : vector<1x256xf32> to vector<40x256xf32>
    %231 = arith.mulf %229, %230 : vector<40x256xf32>
    %c240 = arith.constant 240 : index
    %c0_169 = arith.constant 0 : index
    %232 = vector.load %arg7[%c240, %c0_169] : memref<360x256xf32, #tpu.memory_space<vmem>>, vector<40x256xf32>
    tpu.vector_store %arg7[%c240, %c0_169], %231 {strides = array<i32>} : memref<360x256xf32, #tpu.memory_space<vmem>>, vector<40x256xf32>,
    %c240_i32_170 = arith.constant 240 : i32
    %233 = tpu.dynamic_rotate %205 by %c240_i32_170 dim 1 : vector<40x256xf32>, i32 -> vector<40x256xf32>
    %234 = vector.broadcast %15 : vector<1x256xf32> to vector<40x256xf32>
    %235 = arith.mulf %233, %234 : vector<40x256xf32>
    %c280 = arith.constant 280 : index
    %c0_171 = arith.constant 0 : index
    %236 = vector.load %arg7[%c280, %c0_171] : memref<360x256xf32, #tpu.memory_space<vmem>>, vector<40x256xf32>
    tpu.vector_store %arg7[%c280, %c0_171], %235 {strides = array<i32>} : memref<360x256xf32, #tpu.memory_space<vmem>>, vector<40x256xf32>,
    %c239_i32_172 = arith.constant 239 : i32
    %237 = tpu.dynamic_rotate %205 by %c239_i32_172 dim 1 : vector<40x256xf32>, i32 -> vector<40x256xf32>
    %238 = vector.broadcast %16 : vector<1x256xf32> to vector<40x256xf32>
    %239 = arith.mulf %237, %238 : vector<40x256xf32>
    %c320 = arith.constant 320 : index
    %c0_173 = arith.constant 0 : index
    %240 = vector.load %arg7[%c320, %c0_173] : memref<360x256xf32, #tpu.memory_space<vmem>>, vector<40x256xf32>
    tpu.vector_store %arg7[%c320, %c0_173], %239 {strides = array<i32>} : memref<360x256xf32, #tpu.memory_space<vmem>>, vector<40x256xf32>,
    %c4_174 = arith.constant 4 : index
    %c0_175 = arith.constant 0 : index
    %c0_176 = arith.constant 0 : index
    %241 = vector.load %arg3[%c4_174, %c0_175, %c0_176] : memref<8x40x360xf32, #tpu.memory_space<vmem>>, vector<1x32x360xf32>
    %242 = vector.shape_cast %241 : vector<1x32x360xf32> to vector<32x360xf32>
    %c0_177 = arith.constant 0 : index
    %c0_178 = arith.constant 0 : index
    %243 = vector.load %arg7[%c0_177, %c0_178] : memref<360x256xf32, #tpu.memory_space<vmem>>, vector<360x256xf32>
    %cst_179 = arith.constant dense<0.000000e+00> : vector<32x256xf32>
    %244 = tpu.matmul %242, %243, %cst_179 {dimension_numbers = #tpu.dot_dimension_numbers<[1], [0], [0], [1], [0, 0, 1, 1], [], []>} : vector<32x360xf32>, vector<360x256xf32>, vector<32x256xf32> -> vector<32x256xf32>
    %c4_180 = arith.constant 4 : index
    %c0_181 = arith.constant 0 : index
    %c0_182 = arith.constant 0 : index
    %245 = vector.load %arg4[%c4_180, %c0_181, %c0_182] : memref<8x40x1xf32, #tpu.memory_space<vmem>>, vector<1x32x1xf32>
    %246 = vector.shape_cast %245 : vector<1x32x1xf32> to vector<32x1xf32>
    %247 = vector.broadcast %246 : vector<32x1xf32> to vector<32x256xf32>
    %248 = arith.addf %244, %247 : vector<32x256xf32>
    %cst_183 = arith.constant 0.000000e+00 : f32
    %249 = vector.broadcast %cst_183 : f32 to vector<32x256xf32>
    %250 = arith.maximumf %248, %249 : vector<32x256xf32>
    %c0_184 = arith.constant 0 : index
    %c0_185 = arith.constant 0 : index
    %251 = vector.load %arg6[%c0_184, %c0_185] : memref<40x256xf32, #tpu.memory_space<vmem>>, vector<32x256xf32>
    tpu.vector_store %arg6[%c0_184, %c0_185], %250 {strides = array<i32>} : memref<40x256xf32, #tpu.memory_space<vmem>>, vector<32x256xf32>,
    %c0_186 = arith.constant 0 : index
    %c0_187 = arith.constant 0 : index
    %252 = vector.load %arg6[%c0_186, %c0_187] : memref<40x256xf32, #tpu.memory_space<vmem>>, vector<32x256xf32>
    %c17_i32_188 = arith.constant 17 : i32
    %253 = tpu.dynamic_rotate %252 by %c17_i32_188 dim 1 : vector<32x256xf32>, i32 -> vector<32x256xf32>
    %254 = vector.broadcast %8 : vector<1x256xf32> to vector<32x256xf32>
    %255 = arith.mulf %253, %254 : vector<32x256xf32>
    %c0_189 = arith.constant 0 : index
    %c0_190 = arith.constant 0 : index
    %256 = vector.load %arg7[%c0_189, %c0_190] : memref<360x256xf32, #tpu.memory_space<vmem>>, vector<32x256xf32>
    tpu.vector_store %arg7[%c0_189, %c0_190], %255 {strides = array<i32>} : memref<360x256xf32, #tpu.memory_space<vmem>>, vector<32x256xf32>,
    %c16_i32_191 = arith.constant 16 : i32
    %257 = tpu.dynamic_rotate %252 by %c16_i32_191 dim 1 : vector<32x256xf32>, i32 -> vector<32x256xf32>
    %258 = vector.broadcast %9 : vector<1x256xf32> to vector<32x256xf32>
    %259 = arith.mulf %257, %258 : vector<32x256xf32>
    %c32_192 = arith.constant 32 : index
    %c0_193 = arith.constant 0 : index
    %260 = vector.load %arg7[%c32_192, %c0_193] : memref<360x256xf32, #tpu.memory_space<vmem>>, vector<32x256xf32>
    tpu.vector_store %arg7[%c32_192, %c0_193], %259 {strides = array<i32>} : memref<360x256xf32, #tpu.memory_space<vmem>>, vector<32x256xf32>,
    %c15_i32_194 = arith.constant 15 : i32
    %261 = tpu.dynamic_rotate %252 by %c15_i32_194 dim 1 : vector<32x256xf32>, i32 -> vector<32x256xf32>
    %262 = vector.broadcast %10 : vector<1x256xf32> to vector<32x256xf32>
    %263 = arith.mulf %261, %262 : vector<32x256xf32>
    %c64_195 = arith.constant 64 : index
    %c0_196 = arith.constant 0 : index
    %264 = vector.load %arg7[%c64_195, %c0_196] : memref<360x256xf32, #tpu.memory_space<vmem>>, vector<32x256xf32>
    tpu.vector_store %arg7[%c64_195, %c0_196], %263 {strides = array<i32>} : memref<360x256xf32, #tpu.memory_space<vmem>>, vector<32x256xf32>,
    %c1_i32_197 = arith.constant 1 : i32
    %265 = tpu.dynamic_rotate %252 by %c1_i32_197 dim 1 : vector<32x256xf32>, i32 -> vector<32x256xf32>
    %266 = vector.broadcast %11 : vector<1x256xf32> to vector<32x256xf32>
    %267 = arith.mulf %265, %266 : vector<32x256xf32>
    %c96_198 = arith.constant 96 : index
    %c0_199 = arith.constant 0 : index
    %268 = vector.load %arg7[%c96_198, %c0_199] : memref<360x256xf32, #tpu.memory_space<vmem>>, vector<32x256xf32>
    tpu.vector_store %arg7[%c96_198, %c0_199], %267 {strides = array<i32>} : memref<360x256xf32, #tpu.memory_space<vmem>>, vector<32x256xf32>,
    %269 = vector.broadcast %12 : vector<1x256xf32> to vector<32x256xf32>
    %270 = arith.mulf %252, %269 : vector<32x256xf32>
    %c128_200 = arith.constant 128 : index
    %c0_201 = arith.constant 0 : index
    %271 = vector.load %arg7[%c128_200, %c0_201] : memref<360x256xf32, #tpu.memory_space<vmem>>, vector<32x256xf32>
    tpu.vector_store %arg7[%c128_200, %c0_201], %270 {strides = array<i32>} : memref<360x256xf32, #tpu.memory_space<vmem>>, vector<32x256xf32>,
    %c255_i32_202 = arith.constant 255 : i32
    %272 = tpu.dynamic_rotate %252 by %c255_i32_202 dim 1 : vector<32x256xf32>, i32 -> vector<32x256xf32>
    %273 = vector.broadcast %13 : vector<1x256xf32> to vector<32x256xf32>
    %274 = arith.mulf %272, %273 : vector<32x256xf32>
    %c160_203 = arith.constant 160 : index
    %c0_204 = arith.constant 0 : index
    %275 = vector.load %arg7[%c160_203, %c0_204] : memref<360x256xf32, #tpu.memory_space<vmem>>, vector<32x256xf32>
    tpu.vector_store %arg7[%c160_203, %c0_204], %274 {strides = array<i32>} : memref<360x256xf32, #tpu.memory_space<vmem>>, vector<32x256xf32>,
    %c241_i32_205 = arith.constant 241 : i32
    %276 = tpu.dynamic_rotate %252 by %c241_i32_205 dim 1 : vector<32x256xf32>, i32 -> vector<32x256xf32>
    %277 = vector.broadcast %14 : vector<1x256xf32> to vector<32x256xf32>
    %278 = arith.mulf %276, %277 : vector<32x256xf32>
    %c192_206 = arith.constant 192 : index
    %c0_207 = arith.constant 0 : index
    %279 = vector.load %arg7[%c192_206, %c0_207] : memref<360x256xf32, #tpu.memory_space<vmem>>, vector<32x256xf32>
    tpu.vector_store %arg7[%c192_206, %c0_207], %278 {strides = array<i32>} : memref<360x256xf32, #tpu.memory_space<vmem>>, vector<32x256xf32>,
    %c240_i32_208 = arith.constant 240 : i32
    %280 = tpu.dynamic_rotate %252 by %c240_i32_208 dim 1 : vector<32x256xf32>, i32 -> vector<32x256xf32>
    %281 = vector.broadcast %15 : vector<1x256xf32> to vector<32x256xf32>
    %282 = arith.mulf %280, %281 : vector<32x256xf32>
    %c224_209 = arith.constant 224 : index
    %c0_210 = arith.constant 0 : index
    %283 = vector.load %arg7[%c224_209, %c0_210] : memref<360x256xf32, #tpu.memory_space<vmem>>, vector<32x256xf32>
    tpu.vector_store %arg7[%c224_209, %c0_210], %282 {strides = array<i32>} : memref<360x256xf32, #tpu.memory_space<vmem>>, vector<32x256xf32>,
    %c239_i32_211 = arith.constant 239 : i32
    %284 = tpu.dynamic_rotate %252 by %c239_i32_211 dim 1 : vector<32x256xf32>, i32 -> vector<32x256xf32>
    %285 = vector.broadcast %16 : vector<1x256xf32> to vector<32x256xf32>
    %286 = arith.mulf %284, %285 : vector<32x256xf32>
    %c256_212 = arith.constant 256 : index
    %c0_213 = arith.constant 0 : index
    %287 = vector.load %arg7[%c256_212, %c0_213] : memref<360x256xf32, #tpu.memory_space<vmem>>, vector<32x256xf32>
    tpu.vector_store %arg7[%c256_212, %c0_213], %286 {strides = array<i32>} : memref<360x256xf32, #tpu.memory_space<vmem>>, vector<32x256xf32>,
    %c5_214 = arith.constant 5 : index
    %c0_215 = arith.constant 0 : index
    %c0_216 = arith.constant 0 : index
    %288 = vector.load %arg3[%c5_214, %c0_215, %c0_216] : memref<8x40x360xf32, #tpu.memory_space<vmem>>, vector<1x24x288xf32>
    %289 = vector.shape_cast %288 : vector<1x24x288xf32> to vector<24x288xf32>
    %c0_217 = arith.constant 0 : index
    %c0_218 = arith.constant 0 : index
    %290 = vector.load %arg7[%c0_217, %c0_218] : memref<360x256xf32, #tpu.memory_space<vmem>>, vector<288x256xf32>
    %cst_219 = arith.constant dense<0.000000e+00> : vector<24x256xf32>
    %291 = tpu.matmul %289, %290, %cst_219 {dimension_numbers = #tpu.dot_dimension_numbers<[1], [0], [0], [1], [0, 0, 1, 1], [], []>} : vector<24x288xf32>, vector<288x256xf32>, vector<24x256xf32> -> vector<24x256xf32>
    %c5_220 = arith.constant 5 : index
    %c0_221 = arith.constant 0 : index
    %c0_222 = arith.constant 0 : index
    %292 = vector.load %arg4[%c5_220, %c0_221, %c0_222] : memref<8x40x1xf32, #tpu.memory_space<vmem>>, vector<1x24x1xf32>
    %293 = vector.shape_cast %292 : vector<1x24x1xf32> to vector<24x1xf32>
    %294 = vector.broadcast %293 : vector<24x1xf32> to vector<24x256xf32>
    %295 = arith.addf %291, %294 : vector<24x256xf32>
    %cst_223 = arith.constant 0.000000e+00 : f32
    %296 = vector.broadcast %cst_223 : f32 to vector<24x256xf32>
    %297 = arith.maximumf %295, %296 : vector<24x256xf32>
    %c0_224 = arith.constant 0 : index
    %c0_225 = arith.constant 0 : index
    %298 = vector.load %arg6[%c0_224, %c0_225] : memref<40x256xf32, #tpu.memory_space<vmem>>, vector<24x256xf32>
    tpu.vector_store %arg6[%c0_224, %c0_225], %297 {strides = array<i32>} : memref<40x256xf32, #tpu.memory_space<vmem>>, vector<24x256xf32>,
    %c0_226 = arith.constant 0 : index
    %c0_227 = arith.constant 0 : index
    %299 = vector.load %arg6[%c0_226, %c0_227] : memref<40x256xf32, #tpu.memory_space<vmem>>, vector<24x256xf32>
    %c17_i32_228 = arith.constant 17 : i32
    %300 = tpu.dynamic_rotate %299 by %c17_i32_228 dim 1 : vector<24x256xf32>, i32 -> vector<24x256xf32>
    %301 = vector.broadcast %8 : vector<1x256xf32> to vector<24x256xf32>
    %302 = arith.mulf %300, %301 : vector<24x256xf32>
    %c0_229 = arith.constant 0 : index
    %c0_230 = arith.constant 0 : index
    %303 = vector.load %arg7[%c0_229, %c0_230] : memref<360x256xf32, #tpu.memory_space<vmem>>, vector<24x256xf32>
    tpu.vector_store %arg7[%c0_229, %c0_230], %302 {strides = array<i32>} : memref<360x256xf32, #tpu.memory_space<vmem>>, vector<24x256xf32>,
    %c16_i32_231 = arith.constant 16 : i32
    %304 = tpu.dynamic_rotate %299 by %c16_i32_231 dim 1 : vector<24x256xf32>, i32 -> vector<24x256xf32>
    %305 = vector.broadcast %9 : vector<1x256xf32> to vector<24x256xf32>
    %306 = arith.mulf %304, %305 : vector<24x256xf32>
    %c24_232 = arith.constant 24 : index
    %c0_233 = arith.constant 0 : index
    %307 = vector.load %arg7[%c24_232, %c0_233] : memref<360x256xf32, #tpu.memory_space<vmem>>, vector<24x256xf32>
    tpu.vector_store %arg7[%c24_232, %c0_233], %306 {strides = array<i32>} : memref<360x256xf32, #tpu.memory_space<vmem>>, vector<24x256xf32>,
    %c15_i32_234 = arith.constant 15 : i32
    %308 = tpu.dynamic_rotate %299 by %c15_i32_234 dim 1 : vector<24x256xf32>, i32 -> vector<24x256xf32>
    %309 = vector.broadcast %10 : vector<1x256xf32> to vector<24x256xf32>
    %310 = arith.mulf %308, %309 : vector<24x256xf32>
    %c48_235 = arith.constant 48 : index
    %c0_236 = arith.constant 0 : index
    %311 = vector.load %arg7[%c48_235, %c0_236] : memref<360x256xf32, #tpu.memory_space<vmem>>, vector<24x256xf32>
    tpu.vector_store %arg7[%c48_235, %c0_236], %310 {strides = array<i32>} : memref<360x256xf32, #tpu.memory_space<vmem>>, vector<24x256xf32>,
    %c1_i32_237 = arith.constant 1 : i32
    %312 = tpu.dynamic_rotate %299 by %c1_i32_237 dim 1 : vector<24x256xf32>, i32 -> vector<24x256xf32>
    %313 = vector.broadcast %11 : vector<1x256xf32> to vector<24x256xf32>
    %314 = arith.mulf %312, %313 : vector<24x256xf32>
    %c72_238 = arith.constant 72 : index
    %c0_239 = arith.constant 0 : index
    %315 = vector.load %arg7[%c72_238, %c0_239] : memref<360x256xf32, #tpu.memory_space<vmem>>, vector<24x256xf32>
    tpu.vector_store %arg7[%c72_238, %c0_239], %314 {strides = array<i32>} : memref<360x256xf32, #tpu.memory_space<vmem>>, vector<24x256xf32>,
    %316 = vector.broadcast %12 : vector<1x256xf32> to vector<24x256xf32>
    %317 = arith.mulf %299, %316 : vector<24x256xf32>
    %c96_240 = arith.constant 96 : index
    %c0_241 = arith.constant 0 : index
    %318 = vector.load %arg7[%c96_240, %c0_241] : memref<360x256xf32, #tpu.memory_space<vmem>>, vector<24x256xf32>
    tpu.vector_store %arg7[%c96_240, %c0_241], %317 {strides = array<i32>} : memref<360x256xf32, #tpu.memory_space<vmem>>, vector<24x256xf32>,
    %c255_i32_242 = arith.constant 255 : i32
    %319 = tpu.dynamic_rotate %299 by %c255_i32_242 dim 1 : vector<24x256xf32>, i32 -> vector<24x256xf32>
    %320 = vector.broadcast %13 : vector<1x256xf32> to vector<24x256xf32>
    %321 = arith.mulf %319, %320 : vector<24x256xf32>
    %c120_243 = arith.constant 120 : index
    %c0_244 = arith.constant 0 : index
    %322 = vector.load %arg7[%c120_243, %c0_244] : memref<360x256xf32, #tpu.memory_space<vmem>>, vector<24x256xf32>
    tpu.vector_store %arg7[%c120_243, %c0_244], %321 {strides = array<i32>} : memref<360x256xf32, #tpu.memory_space<vmem>>, vector<24x256xf32>,
    %c241_i32_245 = arith.constant 241 : i32
    %323 = tpu.dynamic_rotate %299 by %c241_i32_245 dim 1 : vector<24x256xf32>, i32 -> vector<24x256xf32>
    %324 = vector.broadcast %14 : vector<1x256xf32> to vector<24x256xf32>
    %325 = arith.mulf %323, %324 : vector<24x256xf32>
    %c144_246 = arith.constant 144 : index
    %c0_247 = arith.constant 0 : index
    %326 = vector.load %arg7[%c144_246, %c0_247] : memref<360x256xf32, #tpu.memory_space<vmem>>, vector<24x256xf32>
    tpu.vector_store %arg7[%c144_246, %c0_247], %325 {strides = array<i32>} : memref<360x256xf32, #tpu.memory_space<vmem>>, vector<24x256xf32>,
    %c240_i32_248 = arith.constant 240 : i32
    %327 = tpu.dynamic_rotate %299 by %c240_i32_248 dim 1 : vector<24x256xf32>, i32 -> vector<24x256xf32>
    %328 = vector.broadcast %15 : vector<1x256xf32> to vector<24x256xf32>
    %329 = arith.mulf %327, %328 : vector<24x256xf32>
    %c168_249 = arith.constant 168 : index
    %c0_250 = arith.constant 0 : index
    %330 = vector.load %arg7[%c168_249, %c0_250] : memref<360x256xf32, #tpu.memory_space<vmem>>, vector<24x256xf32>
    tpu.vector_store %arg7[%c168_249, %c0_250], %329 {strides = array<i32>} : memref<360x256xf32, #tpu.memory_space<vmem>>, vector<24x256xf32>,
    %c239_i32_251 = arith.constant 239 : i32
    %331 = tpu.dynamic_rotate %299 by %c239_i32_251 dim 1 : vector<24x256xf32>, i32 -> vector<24x256xf32>
    %332 = vector.broadcast %16 : vector<1x256xf32> to vector<24x256xf32>
    %333 = arith.mulf %331, %332 : vector<24x256xf32>
    %c192_252 = arith.constant 192 : index
    %c0_253 = arith.constant 0 : index
    %334 = vector.load %arg7[%c192_252, %c0_253] : memref<360x256xf32, #tpu.memory_space<vmem>>, vector<24x256xf32>
    tpu.vector_store %arg7[%c192_252, %c0_253], %333 {strides = array<i32>} : memref<360x256xf32, #tpu.memory_space<vmem>>, vector<24x256xf32>,
    %c6_254 = arith.constant 6 : index
    %c0_255 = arith.constant 0 : index
    %c0_256 = arith.constant 0 : index
    %335 = vector.load %arg3[%c6_254, %c0_255, %c0_256] : memref<8x40x360xf32, #tpu.memory_space<vmem>>, vector<1x16x216xf32>
    %336 = vector.shape_cast %335 : vector<1x16x216xf32> to vector<16x216xf32>
    %c0_257 = arith.constant 0 : index
    %c0_258 = arith.constant 0 : index
    %337 = vector.load %arg7[%c0_257, %c0_258] : memref<360x256xf32, #tpu.memory_space<vmem>>, vector<216x256xf32>
    %cst_259 = arith.constant dense<0.000000e+00> : vector<16x256xf32>
    %338 = tpu.matmul %336, %337, %cst_259 {dimension_numbers = #tpu.dot_dimension_numbers<[1], [0], [0], [1], [0, 0, 1, 1], [], []>} : vector<16x216xf32>, vector<216x256xf32>, vector<16x256xf32> -> vector<16x256xf32>
    %c6_260 = arith.constant 6 : index
    %c0_261 = arith.constant 0 : index
    %c0_262 = arith.constant 0 : index
    %339 = vector.load %arg4[%c6_260, %c0_261, %c0_262] : memref<8x40x1xf32, #tpu.memory_space<vmem>>, vector<1x16x1xf32>
    %340 = vector.shape_cast %339 : vector<1x16x1xf32> to vector<16x1xf32>
    %341 = vector.broadcast %340 : vector<16x1xf32> to vector<16x256xf32>
    %342 = arith.addf %338, %341 : vector<16x256xf32>
    %c0_263 = arith.constant 0 : index
    %c0_264 = arith.constant 0 : index
    %343 = vector.load %arg6[%c0_263, %c0_264] : memref<40x256xf32, #tpu.memory_space<vmem>>, vector<16x256xf32>
    tpu.vector_store %arg6[%c0_263, %c0_264], %342 {strides = array<i32>} : memref<40x256xf32, #tpu.memory_space<vmem>>, vector<16x256xf32>,
    %c0_265 = arith.constant 0 : index
    %c0_266 = arith.constant 0 : index
    %344 = vector.load %arg6[%c0_265, %c0_266] : memref<40x256xf32, #tpu.memory_space<vmem>>, vector<16x256xf32>
    %c17_i32_267 = arith.constant 17 : i32
    %345 = tpu.dynamic_rotate %344 by %c17_i32_267 dim 1 : vector<16x256xf32>, i32 -> vector<16x256xf32>
    %346 = vector.broadcast %8 : vector<1x256xf32> to vector<16x256xf32>
    %347 = arith.mulf %345, %346 : vector<16x256xf32>
    %c0_268 = arith.constant 0 : index
    %c0_269 = arith.constant 0 : index
    %348 = vector.load %arg7[%c0_268, %c0_269] : memref<360x256xf32, #tpu.memory_space<vmem>>, vector<16x256xf32>
    tpu.vector_store %arg7[%c0_268, %c0_269], %347 {strides = array<i32>} : memref<360x256xf32, #tpu.memory_space<vmem>>, vector<16x256xf32>,
    %c16_i32_270 = arith.constant 16 : i32
    %349 = tpu.dynamic_rotate %344 by %c16_i32_270 dim 1 : vector<16x256xf32>, i32 -> vector<16x256xf32>
    %350 = vector.broadcast %9 : vector<1x256xf32> to vector<16x256xf32>
    %351 = arith.mulf %349, %350 : vector<16x256xf32>
    %c16_271 = arith.constant 16 : index
    %c0_272 = arith.constant 0 : index
    %352 = vector.load %arg7[%c16_271, %c0_272] : memref<360x256xf32, #tpu.memory_space<vmem>>, vector<16x256xf32>
    tpu.vector_store %arg7[%c16_271, %c0_272], %351 {strides = array<i32>} : memref<360x256xf32, #tpu.memory_space<vmem>>, vector<16x256xf32>,
    %c15_i32_273 = arith.constant 15 : i32
    %353 = tpu.dynamic_rotate %344 by %c15_i32_273 dim 1 : vector<16x256xf32>, i32 -> vector<16x256xf32>
    %354 = vector.broadcast %10 : vector<1x256xf32> to vector<16x256xf32>
    %355 = arith.mulf %353, %354 : vector<16x256xf32>
    %c32_274 = arith.constant 32 : index
    %c0_275 = arith.constant 0 : index
    %356 = vector.load %arg7[%c32_274, %c0_275] : memref<360x256xf32, #tpu.memory_space<vmem>>, vector<16x256xf32>
    tpu.vector_store %arg7[%c32_274, %c0_275], %355 {strides = array<i32>} : memref<360x256xf32, #tpu.memory_space<vmem>>, vector<16x256xf32>,
    %c1_i32_276 = arith.constant 1 : i32
    %357 = tpu.dynamic_rotate %344 by %c1_i32_276 dim 1 : vector<16x256xf32>, i32 -> vector<16x256xf32>
    %358 = vector.broadcast %11 : vector<1x256xf32> to vector<16x256xf32>
    %359 = arith.mulf %357, %358 : vector<16x256xf32>
    %c48_277 = arith.constant 48 : index
    %c0_278 = arith.constant 0 : index
    %360 = vector.load %arg7[%c48_277, %c0_278] : memref<360x256xf32, #tpu.memory_space<vmem>>, vector<16x256xf32>
    tpu.vector_store %arg7[%c48_277, %c0_278], %359 {strides = array<i32>} : memref<360x256xf32, #tpu.memory_space<vmem>>, vector<16x256xf32>,
    %361 = vector.broadcast %12 : vector<1x256xf32> to vector<16x256xf32>
    %362 = arith.mulf %344, %361 : vector<16x256xf32>
    %c64_279 = arith.constant 64 : index
    %c0_280 = arith.constant 0 : index
    %363 = vector.load %arg7[%c64_279, %c0_280] : memref<360x256xf32, #tpu.memory_space<vmem>>, vector<16x256xf32>
    tpu.vector_store %arg7[%c64_279, %c0_280], %362 {strides = array<i32>} : memref<360x256xf32, #tpu.memory_space<vmem>>, vector<16x256xf32>,
    %c255_i32_281 = arith.constant 255 : i32
    %364 = tpu.dynamic_rotate %344 by %c255_i32_281 dim 1 : vector<16x256xf32>, i32 -> vector<16x256xf32>
    %365 = vector.broadcast %13 : vector<1x256xf32> to vector<16x256xf32>
    %366 = arith.mulf %364, %365 : vector<16x256xf32>
    %c80_282 = arith.constant 80 : index
    %c0_283 = arith.constant 0 : index
    %367 = vector.load %arg7[%c80_282, %c0_283] : memref<360x256xf32, #tpu.memory_space<vmem>>, vector<16x256xf32>
    tpu.vector_store %arg7[%c80_282, %c0_283], %366 {strides = array<i32>} : memref<360x256xf32, #tpu.memory_space<vmem>>, vector<16x256xf32>,
    %c241_i32_284 = arith.constant 241 : i32
    %368 = tpu.dynamic_rotate %344 by %c241_i32_284 dim 1 : vector<16x256xf32>, i32 -> vector<16x256xf32>
    %369 = vector.broadcast %14 : vector<1x256xf32> to vector<16x256xf32>
    %370 = arith.mulf %368, %369 : vector<16x256xf32>
    %c96_285 = arith.constant 96 : index
    %c0_286 = arith.constant 0 : index
    %371 = vector.load %arg7[%c96_285, %c0_286] : memref<360x256xf32, #tpu.memory_space<vmem>>, vector<16x256xf32>
    tpu.vector_store %arg7[%c96_285, %c0_286], %370 {strides = array<i32>} : memref<360x256xf32, #tpu.memory_space<vmem>>, vector<16x256xf32>,
    %c240_i32_287 = arith.constant 240 : i32
    %372 = tpu.dynamic_rotate %344 by %c240_i32_287 dim 1 : vector<16x256xf32>, i32 -> vector<16x256xf32>
    %373 = vector.broadcast %15 : vector<1x256xf32> to vector<16x256xf32>
    %374 = arith.mulf %372, %373 : vector<16x256xf32>
    %c112_288 = arith.constant 112 : index
    %c0_289 = arith.constant 0 : index
    %375 = vector.load %arg7[%c112_288, %c0_289] : memref<360x256xf32, #tpu.memory_space<vmem>>, vector<16x256xf32>
    tpu.vector_store %arg7[%c112_288, %c0_289], %374 {strides = array<i32>} : memref<360x256xf32, #tpu.memory_space<vmem>>, vector<16x256xf32>,
    %c239_i32_290 = arith.constant 239 : i32
    %376 = tpu.dynamic_rotate %344 by %c239_i32_290 dim 1 : vector<16x256xf32>, i32 -> vector<16x256xf32>
    %377 = vector.broadcast %16 : vector<1x256xf32> to vector<16x256xf32>
    %378 = arith.mulf %376, %377 : vector<16x256xf32>
    %c128_291 = arith.constant 128 : index
    %c0_292 = arith.constant 0 : index
    %379 = vector.load %arg7[%c128_291, %c0_292] : memref<360x256xf32, #tpu.memory_space<vmem>>, vector<16x256xf32>
    tpu.vector_store %arg7[%c128_291, %c0_292], %378 {strides = array<i32>} : memref<360x256xf32, #tpu.memory_space<vmem>>, vector<16x256xf32>,
    %c7_293 = arith.constant 7 : index
    %c0_294 = arith.constant 0 : index
    %c0_295 = arith.constant 0 : index
    %380 = vector.load %arg3[%c7_293, %c0_294, %c0_295] : memref<8x40x360xf32, #tpu.memory_space<vmem>>, vector<1x8x144xf32>
    %381 = vector.shape_cast %380 : vector<1x8x144xf32> to vector<8x144xf32>
    %c0_296 = arith.constant 0 : index
    %c0_297 = arith.constant 0 : index
    %382 = vector.load %arg7[%c0_296, %c0_297] : memref<360x256xf32, #tpu.memory_space<vmem>>, vector<144x256xf32>
    %cst_298 = arith.constant dense<0.000000e+00> : vector<8x256xf32>
    %383 = tpu.matmul %381, %382, %cst_298 {dimension_numbers = #tpu.dot_dimension_numbers<[1], [0], [0], [1], [0, 0, 1, 1], [], []>} : vector<8x144xf32>, vector<144x256xf32>, vector<8x256xf32> -> vector<8x256xf32>
    %c7_299 = arith.constant 7 : index
    %c0_300 = arith.constant 0 : index
    %c0_301 = arith.constant 0 : index
    %384 = vector.load %arg4[%c7_299, %c0_300, %c0_301] : memref<8x40x1xf32, #tpu.memory_space<vmem>>, vector<1x8x1xf32>
    %385 = vector.shape_cast %384 : vector<1x8x1xf32> to vector<8x1xf32>
    %386 = vector.broadcast %385 : vector<8x1xf32> to vector<8x256xf32>
    %387 = arith.addf %383, %386 : vector<8x256xf32>
    %c0_302 = arith.constant 0 : index
    %c0_303 = arith.constant 0 : index
    %388 = vector.load %arg6[%c0_302, %c0_303] : memref<40x256xf32, #tpu.memory_space<vmem>>, vector<8x256xf32>
    tpu.vector_store %arg6[%c0_302, %c0_303], %387 {strides = array<i32>} : memref<40x256xf32, #tpu.memory_space<vmem>>, vector<8x256xf32>,
    %c0_304 = arith.constant 0 : index
    %c0_305 = arith.constant 0 : index
    %389 = vector.load %arg6[%c0_304, %c0_305] : memref<40x256xf32, #tpu.memory_space<vmem>>, vector<4x256xf32>
    %c0_306 = arith.constant 0 : index
    %c0_307 = arith.constant 0 : index
    %c0_308 = arith.constant 0 : index
    %390 = vector.load %arg5[%c0_306, %c0_307, %c0_308] : memref<1x4x256xf32, #tpu.memory_space<vmem>>, vector<1x4x256xf32>
    %391 = vector.shape_cast %390 : vector<1x4x256xf32> to vector<4x256xf32>
    %392 = vector.shape_cast %389 : vector<4x256xf32> to vector<1x4x256xf32>
    tpu.vector_store %arg5[%c0_306, %c0_307, %c0_308], %392 {strides = array<i32>} : memref<1x4x256xf32, #tpu.memory_space<vmem>>, vector<1x4x256xf32>,
    return
  }
  func.func @transform_0(%arg0: i32) -> (i32, i32, i32) {
    %c0_i32 = arith.constant 0 : i32
    %c0_i32_0 = arith.constant 0 : i32
    %c0_i32_1 = arith.constant 0 : i32
    return %arg0, %c0_i32, %c0_i32_0 : i32, i32, i32
  }
  func.func @transform_1(%arg0: i32) -> (i32, i32) {
    %c0_i32 = arith.constant 0 : i32
    %c0_i32_0 = arith.constant 0 : i32
    %c0_i32_1 = arith.constant 0 : i32
    return %c0_i32, %c0_i32_0 : i32, i32
  }
  func.func @transform_2(%arg0: i32) -> (i32, i32, i32) {
    %c0_i32 = arith.constant 0 : i32
    %c0_i32_0 = arith.constant 0 : i32
    %c0_i32_1 = arith.constant 0 : i32
    %c0_i32_2 = arith.constant 0 : i32
    return %c0_i32, %c0_i32_0, %c0_i32_1 : i32, i32, i32
  }
  func.func @transform_3(%arg0: i32) -> (i32, i32, i32) {
    %c0_i32 = arith.constant 0 : i32
    %c0_i32_0 = arith.constant 0 : i32
    %c0_i32_1 = arith.constant 0 : i32
    %c0_i32_2 = arith.constant 0 : i32
    return %c0_i32, %c0_i32_0, %c0_i32_1 : i32, i32, i32
  }
  func.func @transform_4(%arg0: i32) -> (i32, i32, i32) {
    %c0_i32 = arith.constant 0 : i32
    %c0_i32_0 = arith.constant 0 : i32
    %c0_i32_1 = arith.constant 0 : i32
    return %arg0, %c0_i32, %c0_i32_0 : i32, i32, i32
  }
}

</mosaic_0001>

<bundles_post_ra>
// kernel: ftp_psp2_forward.1
= control target key start
LH: loop header
LB: loop body
LE: loop exit
PB: predicated region body
PF: predicated region fallthrough
CT: control target
= control target key end

     0   :  { %s4487_s15 = smov 0   ;;  %s7508_s0 = inlined_call_operand.vmem [shape: f32[2,4,256], index: 0, kind: input, shape index: {}]   ;;  %s7509_s1 = inlined_call_operand.vmem [shape: f32[9,256], index: 1, kind: input, shape index: {}]   ;;  %s7510_s2 = inlined_call_operand.vmem [shape: f32[8,40,360], index: 2, kind: input, shape index: {}]   ;;  %s7511_s3 = inlined_call_operand.vmem [shape: f32[8,40,1], index: 3, kind: input, shape index: {}]   ;;  %s7512_s4 = inlined_call_operand.vmem [shape: f32[2,4,256], index: 4, kind: output, shape index: {}]  }
   0x1 LB: > { %s4298_s16 = sadd.s32 4294967295, %s4450_s15   ;;  %p4302_p0 = scmp.ge.s32.totalorder %s4450_s15, 1  ;;  %s4450_s15 = sphi %s4487_s15, %s14_s15  }
   0x2   : > { %p162_p1 = scmp.lt.s32.totalorder %s4450_s15, 3 }
   0x4   : > { %p163_p2 = pnand %p4302_p0, %p162_p1 }
   0x6   : > { %166 = sbr.rel (%p163_p2) target bundleno = 3320 (0xcf8), region = 36 }
   0xb   : > { %p188_p3 = scmp.lt.s32.totalorder %s4298_s16, 1  ;;  %v7513_v1 = vmov 0.0   ;;  %s4453_s24 = smov 112   ;;  %v4460_v5 = vmov 0   ;;  %v532_v6 = vld [vmem:[%s7511_s3] sm:$0xff]  ;;  %v533_v7 = vld [vmem:[%s7511_s3 + $0x8] sm:$0xff]  ;;  %v323_v8 = vlaneseq }
   0xc   : > { %298 = vst [vmem:[#allocation2 + $0x30] sm:$0xf0] %v7513_v1  ;;  %299 = vst [vmem:[#allocation2] sm:$0xf0] %v7513_v1  ;;  %615 = vmatprep.mubr.f32.mxu0 %v7513_v1  ;;  %s4454_s25 = smov 111   ;;  %s4455_s26 = smov 113   ;;  %4442 = vset.pattern.permute.xlu1 %v4460_v5 }
   0xd   : > { %s7619_s16 = smov (!%p188_p3, %s4298_s16), 1  ;;  %s4456_s27 = smov 127   ;;  %4441 = vset.pattern.permute.xlu0 %v4460_v5  ;;  %v330_v11 = vshrl.u32 %v323_v8, 7  ;;  %v4548_v12 = vand.u32 127, %v323_v8  ;;  %vm544_vm8 = vcmask 588800   ;;  %vm870_vm9 = vcmask 130048  }
   0xe   : > { %s4420_s17 = sshll.u32 %s7619_s16, 3  ;;  %s4457_s28 = smov 1   ;;  %v4315_v13 = vld [vmem:[%s7509_s1 + $0x10] ss:$8 sm:$0x3]  ;;  %vm1321_vm10 = vcmask 719872  }
   0xf   : > { %s192_s20 = scalar_lea.vmem %s7508_s0, %s4420_s17  ;;  %s4501_s23 = scalar_lea.vmem %s7512_s4, %s4420_s17  ;;  %v4553_v15 = vsub.s32 0, %v330_v11  ;;  %v4555_v16 = vsub.s32 1, %v330_v11  ;;  %v4314_v18 = vld [vmem:[%s7509_s1 + $0x7] ss:$8 sm:$0x3]  ;;  %vm472_vm0 = vcmp.lt.s32.totalorder %v4548_v12, 112 }
  0x10   : > { %v292_v0 = vld [vmem:[%s192_s20] sm:$0xff]  ;;  %s4458_s29 = smov 15   ;;  %s4459_s30 = smov 16   ;;  %vm494_vm1 = vcmp.lt.s32.totalorder %v4548_v12, 111  ;;  %vm450_vm2 = vcmp.lt.s32.totalorder %v4548_v12, 113  ;;  %vm428_vm3 = vcmp.lt.s32.totalorder %v4548_v12, 127 }
  0x11   : > { %296 = vst [vmem:[#allocation2 + $0x30] sm:$0xf] %v292_v0  ;;  %v294_v2 = vcombine.high %v292_v0, %v292_v0  ;;  %s4461_s5 = smov 17   ;;  %v4313_v19 = vld [vmem:[%s7509_s1 + $0x6] ss:$8 sm:$0x3]  ;;  %v4566_v20 = vrot.slane %v4315_v13, %v4553_v15  ;;  %v4569_v21 = vrot.slane %v4315_v13, %v4555_v16  ;;  %v4572_v22 = vrot.slane %v4314_v18, %v4553_v15 }
  0x12   : > { %v4575_v23 = vrot.slane %v4314_v18, %v4555_v16  ;;  %v4581_v27 = vrot.slane %v4313_v19, %v4555_v16  ;;  %v4312_v30 = vld [vmem:[%s7509_s1 + $0x5] ss:$8 sm:$0x3]  ;;  %v4311_v31 = vld [vmem:[%s7509_s1 + $0x4] ss:$8 sm:$0x3]  ;;  %v4599_v35 = vrot.slane %v4313_v19, %v4553_v15 }
  0x13   : > { %297 = vst [vmem:[#allocation2] sm:$0xf] %v294_v2  ;;  %v4607_v40 = vrot.slane %v4312_v30, %v4555_v16  ;;  %v4610_v42 = vrot.slane %v4311_v31, %v4555_v16  ;;  %v4614_v44 = vrot.slane %v4312_v30, %v4553_v15  ;;  %v4310_v46 = vld [vmem:[%s7509_s1 + $0x3] ss:$8 sm:$0x3]  ;;  %v4622_v47 = vrot.slane %v4311_v31, %v4553_v15 }
  0x14   : > { %vm391_vm4 = vcmp.lt.s32.totalorder %v4548_v12, 1  ;;  %v4309_v51 = vld [vmem:[%s7509_s1 + $0x2] ss:$8 sm:$0x3]  ;;  %v4634_v54 = vrot.slane %v4310_v46, %v4555_v16  ;;  %v4640_v58 = vrot.slane %v4310_v46, %v4553_v15  ;;  %vm369_vm5 = vcmp.lt.s32.totalorder %v4548_v12, 15 }
  0x15   : > { %7547 = vst [vmem:[#allocation4_spill] sm:$0xff] %v4610_v42  ;;  %7548 = vst [vmem:[#allocation5_spill] sm:$0xff] %v4622_v47  ;;  %v4650_v62 = vrot.slane %v4309_v51, %v4553_v15  ;;  %v4653_v63 = vrot.slane %v4309_v51, %v4555_v16  ;;  %v4308_v0 = vld [vmem:[%s7509_s1 + $0x1] ss:$8 sm:$0x3]  ;;  %vm347_vm6 = vcmp.lt.s32.totalorder %v4548_v12, 16 }
  0x16   : > { %7549 = vst [vmem:[#allocation6_spill] sm:$0xff] %v4634_v54  ;;  %7550 = vst [vmem:[#allocation7_spill] sm:$0xff] %v4640_v58  ;;  %v4671_v11 = vrot.slane %v4308_v0, %v4555_v16  ;;  %v300_v13 = vld [vmem:[%s7509_s1] ss:$8 sm:$0x3]  ;;  %vm325_vm7 = vcmp.lt.s32.totalorder %v4548_v12, 17 }
  0x17   : > { %vm1902_vm11 = vcmask 261120   ;;  %vm2686_vm12 = vcmask 850944  }
  0x18   : > { %v4506_v3 = vld [vmem:[#allocation2 + $0x30] sm:$0xff] }
  0x19   : > { %468 = vrot.lane.b32.xlu1 %v4506_v3, %s4453_s24  ;;  %490 = vrot.lane.b32.xlu0 %v4506_v3, %s4454_s25  ;;  %v420_v60 = vmul.f32 %v4622_v47, %v4506_v3 }
  0x1a   : > { %v4512_v4 = vld [vmem:[#allocation2] sm:$0xff] }
  0x1b   : > { %v421_v56 = vmul.f32 %v4610_v42, %v4512_v4 }
  0x1d   : > { %446 = vrot.lane.b32.xlu0 %v4506_v3, %s4455_s26  ;;  %470 = vrot.lane.b32.xlu1 %v4512_v4, %s4453_s24 }
  0x21   : > { %448 = vrot.lane.b32.xlu1 %v4512_v4, %s4455_s26  ;;  %492 = vrot.lane.b32.xlu0 %v4512_v4, %s4454_s25 }
  0x25   : > { %426 = vrot.lane.b32.xlu1 %v4512_v4, %s4456_s27  ;;  %424 = vrot.lane.b32.xlu0 %v4506_v3, %s4456_s27 }
  0x29   : > { %389 = vrot.lane.b32.xlu1 %v4512_v4, %s4457_s28  ;;  %387 = vrot.lane.b32.xlu0 %v4506_v3, %s4457_s28 }
  0x2d   : > { %367 = vrot.lane.b32.xlu1 %v4512_v4, %s4458_s29  ;;  %365 = vrot.lane.b32.xlu0 %v4506_v3, %s4458_s29 }
  0x31   : > { %345 = vrot.lane.b32.xlu1 %v4512_v4, %s4459_s30  ;;  %343 = vrot.lane.b32.xlu0 %v4506_v3, %s4459_s30 }
  0x35   : > { %321 = vrot.lane.b32.xlu1 %v4512_v4, %s4461_s5  ;;  %319 = vrot.lane.b32.xlu0 %v4506_v3, %s4461_s5 }
  0x39   : > { %536 = vperm.xlu1 %4442, %v532_v6   ;;  %541 = vperm.xlu0 %4441, %v533_v7  }
  0x8b   : > { %v469_v9 = vpop.permute.xlu1 %468  ;;  %v491_v10 = vpop.permute.xlu0 %490 }
  0x8f   : > { %v447_v14 = vpop.permute.xlu0 %446  ;;  %v471_v17 = vpop.permute.xlu1 %470 }
  0x90   : > { %v474_v26 = vsel %vm472_vm0, %v471_v17, %v469_v9  ;;  %v473_v32 = vsel %vm472_vm0, %v469_v9, %v471_v17 }
  0x91   : > { %v487_v37 = vmul.f32 %v4575_v23, %v474_v26  ;;  %v486_v43 = vmul.f32 %v4572_v22, %v473_v32  ;;  %v4684_v26 = vrot.slane %v300_v13, %v4553_v15 }
  0x93   : > { %v449_v24 = vpop.permute.xlu1 %448  ;;  %v493_v25 = vpop.permute.xlu0 %492 }
  0x94   : > { %v495_v28 = vsel %vm494_vm1, %v491_v10, %v493_v25  ;;  %v496_v29 = vsel %vm494_vm1, %v493_v25, %v491_v10  ;;  %v452_v36 = vsel %vm450_vm2, %v449_v24, %v447_v14  ;;  %v451_v38 = vsel %vm450_vm2, %v447_v14, %v449_v24 }
  0x95   : > { %v508_v33 = vmul.f32 %v4566_v20, %v495_v28  ;;  %v509_v34 = vmul.f32 %v4569_v21, %v496_v29  ;;  %v465_v48 = vmul.f32 %v4581_v27, %v452_v36  ;;  %v464_v50 = vmul.f32 %v4599_v35, %v451_v38 }
  0x96   : > { %v4668_v10 = vrot.slane %v4308_v0, %v4553_v15  ;;  %v4687_v28 = vrot.slane %v300_v13, %v4555_v16  ;;  %v512_v15 = vld [vmem:[%s7510_s2] sm:$0xff]  ;;  %v513_v16 = vld [vmem:[%s7510_s2 + $0x18] sm:$0xff] }
  0x97   : > { %v427_v39 = vpop.permute.xlu1 %426  ;;  %v425_v41 = vpop.permute.xlu0 %424  ;;  %565 = vmatprep.subr.mxu0 %v509_v34 }
  0x98   : > { %v430_v45 = vsel %vm428_vm3, %v427_v39, %v425_v41  ;;  %566 = vmatpush1.msra.mxu0 %v508_v33  ;;  %v429_v49 = vsel %vm428_vm3, %v425_v41, %v427_v39 }
  0x99   : > { %567 = vmatprep.subr.mxu0 %v487_v37  ;;  %v443_v52 = vmul.f32 %v4607_v40, %v430_v45  ;;  %v442_v57 = vmul.f32 %v4614_v44, %v429_v49 }
  0x9a   : > { %568 = vmatpush1.msra.mxu0 %v486_v43 }
  0x9b   : > { %v390_v53 = vpop.permute.xlu1 %389  ;;  %v388_v55 = vpop.permute.xlu0 %387  ;;  %569 = vmatprep.subr.mxu0 %v465_v48 }
  0x9c   : > { %v392_v59 = vsel %vm391_vm4, %v388_v55, %v390_v53  ;;  %570 = vmatpush1.msra.mxu0 %v464_v50  ;;  %v393_v61 = vsel %vm391_vm4, %v390_v53, %v388_v55  ;;  %v4319_v55 = vld [vmem:[%s7510_s2 + $0x80] sm:$0xff] }
  0x9d   : > { %571 = vmatprep.subr.mxu0 %v443_v52  ;;  %v406_v2 = vmul.f32 %v4634_v54, %v392_v59  ;;  %v405_v5 = vmul.f32 %v4640_v58, %v393_v61  ;;  %4327 = vmatprep.mubr.msk.f32.mxu1 %vm870_vm9, %v4319_v55  ;;  %v4325_v59 = vld [vmem:[%s7511_s3 + $0x30] sm:$0xff] }
  0x9e   : > { %572 = vmatpush1.msra.mxu0 %v442_v57  ;;  %v4326_v57 = vld [vmem:[%s7511_s3 + $0x38] sm:$0xff] }
  0x9f   : > { %v368_v3 = vpop.permute.xlu1 %367  ;;  %v366_v4 = vpop.permute.xlu0 %365  ;;  %573 = vmatprep.subr.mxu0 %v421_v56  ;;  %v4324_v56 = vld [vmem:[%s7511_s3 + $0x28] sm:$0xff] }
  0xa0   : > { %v370_v6 = vsel %vm369_vm5, %v366_v4, %v368_v3  ;;  %v371_v7 = vsel %vm369_vm5, %v368_v3, %v366_v4  ;;  %574 = vmatpush1.msra.mxu0 %v420_v60 }
  0xa1   : > { %v383_v8 = vmul.f32 %v4650_v62, %v371_v7  ;;  %v384_v9 = vmul.f32 %v4653_v63, %v370_v6  ;;  %575 = vmatprep.subr.mxu0 %v406_v2 }
  0xa2   : > { %576 = vmatpush1.msra.mxu0 %v405_v5 }
  0xa3   : > { %v346_v14 = vpop.permute.xlu1 %345  ;;  %v344_v17 = vpop.permute.xlu0 %343  ;;  %577 = vmatprep.subr.mxu0 %v384_v9 }
  0xa4   : > { %v348_v18 = vsel %vm347_vm6, %v344_v17, %v346_v14  ;;  %v349_v19 = vsel %vm347_vm6, %v346_v14, %v344_v17  ;;  %578 = vmatpush1.msra.mxu0 %v383_v8 }
  0xa5   : > { %v361_v24 = vmul.f32 %v4668_v10, %v349_v19  ;;  %v362_v25 = vmul.f32 %v4671_v11, %v348_v18 }
  0xa7   : > { %v322_v29 = vpop.permute.xlu1 %321  ;;  %v320_v30 = vpop.permute.xlu0 %319  ;;  %579 = vmatprep.subr.mxu0 %v362_v25 }
  0xa8   : > { %v326_v31 = vsel %vm325_vm7, %v320_v30, %v322_v29  ;;  %v327_v32 = vsel %vm325_vm7, %v322_v29, %v320_v30  ;;  %580 = vmatpush1.msra.mxu0 %v361_v24 }
  0xa9   : > { %v339_v33 = vmul.f32 %v4684_v26, %v327_v32  ;;  %v340_v34 = vmul.f32 %v4687_v28, %v326_v31 }
  0xab   : > { %581 = vmatprep.subr.mxu0 %v340_v34 }
  0xac   : > { %582 = vmatpush1.msra.mxu0 %v339_v33 }
  0xad   : > { %4316 = vmatmul.mubr.msk.f32.vlgmr.msra.gmra.mxu0 %vm544_vm8, %v512_v15 }
  0xae   : > { %621 = vmatprep.mubr.f32.mxu0 %v7513_v1 }
  0xb1   : > { %4317 = vmatmul.mubr.msk.f32.gmra.mxu0 %vm544_vm8, %v513_v16 }
  0xb4   : > { %v537_v36 = vpop.permute.xlu1 %536  ;;  %v542_v48 = vpop.permute.xlu0 %541 }
 0x16d   : > { %v617_v37 = vpop.f32.mrf.mxu0 }
 0x16e   : > { %v618_v38 = vadd.f32 %v617_v37, %v537_v36 }
 0x16f   : > { %v619_v39 = vpop.f32.mrf.mxu0 }
 0x170   : > { %v4702_v41 = vmax.f32 %v618_v38, 0.0  ;;  %v620_v43 = vadd.f32 %v619_v39, %v537_v36 }
 0x171   : > { %v623_v46 = vpop.f32.mrf.mxu0 }
 0x172   : > { %v4704_v45 = vmax.f32 %v620_v43, 0.0  ;;  %768 = vrot.lane.b32.xlu1 %v4702_v41, %s4453_s24  ;;  %v624_v49 = vadd.f32 %v623_v46, %v542_v48 }
 0x173   : > { %v625_v50 = vpop.f32.mrf.mxu0 }
 0x174   : > { %772 = vrot.lane.b32.xlu0 %v4704_v45, %s4453_s24  ;;  %v4726_v51 = vmax.f32 %v624_v49, 0.0  ;;  %v626_v52 = vadd.f32 %v625_v50, %v542_v48 }
 0x176   : > { %748 = vrot.lane.b32.xlu1 %v4702_v41, %s4455_s26  ;;  %v4732_v53 = vmax.f32 %v626_v52, 0.0 }
 0x178   : > { %752 = vrot.lane.b32.xlu0 %v4704_v45, %s4455_s26 }
 0x17a   : > { %728 = vrot.lane.b32.xlu1 %v4702_v41, %s4456_s27 }
 0x17c   : > { %732 = vrot.lane.b32.xlu0 %v4704_v45, %s4456_s27 }
 0x17e   : > { %700 = vrot.lane.b32.xlu1 %v4702_v41, %s4457_s28 }
 0x180   : > { %704 = vrot.lane.b32.xlu0 %v4704_v45, %s4457_s28 }
 0x182   : > { %680 = vrot.lane.b32.xlu1 %v4702_v41, %s4458_s29 }
 0x184   : > { %684 = vrot.lane.b32.xlu0 %v4704_v45, %s4458_s29 }
 0x186   : > { %660 = vrot.lane.b32.xlu1 %v4702_v41, %s4459_s30 }
 0x188   : > { %664 = vrot.lane.b32.xlu0 %v4704_v45, %s4459_s30 }
 0x18a   : > { %770 = vrot.lane.b32.xlu1 %v4726_v51, %s4453_s24 }
 0x18c   : > { %774 = vrot.lane.b32.xlu0 %v4732_v53, %s4453_s24 }
 0x18e   : > { %750 = vrot.lane.b32.xlu1 %v4726_v51, %s4455_s26 }
 0x190   : > { %754 = vrot.lane.b32.xlu0 %v4732_v53, %s4455_s26 }
 0x192   : > { %730 = vrot.lane.b32.xlu1 %v4726_v51, %s4456_s27 }
 0x194   : > { %734 = vrot.lane.b32.xlu0 %v4732_v53, %s4456_s27 }
 0x196   : > { %640 = vrot.lane.b32.xlu1 %v4702_v41, %s4461_s5 }
 0x198   : > { %644 = vrot.lane.b32.xlu0 %v4704_v45, %s4461_s5 }
 0x19a   : > { %702 = vrot.lane.b32.xlu1 %v4726_v51, %s4457_s28 }
 0x19c   : > { %706 = vrot.lane.b32.xlu0 %v4732_v53, %s4457_s28 }
 0x19e   : > { %682 = vrot.lane.b32.xlu1 %v4726_v51, %s4458_s29 }
 0x1a0   : > { %686 = vrot.lane.b32.xlu0 %v4732_v53, %s4458_s29 }
 0x1a2   : > { %662 = vrot.lane.b32.xlu1 %v4726_v51, %s4459_s30 }
 0x1a4   : > { %666 = vrot.lane.b32.xlu0 %v4732_v53, %s4459_s30 }
 0x1a6   : > { %642 = vrot.lane.b32.xlu1 %v4726_v51, %s4461_s5 }
 0x1a8   : > { %646 = vrot.lane.b32.xlu0 %v4732_v53, %s4461_s5 }
 0x1aa   : > { %790 = vrot.lane.b32.xlu1 %v4726_v51, %s4454_s25 }
 0x1ac   : > { %794 = vrot.lane.b32.xlu0 %v4732_v53, %s4454_s25 }
 0x1ae   : > { %788 = vrot.lane.b32.xlu1 %v4702_v41, %s4454_s25 }
 0x1b0   : > { %792 = vrot.lane.b32.xlu0 %v4704_v45, %s4454_s25 }
 0x1b2   : > { %857 = vperm.xlu1 %4442, %v4324_v56  }
 0x1b4   : > { %867 = vperm.xlu0 %4441, %v4326_v57  }
 0x1b6   : > { %862 = vperm.xlu1 %4442, %v4325_v59  }
 0x1e4   : > { %v769_v60 = vpop.permute.xlu1 %768 }
 0x1e6   : > { %v773_v61 = vpop.permute.xlu0 %772 }
 0x1e7   : > { %v778_v18 = vsel %vm472_vm0, %v773_v61, %v769_v60  ;;  %v776_v25 = vsel %vm472_vm0, %v769_v60, %v773_v61 }
 0x1e8   : > { %v749_v0 = vpop.permute.xlu1 %748  ;;  %v781_v32 = vmul.f32 %v778_v18, %v4575_v23  ;;  %v780_v34 = vmul.f32 %v776_v25, %v4572_v22  ;;  %v721_v18 = vmul.f32 %v4704_v45, %v4610_v42 }
 0x1ea   : > { %v753_v2 = vpop.permute.xlu0 %752 }
 0x1eb   : > { %v758_v15 = vsel %vm450_vm2, %v753_v2, %v749_v0  ;;  %v756_v37 = vsel %vm450_vm2, %v749_v0, %v753_v2 }
 0x1ec   : > { %v729_v3 = vpop.permute.xlu1 %728  ;;  %v761_v46 = vmul.f32 %v758_v15, %v4581_v27  ;;  %v760_v49 = vmul.f32 %v756_v37, %v4599_v35 }
 0x1ee   : > { %v733_v4 = vpop.permute.xlu0 %732 }
 0x1ef   : > { %v738_v50 = vsel %vm428_vm3, %v733_v4, %v729_v3  ;;  %v736_v56 = vsel %vm428_vm3, %v729_v3, %v733_v4  ;;  %v723_v3 = vmul.f32 %v4732_v53, %v4610_v42  ;;  %v722_v4 = vmul.f32 %v4726_v51, %v4622_v47 }
 0x1f0   : > { %v701_v5 = vpop.permute.xlu1 %700  ;;  %v741_v61 = vmul.f32 %v738_v50, %v4607_v40  ;;  %v740_v2 = vmul.f32 %v736_v56, %v4614_v44  ;;  %v720_v53 = vmul.f32 %v4702_v41, %v4622_v47 }
 0x1f2   : > { %v705_v6 = vpop.permute.xlu0 %704 }
 0x1f3   : > { %v710_v51 = vsel %vm391_vm4, %v705_v6, %v701_v5 }
 0x1f4   : > { %v4787_v7 = vpop.permute.xlu1 %680 }
 0x1f6   : > { %v4789_v8 = vpop.permute.xlu0 %684 }
 0x1f7   : > { %v688_v41 = vsel %vm369_vm5, %v4787_v7, %v4789_v8 }
 0x1f8   : > { %v4791_v9 = vpop.permute.xlu1 %660  ;;  %v693_v37 = vmul.f32 %v688_v41, %v4653_v63  ;;  %v4322_v41 = vld [vmem:[%s7510_s2 + $0xa8] sm:$0xff] }
 0x1fa   : > { %v4793_v13 = vpop.permute.xlu0 %664 }
 0x1fc   : > { %v771_v14 = vpop.permute.xlu1 %770 }
 0x1fe   : > { %v775_v17 = vpop.permute.xlu0 %774 }
 0x1ff   : > { %v777_v19 = vsel %vm472_vm0, %v771_v14, %v775_v17  ;;  %v779_v24 = vsel %vm472_vm0, %v775_v17, %v771_v14 }
 0x200   : > { %v782_v29 = vmul.f32 %v777_v19, %v4572_v22  ;;  %v783_v30 = vmul.f32 %v779_v24, %v4575_v23  ;;  %v751_v31 = vpop.permute.xlu1 %750  ;;  %v708_v19 = vsel %vm391_vm4, %v701_v5, %v705_v6 }
 0x202   : > { %v755_v33 = vpop.permute.xlu0 %754  ;;  %880 = vmatprep.subr.mxu1 %v783_v30 }
 0x203   : > { %v757_v16 = vsel %vm450_vm2, %v751_v31, %v755_v33  ;;  %v759_v36 = vsel %vm450_vm2, %v755_v33, %v751_v31  ;;  %881 = vmatpush1.msra.mxu1 %v782_v29  ;;  %v713_v31 = vmul.f32 %v708_v19, %v4634_v54  ;;  %v712_v33 = vmul.f32 %v710_v51, %v4640_v58 }
 0x204   : > { %v762_v38 = vmul.f32 %v757_v16, %v4599_v35  ;;  %v763_v39 = vmul.f32 %v759_v36, %v4581_v27  ;;  %v731_v43 = vpop.permute.xlu1 %730  ;;  %882 = vmatprep.subr.mxu1 %v781_v32 }
 0x205   : > { %883 = vmatpush1.msra.mxu1 %v780_v34  ;;  %v690_v34 = vsel %vm369_vm5, %v4789_v8, %v4787_v7 }
 0x206   : > { %v735_v48 = vpop.permute.xlu0 %734  ;;  %884 = vmatprep.subr.mxu1 %v763_v39  ;;  %v692_v39 = vmul.f32 %v690_v34, %v4650_v62 }
 0x207   : > { %v737_v52 = vsel %vm428_vm3, %v731_v43, %v735_v48  ;;  %v739_v55 = vsel %vm428_vm3, %v735_v48, %v731_v43  ;;  %885 = vmatpush1.msra.mxu1 %v762_v38  ;;  %v668_v43 = vsel %vm347_vm6, %v4791_v9, %v4793_v13 }
 0x208   : > { %v742_v57 = vmul.f32 %v737_v52, %v4614_v44  ;;  %v743_v59 = vmul.f32 %v739_v55, %v4607_v40  ;;  %v4829_v60 = vpop.permute.xlu1 %640  ;;  %886 = vmatprep.subr.mxu1 %v761_v46  ;;  %v670_v46 = vsel %vm347_vm6, %v4793_v13, %v4791_v9  ;;  %v673_v52 = vmul.f32 %v668_v43, %v4671_v11 }
 0x209   : > { %887 = vmatpush1.msra.mxu1 %v760_v49  ;;  %v672_v56 = vmul.f32 %v670_v46, %v4668_v10 }
 0x20a   : > { %v645_v0 = vpop.permute.xlu0 %644  ;;  %888 = vmatprep.subr.mxu1 %v743_v59 }
 0x20b   : > { %889 = vmatpush1.msra.mxu1 %v742_v57  ;;  %v648_v57 = vsel %vm325_vm7, %v4829_v60, %v645_v0  ;;  %v650_v59 = vsel %vm325_vm7, %v645_v0, %v4829_v60 }
 0x20c   : > { %v703_v14 = vpop.permute.xlu1 %702  ;;  %890 = vmatprep.subr.mxu1 %v741_v61 }
 0x20d   : > { %891 = vmatpush1.msra.mxu1 %v740_v2 }
 0x20e   : > { %v707_v17 = vpop.permute.xlu0 %706  ;;  %892 = vmatprep.subr.mxu1 %v723_v3  ;;  %v653_v3 = vmul.f32 %v648_v57, %v4687_v28 }
 0x20f   : > { %v709_v24 = vsel %vm391_vm4, %v703_v14, %v707_v17  ;;  %v711_v25 = vsel %vm391_vm4, %v707_v17, %v703_v14  ;;  %893 = vmatpush1.msra.mxu1 %v722_v4  ;;  %v652_v17 = vmul.f32 %v650_v59, %v4684_v26  ;;  %v4341_v59 = vld [vmem:[%s7511_s3 + $0x68] sm:$0xff] }
 0x210   : > { %v714_v29 = vmul.f32 %v711_v25, %v4640_v58  ;;  %v715_v45 = vmul.f32 %v709_v24, %v4634_v54  ;;  %v683_v30 = vpop.permute.xlu1 %682  ;;  %894 = vmatprep.subr.mxu1 %v721_v18 }
 0x211   : > { %895 = vmatpush1.msra.mxu1 %v720_v53 }
 0x212   : > { %v687_v32 = vpop.permute.xlu0 %686  ;;  %896 = vmatprep.subr.mxu1 %v715_v45 }
 0x213   : > { %v689_v5 = vsel %vm369_vm5, %v683_v30, %v687_v32  ;;  %v691_v6 = vsel %vm369_vm5, %v687_v32, %v683_v30  ;;  %897 = vmatpush1.msra.mxu1 %v714_v29  ;;  %v4318_v30 = vld [vmem:[%s7510_s2 + $0x78] sm:$0xff]  ;;  %v4320_v32 = vld [vmem:[%s7510_s2 + $0x90] sm:$0xff] }
 0x214   : > { %v694_v15 = vmul.f32 %v691_v6, %v4650_v62  ;;  %v695_v16 = vmul.f32 %v689_v5, %v4653_v63  ;;  %v663_v36 = vpop.permute.xlu1 %662  ;;  %898 = vmatprep.subr.mxu1 %v713_v31  ;;  %v4321_v31 = vld [vmem:[%s7510_s2 + $0x98] sm:$0xff] }
 0x215   : > { %899 = vmatpush1.msra.mxu1 %v712_v33  ;;  %v4323_v33 = vld [vmem:[%s7510_s2 + $0xb0] sm:$0xff] }
 0x216   : > { %v667_v38 = vpop.permute.xlu0 %666  ;;  %900 = vmatprep.subr.mxu1 %v695_v16 }
 0x217   : > { %v669_v7 = vsel %vm347_vm6, %v663_v36, %v667_v38  ;;  %v671_v8 = vsel %vm347_vm6, %v667_v38, %v663_v36  ;;  %901 = vmatpush1.msra.mxu1 %v694_v15 }
 0x218   : > { %v674_v48 = vmul.f32 %v671_v8, %v4668_v10  ;;  %v675_v49 = vmul.f32 %v669_v7, %v4671_v11  ;;  %v643_v50 = vpop.permute.xlu1 %642  ;;  %902 = vmatprep.subr.mxu1 %v693_v37 }
 0x219   : > { %903 = vmatpush1.msra.mxu1 %v692_v39 }
 0x21a   : > { %v647_v55 = vpop.permute.xlu0 %646  ;;  %904 = vmatprep.subr.mxu1 %v675_v49 }
 0x21b   : > { %v649_v9 = vsel %vm325_vm7, %v643_v50, %v647_v55  ;;  %v651_v13 = vsel %vm325_vm7, %v647_v55, %v643_v50  ;;  %905 = vmatpush1.msra.mxu1 %v674_v48 }
 0x21c   : > { %v654_v61 = vmul.f32 %v651_v13, %v4684_v26  ;;  %v655_v2 = vmul.f32 %v649_v9, %v4687_v28  ;;  %v791_v14 = vpop.permute.xlu1 %790  ;;  %906 = vmatprep.subr.mxu1 %v673_v52  ;;  %v4331_v13 = vld [vmem:[%s7510_s2 + $0xf8] sm:$0xff] }
 0x21d   : > { %907 = vmatpush1.msra.mxu1 %v672_v56  ;;  %4342 = vmatprep.mubr.msk.f32.mxu0 %vm1321_vm10, %v4331_v13 }
 0x21e   : > { %v795_v4 = vpop.permute.xlu0 %794  ;;  %908 = vmatprep.subr.mxu1 %v655_v2  ;;  %v4339_v2 = vld [vmem:[%s7511_s3 + $0x58] sm:$0xff] }
 0x21f   : > { %v797_v18 = vsel %vm494_vm1, %v791_v14, %v795_v4  ;;  %v799_v19 = vsel %vm494_vm1, %v795_v4, %v791_v14  ;;  %909 = vmatpush1.msra.mxu1 %v654_v61  ;;  %v4340_v61 = vld [vmem:[%s7511_s3 + $0x60] sm:$0xff]  ;;  %v4338_v14 = vld [vmem:[%s7511_s3 + $0x50] sm:$0xff] }
 0x220   : > { %v802_v60 = vmul.f32 %v797_v18, %v4566_v20  ;;  %v803_v0 = vmul.f32 %v799_v19, %v4569_v21  ;;  %910 = vmatprep.subr.mxu1 %v653_v3  ;;  %v789_v24 = vpop.permute.xlu1 %788 }
 0x221   : > { %911 = vmatpush1.msra.mxu1 %v652_v17 }
 0x222   : > { %v793_v25 = vpop.permute.xlu0 %792  ;;  %940 = vmatprep.subr.mxu1 %v803_v0 }
 0x223   : > { %v796_v53 = vsel %vm494_vm1, %v789_v24, %v793_v25  ;;  %v798_v51 = vsel %vm494_vm1, %v793_v25, %v789_v24  ;;  %941 = vmatpush2.msra.mxu1 %v802_v60 }
 0x224   : > { %v800_v29 = vmul.f32 %v796_v53, %v4566_v20  ;;  %v801_v45 = vmul.f32 %v798_v51, %v4569_v21 }
 0x226   : > { %942 = vmatprep.subr.mxu1 %v801_v45 }
 0x227   : > { %943 = vmatpush2.msra.mxu1 %v800_v29 }
 0x228   : > { %945 = vmatmul.mubr.f32.vlgmr.msra.gmra.mxu1 %v4318_v30 }
 0x229   : > { %4328 = vmatprep.mubr.msk.f32.mxu1 %vm870_vm9, %v4321_v31 }
 0x22c   : > { %951 = vmatmul.mubr.f32.gmra.mxu1 %v4320_v32 }
 0x22d   : > { %4329 = vmatprep.mubr.msk.f32.mxu1 %vm870_vm9, %v4323_v33  ;;  %v858_v5 = vpop.permute.xlu1 %857 }
 0x22f   : > { %v868_v50 = vpop.permute.xlu0 %867 }
 0x230   : > { %957 = vmatmul.mubr.f32.gmra.mxu1 %v4322_v41 }
 0x231   : > { %v863_v39 = vpop.permute.xlu1 %862 }
 0x2e8   : > { %v946_v6 = vpop.f32.mrf.mxu1 }
 0x2e9   : > { %v947_v34 = vadd.f32 %v946_v6, %v858_v5 }
 0x2ea   : > { %v948_v15 = vpop.f32.mrf.mxu1 }
 0x2eb   : > { %v4928_v16 = vmax.f32 %v947_v34, 0.0  ;;  %v949_v36 = vadd.f32 %v948_v15, %v858_v5 }
 0x2ec   : > { %v952_v38 = vpop.f32.mrf.mxu1 }
 0x2ed   : > { %v4930_v37 = vmax.f32 %v949_v36, 0.0  ;;  %1113 = vrot.lane.b32.xlu0 %v4928_v16, %s4456_s27  ;;  %v953_v7 = vadd.f32 %v952_v38, %v863_v39  ;;  %v1101_v32 = vmul.f32 %v4928_v16, %v4622_v47 }
 0x2ee   : > { %v954_v43 = vpop.f32.mrf.mxu1 }
 0x2ef   : > { %1119 = vrot.lane.b32.xlu1 %v4930_v37, %s4456_s27  ;;  %v955_v8 = vadd.f32 %v954_v43, %v863_v39  ;;  %v4954_v46 = vmax.f32 %v953_v7, 0.0  ;;  %v1102_v31 = vmul.f32 %v4930_v37, %v4610_v42 }
 0x2f0   : > { %v958_v49 = vpop.f32.mrf.mxu1 }
 0x2f1   : > { %1071 = vrot.lane.b32.xlu0 %v4928_v16, %s4457_s28  ;;  %v4958_v48 = vmax.f32 %v955_v8, 0.0  ;;  %v959_v55 = vadd.f32 %v958_v49, %v868_v50  ;;  %v1103_v45 = vmul.f32 %v4954_v46, %v4622_v47 }
 0x2f2   : > { %v960_v52 = vpop.f32.mrf.mxu1 }
 0x2f3   : > { %1077 = vrot.lane.b32.xlu1 %v4930_v37, %s4457_s28  ;;  %v961_v56 = vadd.f32 %v960_v52, %v868_v50  ;;  %v967_v57 = vmax.f32 %v959_v55, 0.0  ;;  %v1104_v29 = vmul.f32 %v4958_v48, %v4610_v42 }
 0x2f5   : > { %1041 = vrot.lane.b32.xlu0 %v4928_v16, %s4458_s29  ;;  %v968_v9 = vmax.f32 %v961_v56, 0.0  ;;  %v1105_v53 = vmul.f32 %v967_v57, %v4622_v47 }
 0x2f7   : > { %1047 = vrot.lane.b32.xlu1 %v4930_v37, %s4458_s29  ;;  %v1106_v25 = vmul.f32 %v968_v9, %v4610_v42 }
 0x2f9   : > { %1011 = vrot.lane.b32.xlu0 %v4928_v16, %s4459_s30 }
 0x2fb   : > { %1017 = vrot.lane.b32.xlu1 %v4930_v37, %s4459_s30 }
 0x2fd   : > { %981 = vrot.lane.b32.xlu0 %v4928_v16, %s4461_s5 }
 0x2ff   : > { %987 = vrot.lane.b32.xlu1 %v4930_v37, %s4461_s5 }
 0x301   : > { %1203 = vrot.lane.b32.xlu0 %v4928_v16, %s4454_s25 }
 0x303   : > { %1209 = vrot.lane.b32.xlu1 %v4930_v37, %s4454_s25 }
 0x305   : > { %1073 = vrot.lane.b32.xlu0 %v4954_v46, %s4457_s28 }
 0x307   : > { %1079 = vrot.lane.b32.xlu1 %v4958_v48, %s4457_s28 }
 0x309   : > { %1043 = vrot.lane.b32.xlu0 %v4954_v46, %s4458_s29 }
 0x30b   : > { %1049 = vrot.lane.b32.xlu1 %v4958_v48, %s4458_s29 }
 0x30d   : > { %1013 = vrot.lane.b32.xlu0 %v4954_v46, %s4459_s30 }
 0x30f   : > { %1019 = vrot.lane.b32.xlu1 %v4958_v48, %s4459_s30 }
 0x311   : > { %983 = vrot.lane.b32.xlu0 %v4954_v46, %s4461_s5 }
 0x313   : > { %989 = vrot.lane.b32.xlu1 %v4958_v48, %s4461_s5 }
 0x315   : > { %1205 = vrot.lane.b32.xlu0 %v4954_v46, %s4454_s25 }
 0x317   : > { %1211 = vrot.lane.b32.xlu1 %v4958_v48, %s4454_s25 }
 0x319   : > { %1175 = vrot.lane.b32.xlu0 %v4954_v46, %s4453_s24 }
 0x31b   : > { %1181 = vrot.lane.b32.xlu1 %v4958_v48, %s4453_s24 }
 0x31d   : > { %1075 = vrot.lane.b32.xlu0 %v967_v57, %s4457_s28 }
 0x31f   : > { %1081 = vrot.lane.b32.xlu1 %v968_v9, %s4457_s28 }
 0x321   : > { %1045 = vrot.lane.b32.xlu0 %v967_v57, %s4458_s29 }
 0x323   : > { %1051 = vrot.lane.b32.xlu1 %v968_v9, %s4458_s29 }
 0x325   : > { %1173 = vrot.lane.b32.xlu0 %v4928_v16, %s4453_s24 }
 0x327   : > { %1179 = vrot.lane.b32.xlu1 %v4930_v37, %s4453_s24 }
 0x329   : > { %1015 = vrot.lane.b32.xlu0 %v967_v57, %s4459_s30 }
 0x32b   : > { %1021 = vrot.lane.b32.xlu1 %v968_v9, %s4459_s30 }
 0x32d   : > { %985 = vrot.lane.b32.xlu0 %v967_v57, %s4461_s5 }
 0x32f   : > { %991 = vrot.lane.b32.xlu1 %v968_v9, %s4461_s5 }
 0x331   : > { %1207 = vrot.lane.b32.xlu0 %v967_v57, %s4454_s25 }
 0x333   : > { %1151 = vrot.lane.b32.xlu1 %v4958_v48, %s4455_s26 }
 0x335   : > { %1177 = vrot.lane.b32.xlu0 %v967_v57, %s4453_s24 }
 0x337   : > { %1213 = vrot.lane.b32.xlu1 %v968_v9, %s4454_s25 }
 0x339   : > { %1147 = vrot.lane.b32.xlu0 %v967_v57, %s4455_s26 }
 0x33b   : > { %1183 = vrot.lane.b32.xlu1 %v968_v9, %s4453_s24 }
 0x33d   : > { %1145 = vrot.lane.b32.xlu0 %v4954_v46, %s4455_s26 }
 0x33f   : > { %1149 = vrot.lane.b32.xlu1 %v4930_v37, %s4455_s26 }
 0x341   : > { %1143 = vrot.lane.b32.xlu0 %v4928_v16, %s4455_s26 }
 0x343   : > { %1153 = vrot.lane.b32.xlu1 %v968_v9, %s4455_s26 }
 0x345   : > { %1117 = vrot.lane.b32.xlu0 %v967_v57, %s4456_s27 }
 0x347   : > { %1123 = vrot.lane.b32.xlu1 %v968_v9, %s4456_s27 }
 0x349   : > { %1115 = vrot.lane.b32.xlu0 %v4954_v46, %s4456_s27 }
 0x34b   : > { %1121 = vrot.lane.b32.xlu1 %v4958_v48, %s4456_s27 }
 0x34d   : > { %1318 = vperm.xlu0 %4441, %v4341_v59  }
 0x34f   : > { %1313 = vperm.xlu1 %4442, %v4340_v61  }
 0x351   : > { %1308 = vperm.xlu0 %4441, %v4339_v2  }
 0x353   : > { %1303 = vperm.xlu1 %4442, %v4338_v14  }
 0x35f   : > { %v1114_v3 = vpop.permute.xlu0 %1113 }
 0x361   : > { %v1120_v4 = vpop.permute.xlu1 %1119 }
 0x362   : > { %v1125_v17 = vsel %vm428_vm3, %v1114_v3, %v1120_v4  ;;  %v1128_v18 = vsel %vm428_vm3, %v1120_v4, %v1114_v3 }
 0x363   : > { %v1131_v19 = vmul.f32 %v1125_v17, %v4614_v44  ;;  %v1132_v60 = vmul.f32 %v1128_v18, %v4607_v40  ;;  %v1072_v0 = vpop.permute.xlu0 %1071 }
 0x365   : > { %v1078_v24 = vpop.permute.xlu1 %1077  ;;  %1334 = vmatprep.subr.mxu0 %v1132_v60 }
 0x366   : > { %1335 = vmatpush1.msra.mxu0 %v1131_v19  ;;  %v1083_v14 = vsel %vm391_vm4, %v1072_v0, %v1078_v24  ;;  %v1086_v3 = vsel %vm391_vm4, %v1078_v24, %v1072_v0 }
 0x367   : > { %v1042_v51 = vpop.permute.xlu0 %1041  ;;  %1336 = vmatprep.subr.mxu0 %v1106_v25  ;;  %v1090_v60 = vmul.f32 %v1083_v14, %v4634_v54  ;;  %v1089_v0 = vmul.f32 %v1086_v3, %v4640_v58 }
 0x368   : > { %1337 = vmatpush1.msra.mxu0 %v1105_v53 }
 0x369   : > { %v1048_v30 = vpop.permute.xlu1 %1047  ;;  %1338 = vmatprep.subr.mxu0 %v1104_v29 }
 0x36a   : > { %1339 = vmatpush1.msra.mxu0 %v1103_v45 }
 0x36b   : > { %v5048_v33 = vpop.permute.xlu0 %1011  ;;  %1340 = vmatprep.subr.mxu0 %v1102_v31 }
 0x36c   : > { %1341 = vmatpush1.msra.mxu0 %v1101_v32  ;;  %v1053_v32 = vsel %vm369_vm5, %v1042_v51, %v1048_v30 }
 0x36d   : > { %v5050_v41 = vpop.permute.xlu1 %1017 }
 0x36e   : > { %v1023_v14 = vsel %vm347_vm6, %v5048_v33, %v5050_v41  ;;  %v1026_v3 = vsel %vm347_vm6, %v5050_v41, %v5048_v33 }
 0x36f   : > { %v5052_v5 = vpop.permute.xlu0 %981 }
 0x371   : > { %v5054_v6 = vpop.permute.xlu1 %987 }
 0x373   : > { %v5056_v34 = vpop.permute.xlu0 %1203 }
 0x375   : > { %v5058_v15 = vpop.permute.xlu1 %1209 }
 0x377   : > { %v1074_v36 = vpop.permute.xlu0 %1073 }
 0x379   : > { %v1080_v37 = vpop.permute.xlu1 %1079 }
 0x37a   : > { %v1084_v56 = vsel %vm391_vm4, %v1074_v36, %v1080_v37  ;;  %v1087_v13 = vsel %vm391_vm4, %v1080_v37, %v1074_v36  ;;  %v1056_v37 = vsel %vm369_vm5, %v1048_v30, %v1042_v51 }
 0x37b   : > { %v1044_v38 = vpop.permute.xlu0 %1043  ;;  %v1092_v4 = vmul.f32 %v1084_v56, %v4634_v54  ;;  %v1091_v18 = vmul.f32 %v1087_v13, %v4640_v58 }
 0x37d   : > { %v1050_v39 = vpop.permute.xlu1 %1049 }
 0x37e   : > { %v1054_v24 = vsel %vm369_vm5, %v1044_v38, %v1050_v39  ;;  %v1057_v29 = vsel %vm369_vm5, %v1050_v39, %v1044_v38  ;;  %v1060_v39 = vmul.f32 %v1053_v32, %v4653_v63  ;;  %v996_v32 = vsel %vm325_vm7, %v5054_v6, %v5052_v5 }
 0x37f   : > { %v1014_v43 = vpop.permute.xlu0 %1013  ;;  %v1061_v38 = vmul.f32 %v1057_v29, %v4650_v62  ;;  %v993_v29 = vsel %vm325_vm7, %v5052_v5, %v5054_v6 }
 0x381   : > { %v1020_v16 = vpop.permute.xlu1 %1019 }
 0x382   : > { %v1027_v30 = vsel %vm347_vm6, %v1020_v16, %v1014_v43 }
 0x383   : > { %v5060_v7 = vpop.permute.xlu0 %983 }
 0x385   : > { %v5062_v8 = vpop.permute.xlu1 %989 }
 0x386   : > { %v994_v33 = vsel %vm325_vm7, %v5060_v7, %v5062_v8  ;;  %v997_v41 = vsel %vm325_vm7, %v5062_v8, %v5060_v7 }
 0x387   : > { %v5064_v46 = vpop.permute.xlu0 %1205  ;;  %v1001_v8 = vmul.f32 %v997_v41, %v4684_v26 }
 0x389   : > { %v5066_v48 = vpop.permute.xlu1 %1211 }
 0x38b   : > { %v5068_v49 = vpop.permute.xlu0 %1175 }
 0x38d   : > { %v5070_v50 = vpop.permute.xlu1 %1181 }
 0x38f   : > { %v1076_v52 = vpop.permute.xlu0 %1075 }
 0x391   : > { %v1082_v55 = vpop.permute.xlu1 %1081 }
 0x392   : > { %v1085_v57 = vsel %vm391_vm4, %v1076_v52, %v1082_v55  ;;  %v1088_v9 = vsel %vm391_vm4, %v1082_v55, %v1076_v52  ;;  %v1062_v52 = vmul.f32 %v1054_v24, %v4653_v63 }
 0x393   : > { %v1093_v59 = vmul.f32 %v1088_v9, %v4640_v58  ;;  %v1094_v61 = vmul.f32 %v1085_v57, %v4634_v54  ;;  %v1046_v2 = vpop.permute.xlu0 %1045  ;;  %v1059_v57 = vmul.f32 %v1056_v37, %v4650_v62  ;;  %v1024_v9 = vsel %vm347_vm6, %v1014_v43, %v1020_v16 }
 0x394   : > { %v1031_v16 = vmul.f32 %v1027_v30, %v4668_v10  ;;  %v1000_v37 = vmul.f32 %v993_v29, %v4687_v28 }
 0x395   : > { %v1052_v17 = vpop.permute.xlu1 %1051  ;;  %1342 = vmatprep.subr.mxu0 %v1094_v61 }
 0x396   : > { %v1055_v19 = vsel %vm369_vm5, %v1046_v2, %v1052_v17  ;;  %1343 = vmatpush1.msra.mxu0 %v1093_v59  ;;  %v1058_v25 = vsel %vm369_vm5, %v1052_v17, %v1046_v2 }
 0x397   : > { %v5093_v53 = vpop.permute.xlu0 %1173  ;;  %1344 = vmatprep.subr.mxu0 %v1092_v4  ;;  %v1064_v45 = vmul.f32 %v1055_v19, %v4653_v63  ;;  %v1063_v36 = vmul.f32 %v1058_v25, %v4650_v62  ;;  %v1032_v4 = vmul.f32 %v1024_v9, %v4671_v11  ;;  %v1029_v25 = vmul.f32 %v1026_v3, %v4668_v10 }
 0x398   : > { %1345 = vmatpush1.msra.mxu0 %v1091_v18  ;;  %v1030_v18 = vmul.f32 %v1023_v14, %v4671_v11 }
 0x399   : > { %v5101_v31 = vpop.permute.xlu1 %1179  ;;  %1346 = vmatprep.subr.mxu0 %v1090_v60 }
 0x39a   : > { %1347 = vmatpush1.msra.mxu0 %v1089_v0 }
 0x39b   : > { %v1016_v55 = vpop.permute.xlu0 %1015  ;;  %1348 = vmatprep.subr.mxu0 %v1064_v45 }
 0x39c   : > { %1349 = vmatpush1.msra.mxu0 %v1063_v36  ;;  %v1002_v36 = vmul.f32 %v994_v33, %v4687_v28 }
 0x39d   : > { %v1022_v56 = vpop.permute.xlu1 %1021  ;;  %1350 = vmatprep.subr.mxu0 %v1062_v52 }
 0x39e   : > { %v1025_v13 = vsel %vm347_vm6, %v1016_v55, %v1022_v56  ;;  %v1028_v51 = vsel %vm347_vm6, %v1022_v56, %v1016_v55  ;;  %1351 = vmatpush1.msra.mxu0 %v1061_v38  ;;  %v999_v55 = vmul.f32 %v996_v32, %v4684_v26  ;;  %v1219_v38 = vsel %vm494_vm1, %v5066_v48, %v5064_v46 }
 0x39f   : > { %v1033_v59 = vmul.f32 %v1028_v51, %v4668_v10  ;;  %v1034_v61 = vmul.f32 %v1025_v13, %v4671_v11  ;;  %v986_v2 = vpop.permute.xlu0 %985  ;;  %1352 = vmatprep.subr.mxu0 %v1060_v39  ;;  %v1216_v39 = vsel %vm494_vm1, %v5064_v46, %v5066_v48  ;;  %v1218_v13 = vsel %vm494_vm1, %v5058_v15, %v5056_v34 }
 0x3a0   : > { %1353 = vmatpush1.msra.mxu0 %v1059_v57  ;;  %v1215_v51 = vsel %vm494_vm1, %v5056_v34, %v5058_v15  ;;  %v1224_v30 = vmul.f32 %v1219_v38, %v4569_v21  ;;  %v1223_v48 = vmul.f32 %v1216_v39, %v4566_v20  ;;  %v1189_v34 = vsel %vm472_vm0, %v5070_v50, %v5068_v49 }
 0x3a1   : > { %v992_v43 = vpop.permute.xlu1 %991  ;;  %1354 = vmatprep.subr.mxu0 %v1034_v61  ;;  %v1222_v61 = vmul.f32 %v1218_v13, %v4569_v21  ;;  %v1221_v3 = vmul.f32 %v1215_v51, %v4566_v20  ;;  %v1186_v15 = vsel %vm472_vm0, %v5068_v49, %v5070_v50 }
 0x3a2   : > { %v995_v17 = vsel %vm325_vm7, %v986_v2, %v992_v43  ;;  %1355 = vmatpush1.msra.mxu0 %v1033_v59  ;;  %v998_v19 = vsel %vm325_vm7, %v992_v43, %v986_v2  ;;  %v1193_v50 = vmul.f32 %v1186_v15, %v4572_v22 }
 0x3a3   : > { %v1208_v60 = vpop.permute.xlu0 %1207  ;;  %1356 = vmatprep.subr.mxu0 %v1032_v4  ;;  %v1004_v0 = vmul.f32 %v995_v17, %v4687_v28  ;;  %v1003_v45 = vmul.f32 %v998_v19, %v4684_v26  ;;  %v1185_v19 = vsel %vm472_vm0, %v5093_v53, %v5101_v31 }
 0x3a4   : > { %1357 = vmatpush1.msra.mxu0 %v1031_v16  ;;  %v1188_v16 = vsel %vm472_vm0, %v5101_v31, %v5093_v53  ;;  %v1191_v33 = vmul.f32 %v1185_v19, %v4572_v22 }
 0x3a5   : > { %v1152_v24 = vpop.permute.xlu1 %1151  ;;  %1358 = vmatprep.subr.mxu0 %v1030_v18  ;;  %v1194_v18 = vmul.f32 %v1189_v34, %v4575_v23 }
 0x3a6   : > { %1359 = vmatpush1.msra.mxu0 %v1029_v25 }
 0x3a7   : > { %v1178_v7 = vpop.permute.xlu0 %1177  ;;  %1360 = vmatprep.subr.mxu0 %v1004_v0 }
 0x3a8   : > { %1361 = vmatpush1.msra.mxu0 %v1003_v45 }
 0x3a9   : > { %v1214_v52 = vpop.permute.xlu1 %1213  ;;  %1362 = vmatprep.subr.mxu0 %v1002_v36 }
 0x3aa   : > { %v1217_v5 = vsel %vm494_vm1, %v1208_v60, %v1214_v52  ;;  %v1220_v6 = vsel %vm494_vm1, %v1214_v52, %v1208_v60  ;;  %1363 = vmatpush1.msra.mxu0 %v1001_v8  ;;  %v1192_v60 = vmul.f32 %v1188_v16, %v4575_v23 }
 0x3ab   : > { %v1225_v56 = vmul.f32 %v1217_v5, %v4566_v20  ;;  %v1226_v57 = vmul.f32 %v1220_v6, %v4569_v21  ;;  %v1148_v9 = vpop.permute.xlu0 %1147  ;;  %1364 = vmatprep.subr.mxu0 %v1000_v37 }
 0x3ac   : > { %1365 = vmatpush1.msra.mxu0 %v999_v55 }
 0x3ad   : > { %v1184_v46 = vpop.permute.xlu1 %1183  ;;  %1376 = vmatprep.subr.mxu0 %v1226_v57 }
 0x3ae   : > { %v1190_v59 = vsel %vm472_vm0, %v1184_v46, %v1178_v7  ;;  %1377 = vmatpush2.msra.mxu0 %v1225_v56  ;;  %v1187_v2 = vsel %vm472_vm0, %v1178_v7, %v1184_v46  ;;  %v4330_v46 = vld [vmem:[%s7510_s2 + $0xf0] sm:$0xff] }
 0x3af   : > { %v1146_v14 = vpop.permute.xlu0 %1145  ;;  %1378 = vmatprep.subr.mxu0 %v1224_v30  ;;  %v1196_v4 = vmul.f32 %v1190_v59, %v4575_v23  ;;  %v1195_v17 = vmul.f32 %v1187_v2, %v4572_v22  ;;  %v4332_v59 = vld [vmem:[%s7510_s2 + $0x108] sm:$0xff]  ;;  %v4334_v2 = vld [vmem:[%s7510_s2 + $0x120] sm:$0xff] }
 0x3b0   : > { %1379 = vmatpush2.msra.mxu0 %v1223_v48  ;;  %v1159_v41 = vsel %vm450_vm2, %v1152_v24, %v1146_v14  ;;  %v1156_v31 = vsel %vm450_vm2, %v1146_v14, %v1152_v24  ;;  %v4333_v48 = vld [vmem:[%s7510_s2 + $0x110] sm:$0xff]  ;;  %v4337_v14 = vld [vmem:[%s7510_s2 + $0x140] sm:$0xff] }
 0x3b1   : > { %v1150_v43 = vpop.permute.xlu1 %1149  ;;  %1380 = vmatprep.subr.mxu0 %v1222_v61  ;;  %v1164_v7 = vmul.f32 %v1159_v41, %v4581_v27  ;;  %v1163_v52 = vmul.f32 %v1156_v31, %v4599_v35  ;;  %v4335_v61 = vld [vmem:[%s7510_s2 + $0x128] sm:$0xff] }
 0x3b2   : > { %1381 = vmatpush2.msra.mxu0 %v1221_v3  ;;  %v4336_v3 = vld [vmem:[%s7510_s2 + $0x138] sm:$0xff] }
 0x3b3   : > { %v1144_v49 = vpop.permute.xlu0 %1143  ;;  %1382 = vmatprep.subr.mxu0 %v1196_v4 }
 0x3b4   : > { %1383 = vmatpush2.msra.mxu0 %v1195_v17  ;;  %v1158_v36 = vsel %vm450_vm2, %v1150_v43, %v1144_v49  ;;  %v1155_v8 = vsel %vm450_vm2, %v1144_v49, %v1150_v43 }
 0x3b5   : > { %v1154_v25 = vpop.permute.xlu1 %1153  ;;  %1384 = vmatprep.subr.mxu0 %v1194_v18  ;;  %v1162_v55 = vmul.f32 %v1158_v36, %v4581_v27  ;;  %v1161_v5 = vmul.f32 %v1155_v8, %v4599_v35 }
 0x3b6   : > { %v1157_v0 = vsel %vm450_vm2, %v1148_v9, %v1154_v25  ;;  %v1160_v53 = vsel %vm450_vm2, %v1154_v25, %v1148_v9  ;;  %1385 = vmatpush2.msra.mxu0 %v1193_v50 }
 0x3b7   : > { %v1165_v29 = vmul.f32 %v1157_v0, %v4599_v35  ;;  %v1166_v45 = vmul.f32 %v1160_v53, %v4581_v27  ;;  %v1118_v32 = vpop.permute.xlu0 %1117  ;;  %1386 = vmatprep.subr.mxu0 %v1192_v60 }
 0x3b8   : > { %1387 = vmatpush2.msra.mxu0 %v1191_v33 }
 0x3b9   : > { %v1124_v37 = vpop.permute.xlu1 %1123  ;;  %1388 = vmatprep.subr.mxu0 %v1166_v45 }
 0x3ba   : > { %v1130_v24 = vsel %vm428_vm3, %v1124_v37, %v1118_v32  ;;  %1389 = vmatpush2.msra.mxu0 %v1165_v29  ;;  %v1127_v38 = vsel %vm428_vm3, %v1118_v32, %v1124_v37 }
 0x3bb   : > { %1390 = vmatprep.subr.mxu0 %v1164_v7  ;;  %v1136_v6 = vmul.f32 %v1130_v24, %v4607_v40  ;;  %v1116_v39 = vpop.permute.xlu0 %1115  ;;  %v1135_v57 = vmul.f32 %v1127_v38, %v4614_v44 }
 0x3bc   : > { %1391 = vmatpush2.msra.mxu0 %v1163_v52 }
 0x3bd   : > { %v1122_v56 = vpop.permute.xlu1 %1121  ;;  %1392 = vmatprep.subr.mxu0 %v1162_v55 }
 0x3be   : > { %v1126_v9 = vsel %vm428_vm3, %v1116_v39, %v1122_v56  ;;  %v1129_v13 = vsel %vm428_vm3, %v1122_v56, %v1116_v39  ;;  %1393 = vmatpush2.msra.mxu0 %v1161_v5 }
 0x3bf   : > { %v1133_v51 = vmul.f32 %v1126_v9, %v4614_v44  ;;  %v1134_v30 = vmul.f32 %v1129_v13, %v4607_v40  ;;  %1394 = vmatprep.subr.mxu0 %v1136_v6  ;;  %v4347_v6 = vld [vmem:[%s7510_s2 + $0x170] sm:$0xff] }
 0x3c0   : > { %1395 = vmatpush2.msra.mxu0 %v1135_v57  ;;  %1982 = vmatprep.mubr.f32.mxu1 %v4347_v6 }
 0x3c1   : > { %1396 = vmatprep.subr.mxu0 %v1134_v30 }
 0x3c2   : > { %1397 = vmatpush2.msra.mxu0 %v1133_v51  ;;  %v4361_v51 = vld [vmem:[%s7511_s3 + $0x78] sm:$0xff] }
 0x3c3   : > { %1399 = vmatmul.mubr.f32.vlgmr.msra.gmra.mxu0 %v4330_v46  ;;  %v4365_v46 = vld [vmem:[%s7511_s3 + $0x98] sm:$0xff] }
 0x3c4   : > { %4343 = vmatprep.mubr.msk.f32.mxu0 %vm1321_vm10, %v4333_v48 }
 0x3c7   : > { %1405 = vmatmul.mubr.f32.gmra.mxu0 %v4332_v59  ;;  %v4364_v59 = vld [vmem:[%s7511_s3 + $0x90] sm:$0xff] }
 0x3c8   : > { %4344 = vmatprep.mubr.msk.f32.mxu0 %vm1321_vm10, %v4335_v61  ;;  %v1319_v49 = vpop.permute.xlu0 %1318 }
 0x3ca   : > { %v1314_v34 = vpop.permute.xlu1 %1313 }
 0x3cb   : > { %1411 = vmatmul.mubr.f32.gmra.mxu0 %v4334_v2  ;;  %v4363_v2 = vld [vmem:[%s7511_s3 + $0x88] sm:$0xff] }
 0x3cc   : > { %4345 = vmatprep.mubr.msk.f32.mxu0 %vm1321_vm10, %v4337_v14  ;;  %v1309_v60 = vpop.permute.xlu0 %1308 }
 0x3ce   : > { %v1304_v15 = vpop.permute.xlu1 %1303 }
 0x3cf   : > { %1417 = vmatmul.mubr.f32.gmra.mxu0 %v4336_v3  ;;  %v4362_v3 = vld [vmem:[%s7511_s3 + $0x80] sm:$0xff] }
 0x3d0   : > { %2077 = vmatprep.mubr.f32.mxu0 %v7513_v1 }
 0x483   : > { %v1400_v4 = vpop.f32.mrf.mxu0 }
 0x484   : > { %v1401_v43 = vadd.f32 %v1400_v4, %v1304_v15 }
 0x485   : > { %v1402_v16 = vpop.f32.mrf.mxu0 }
 0x486   : > { %v5267_v17 = vmax.f32 %v1401_v43, 0.0  ;;  %v1403_v18 = vadd.f32 %v1402_v16, %v1304_v15 }
 0x487   : > { %v1406_v50 = vpop.f32.mrf.mxu0 }
 0x488   : > { %7551 = vst [vmem:[#allocation8_spill] sm:$0xff] %v5267_v17  ;;  %v5269_v19 = vmax.f32 %v1403_v18, 0.0  ;;  %1567 = vrot.lane.b32.xlu0 %v5267_v17, %s4457_s28  ;;  %v1407_v33 = vadd.f32 %v1406_v50, %v1309_v60 }
 0x489   : > { %v1408_v25 = vpop.f32.mrf.mxu0 }
 0x48a   : > { %7552 = vst [vmem:[#allocation9_spill] sm:$0xff] %v5269_v19  ;;  %1575 = vrot.lane.b32.xlu1 %v5269_v19, %s4457_s28  ;;  %v1409_v41 = vadd.f32 %v1408_v25, %v1309_v60  ;;  %v5289_v0 = vmax.f32 %v1407_v33, 0.0 }
 0x48b   : > { %v1412_v31 = vpop.f32.mrf.mxu0 }
 0x48c   : > { %1527 = vrot.lane.b32.xlu0 %v5267_v17, %s4458_s29  ;;  %7553 = vst [vmem:[#allocation10_spill] sm:$0xff] %v5289_v0  ;;  %v5293_v53 = vmax.f32 %v1409_v41, 0.0  ;;  %v1413_v45 = vadd.f32 %v1412_v31, %v1314_v34 }
 0x48d   : > { %v1414_v29 = vpop.f32.mrf.mxu0 }
 0x48e   : > { %1535 = vrot.lane.b32.xlu1 %v5269_v19, %s4458_s29  ;;  %7554 = vst [vmem:[#allocation11_spill] sm:$0xff] %v5293_v53  ;;  %v1415_v32 = vadd.f32 %v1414_v29, %v1314_v34  ;;  %v5313_v36 = vmax.f32 %v1413_v45, 0.0 }
 0x48f   : > { %v1418_v8 = vpop.f32.mrf.mxu0 }
 0x490   : > { %1487 = vrot.lane.b32.xlu0 %v5267_v17, %s4459_s30  ;;  %7555 = vst [vmem:[#allocation12_spill] sm:$0xff] %v5313_v36  ;;  %v5317_v7 = vmax.f32 %v1415_v32, 0.0  ;;  %v1419_v52 = vadd.f32 %v1418_v8, %v1319_v49 }
 0x491   : > { %v1420_v37 = vpop.f32.mrf.mxu0 }
 0x492   : > { %1495 = vrot.lane.b32.xlu1 %v5269_v19, %s4459_s30  ;;  %7556 = vst [vmem:[#allocation13_spill] sm:$0xff] %v5317_v7  ;;  %v1421_v24 = vadd.f32 %v1420_v37, %v1319_v49  ;;  %v5337_v55 = vmax.f32 %v1419_v52, 0.0 }
 0x494   : > { %1447 = vrot.lane.b32.xlu0 %v5267_v17, %s4461_s5  ;;  %v5341_v38 = vmax.f32 %v1421_v24, 0.0 }
 0x496   : > { %1455 = vrot.lane.b32.xlu1 %v5269_v19, %s4461_s5 }
 0x498   : > { %1703 = vrot.lane.b32.xlu0 %v5267_v17, %s4453_s24 }
 0x49a   : > { %1711 = vrot.lane.b32.xlu1 %v5269_v19, %s4453_s24 }
 0x49c   : > { %1569 = vrot.lane.b32.xlu0 %v5289_v0, %s4457_s28 }
 0x49e   : > { %1577 = vrot.lane.b32.xlu1 %v5293_v53, %s4457_s28 }
 0x4a0   : > { %1529 = vrot.lane.b32.xlu0 %v5289_v0, %s4458_s29 }
 0x4a2   : > { %1537 = vrot.lane.b32.xlu1 %v5293_v53, %s4458_s29 }
 0x4a4   : > { %1489 = vrot.lane.b32.xlu0 %v5289_v0, %s4459_s30 }
 0x4a6   : > { %1497 = vrot.lane.b32.xlu1 %v5293_v53, %s4459_s30 }
 0x4a8   : > { %1449 = vrot.lane.b32.xlu0 %v5289_v0, %s4461_s5 }
 0x4aa   : > { %1457 = vrot.lane.b32.xlu1 %v5293_v53, %s4461_s5 }
 0x4ac   : > { %1705 = vrot.lane.b32.xlu0 %v5289_v0, %s4453_s24 }
 0x4ae   : > { %1713 = vrot.lane.b32.xlu1 %v5293_v53, %s4453_s24 }
 0x4b0   : > { %1571 = vrot.lane.b32.xlu0 %v5313_v36, %s4457_s28 }
 0x4b2   : > { %1579 = vrot.lane.b32.xlu1 %v5317_v7, %s4457_s28 }
 0x4b4   : > { %1531 = vrot.lane.b32.xlu0 %v5313_v36, %s4458_s29 }
 0x4b6   : > { %1539 = vrot.lane.b32.xlu1 %v5317_v7, %s4458_s29 }
 0x4b8   : > { %1491 = vrot.lane.b32.xlu0 %v5313_v36, %s4459_s30 }
 0x4ba   : > { %1499 = vrot.lane.b32.xlu1 %v5317_v7, %s4459_s30 }
 0x4bc   : > { %1451 = vrot.lane.b32.xlu0 %v5313_v36, %s4461_s5 }
 0x4be   : > { %1459 = vrot.lane.b32.xlu1 %v5317_v7, %s4461_s5 }
 0x4c0   : > { %1707 = vrot.lane.b32.xlu0 %v5313_v36, %s4453_s24 }
 0x4c2   : > { %1715 = vrot.lane.b32.xlu1 %v5317_v7, %s4453_s24 }
 0x4c4   : > { %1573 = vrot.lane.b32.xlu0 %v5337_v55, %s4457_s28 }
 0x4c6   : > { %1581 = vrot.lane.b32.xlu1 %v5341_v38, %s4457_s28 }
 0x4c8   : > { %1667 = vrot.lane.b32.xlu0 %v5313_v36, %s4455_s26 }
 0x4ca   : > { %1675 = vrot.lane.b32.xlu1 %v5317_v7, %s4455_s26 }
 0x4cc   : > { %1533 = vrot.lane.b32.xlu0 %v5337_v55, %s4458_s29 }
 0x4ce   : > { %1541 = vrot.lane.b32.xlu1 %v5341_v38, %s4458_s29 }
 0x4d0   : > { %1493 = vrot.lane.b32.xlu0 %v5337_v55, %s4459_s30 }
 0x4d2   : > { %1673 = vrot.lane.b32.xlu1 %v5293_v53, %s4455_s26 }
 0x4d4   : > { %1453 = vrot.lane.b32.xlu0 %v5337_v55, %s4461_s5 }
 0x4d6   : > { %1501 = vrot.lane.b32.xlu1 %v5341_v38, %s4459_s30 }
 0x4d8   : > { %1709 = vrot.lane.b32.xlu0 %v5337_v55, %s4453_s24 }
 0x4da   : > { %1671 = vrot.lane.b32.xlu1 %v5269_v19, %s4455_s26 }
 0x4dc   : > { %1669 = vrot.lane.b32.xlu0 %v5337_v55, %s4455_s26 }
 0x4de   : > { %1461 = vrot.lane.b32.xlu1 %v5341_v38, %s4461_s5 }
 0x4e0   : > { %1665 = vrot.lane.b32.xlu0 %v5289_v0, %s4455_s26 }
 0x4e2   : > { %1635 = vrot.lane.b32.xlu1 %v5317_v7, %s4456_s27 }
 0x4e4   : > { %1663 = vrot.lane.b32.xlu0 %v5267_v17, %s4455_s26 }
 0x4e6   : > { %1717 = vrot.lane.b32.xlu1 %v5341_v38, %s4453_s24 }
 0x4e8   : > { %1629 = vrot.lane.b32.xlu0 %v5337_v55, %s4456_s27 }
 0x4ea   : > { %1633 = vrot.lane.b32.xlu1 %v5293_v53, %s4456_s27 }
 0x4ec   : > { %1627 = vrot.lane.b32.xlu0 %v5313_v36, %s4456_s27 }
 0x4ee   : > { %1677 = vrot.lane.b32.xlu1 %v5341_v38, %s4455_s26 }
 0x4f0   : > { %1625 = vrot.lane.b32.xlu0 %v5289_v0, %s4456_s27 }
 0x4f2   : > { %1631 = vrot.lane.b32.xlu1 %v5269_v19, %s4456_s27 }
 0x4f4   : > { %1623 = vrot.lane.b32.xlu0 %v5267_v17, %s4456_s27 }
 0x4f6   : > { %1637 = vrot.lane.b32.xlu1 %v5341_v38, %s4456_s27 }
 0x4f8   : > { %1749 = vrot.lane.b32.xlu0 %v5337_v55, %s4454_s25 }
 0x4fa   : > { %1755 = vrot.lane.b32.xlu1 %v5317_v7, %s4454_s25  ;;  %v5399_v5 = vpop.permute.xlu0 %1567 }
 0x4fc   : > { %v5404_v39 = vpop.permute.xlu1 %1575  ;;  %1747 = vrot.lane.b32.xlu0 %v5313_v36, %s4454_s25 }
 0x4fe   : > { %1757 = vrot.lane.b32.xlu1 %v5341_v38, %s4454_s25  ;;  %v5410_v56 = vpop.permute.xlu0 %1527 }
 0x500   : > { %v5412_v57 = vpop.permute.xlu1 %1535  ;;  %1745 = vrot.lane.b32.xlu0 %v5289_v0, %s4454_s25 }
 0x502   : > { %1753 = vrot.lane.b32.xlu1 %v5293_v53, %s4454_s25  ;;  %v5418_v9 = vpop.permute.xlu0 %1487 }
 0x504   : > { %v5420_v13 = vpop.permute.xlu1 %1495  ;;  %1743 = vrot.lane.b32.xlu0 %v5267_v17, %s4454_s25 }
 0x506   : > { %1751 = vrot.lane.b32.xlu1 %v5269_v19, %s4454_s25  ;;  %v5429_v30 = vpop.permute.xlu0 %1447 }
 0x508   : > { %v5434_v48 = vpop.permute.xlu1 %1455  ;;  %1879 = vperm.xlu0 %4441, %v4361_v51  }
 0x50a   : > { %1899 = vperm.xlu1 %4442, %v4365_v46   ;;  %v5439_v61 = vpop.permute.xlu0 %1703 }
 0x50c   : > { %v5444_v14 = vpop.permute.xlu1 %1711  ;;  %1894 = vperm.xlu0 %4441, %v4364_v59  }
 0x50e   : > { %1889 = vperm.xlu1 %4442, %v4363_v2   ;;  %v1570_v34 = vpop.permute.xlu0 %1569 }
 0x510   : > { %v1578_v15 = vpop.permute.xlu1 %1577  ;;  %1884 = vperm.xlu0 %4441, %v4362_v3  }
 0x511   : > { %v1584_v0 = vsel %vm391_vm4, %v1570_v34, %v1578_v15  ;;  %v1588_v53 = vsel %vm391_vm4, %v1578_v15, %v1570_v34 }
 0x512   : > { %v1530_v4 = vpop.permute.xlu0 %1529  ;;  %v1594_v34 = vmul.f32 %v1584_v0, %v4634_v54 }
 0x514   : > { %v1538_v43 = vpop.permute.xlu1 %1537 }
 0x516   : > { %v5449_v16 = vpop.permute.xlu0 %1489 }
 0x518   : > { %v5451_v18 = vpop.permute.xlu1 %1497 }
 0x51a   : > { %v5453_v49 = vpop.permute.xlu0 %1449 }
 0x51c   : > { %v5455_v50 = vpop.permute.xlu1 %1457 }
 0x51e   : > { %v5457_v60 = vpop.permute.xlu0 %1705 }
 0x520   : > { %v5459_v25 = vpop.permute.xlu1 %1713 }
 0x522   : > { %v1572_v33 = vpop.permute.xlu0 %1571 }
 0x524   : > { %v1580_v41 = vpop.permute.xlu1 %1579 }
 0x525   : > { %v1585_v46 = vsel %vm391_vm4, %v1572_v33, %v1580_v41  ;;  %v1589_v3 = vsel %vm391_vm4, %v1580_v41, %v1572_v33  ;;  %v1583_v33 = vsel %vm391_vm4, %v5399_v5, %v5404_v39 }
 0x526   : > { %v1532_v31 = vpop.permute.xlu0 %1531  ;;  %v1596_v36 = vmul.f32 %v1585_v46, %v4634_v54  ;;  %v1595_v41 = vmul.f32 %v1589_v3, %v4640_v58  ;;  %v1544_v3 = vsel %vm369_vm5, %v1530_v4, %v1538_v43 }
 0x528   : > { %v1540_v29 = vpop.permute.xlu1 %1539 }
 0x52a   : > { %v5461_v45 = vpop.permute.xlu0 %1491 }
 0x52c   : > { %v5463_v32 = vpop.permute.xlu1 %1499 }
 0x52e   : > { %v5465_v8 = vpop.permute.xlu0 %1451 }
 0x530   : > { %v5467_v37 = vpop.permute.xlu1 %1459 }
 0x532   : > { %v5469_v52 = vpop.permute.xlu0 %1707 }
 0x534   : > { %v5471_v24 = vpop.permute.xlu1 %1715 }
 0x536   : > { %v1574_v6 = vpop.permute.xlu0 %1573 }
 0x538   : > { %v1582_v51 = vpop.permute.xlu1 %1581 }
 0x539   : > { %v1586_v59 = vsel %vm391_vm4, %v1574_v6, %v1582_v51  ;;  %v1590_v2 = vsel %vm391_vm4, %v1582_v51, %v1574_v6  ;;  %v1587_v6 = vsel %vm391_vm4, %v5404_v39, %v5399_v5  ;;  %v1593_v51 = vmul.f32 %v1588_v53, %v4640_v58 }
 0x53a   : > { %v1597_v1 = vmul.f32 %v1590_v2, %v4640_v58  ;;  %v1598_v17 = vmul.f32 %v1586_v59, %v4634_v54  ;;  %v5483_v19 = vpop.permute.xlu0 %1667  ;;  %v1591_v59 = vmul.f32 %v1587_v6, %v4640_v58  ;;  %v1549_v53 = vsel %vm369_vm5, %v1540_v29, %v1532_v31 }
 0x53c   : > { %v5490_v7 = vpop.permute.xlu1 %1675  ;;  %1918 = vmatprep.subr.mxu1 %v1598_v17  ;;  %v1592_v17 = vmul.f32 %v1583_v33, %v4634_v54  ;;  %v1548_v33 = vsel %vm369_vm5, %v1538_v43, %v1530_v4  ;;  %v1554_v4 = vmul.f32 %v1544_v3, %v4653_v63 }
 0x53d   : > { %1919 = vmatpush1.msra.mxu1 %v1597_v1  ;;  %v1545_v1 = vsel %vm369_vm5, %v1532_v31, %v1540_v29  ;;  %v1543_v31 = vsel %vm369_vm5, %v5410_v56, %v5412_v57  ;;  %v1555_v29 = vmul.f32 %v1549_v53, %v4650_v62 }
 0x53e   : > { %v1534_v15 = vpop.permute.xlu0 %1533  ;;  %1920 = vmatprep.subr.mxu1 %v1596_v36 }
 0x53f   : > { %1921 = vmatpush1.msra.mxu1 %v1595_v41  ;;  %v1556_v41 = vmul.f32 %v1545_v1, %v4653_v63  ;;  %v1509_v1 = vsel %vm347_vm6, %v5463_v32, %v5461_v45 }
 0x540   : > { %v1542_v46 = vpop.permute.xlu1 %1541  ;;  %1922 = vmatprep.subr.mxu1 %v1594_v34  ;;  %v1547_v34 = vsel %vm369_vm5, %v5412_v57, %v5410_v56  ;;  %v1515_v3 = vmul.f32 %v1509_v1, %v4668_v10  ;;  %v1467_v1 = vsel %vm325_vm7, %v5434_v48, %v5429_v30 }
 0x541   : > { %v1546_v2 = vsel %vm369_vm5, %v1534_v15, %v1542_v46  ;;  %v1550_v0 = vsel %vm369_vm5, %v1542_v46, %v1534_v15  ;;  %1923 = vmatpush1.msra.mxu1 %v1593_v51  ;;  %v1553_v15 = vmul.f32 %v1548_v33, %v4650_v62  ;;  %v1552_v51 = vmul.f32 %v1543_v31, %v4653_v63 }
 0x542   : > { %v1557_v36 = vmul.f32 %v1550_v0, %v4650_v62  ;;  %v1558_v5 = vmul.f32 %v1546_v2, %v4653_v63  ;;  %v1494_v39 = vpop.permute.xlu0 %1493  ;;  %1924 = vmatprep.subr.mxu1 %v1592_v17  ;;  %v1551_v46 = vmul.f32 %v1547_v34, %v4650_v62  ;;  %v1507_v33 = vsel %vm347_vm6, %v5420_v13, %v5418_v9 }
 0x543   : > { %1925 = vmatpush1.msra.mxu1 %v1591_v59  ;;  %v1505_v59 = vsel %vm347_vm6, %v5461_v45, %v5463_v32  ;;  %v1503_v32 = vsel %vm347_vm6, %v5418_v9, %v5420_v13  ;;  %v1511_v34 = vmul.f32 %v1507_v33, %v4668_v10 }
 0x544   : > { %v5520_v6 = vpop.permute.xlu1 %1673  ;;  %1926 = vmatprep.subr.mxu1 %v1558_v5  ;;  %v1508_v5 = vsel %vm347_vm6, %v5451_v18, %v5449_v16  ;;  %v1512_v31 = vmul.f32 %v1503_v32, %v4671_v11  ;;  %v1721_v32 = vsel %vm472_vm0, %v5469_v52, %v5471_v24 }
 0x545   : > { %1927 = vmatpush1.msra.mxu1 %v1557_v36  ;;  %v1504_v36 = vsel %vm347_vm6, %v5449_v16, %v5451_v18 }
 0x546   : > { %v1454_v43 = vpop.permute.xlu0 %1453  ;;  %1928 = vmatprep.subr.mxu1 %v1556_v41  ;;  %v1514_v16 = vmul.f32 %v1504_v36, %v4671_v11  ;;  %v1513_v41 = vmul.f32 %v1508_v5, %v4668_v10  ;;  %v1471_v5 = vmul.f32 %v1467_v1, %v4684_v26 }
 0x547   : > { %1929 = vmatpush1.msra.mxu1 %v1555_v29 }
 0x548   : > { %v1502_v17 = vpop.permute.xlu1 %1501  ;;  %1930 = vmatprep.subr.mxu1 %v1554_v4  ;;  %v1465_v4 = vsel %vm325_vm7, %v5465_v8, %v5467_v37 }
 0x549   : > { %v1506_v56 = vsel %vm347_vm6, %v1494_v39, %v1502_v17  ;;  %v1510_v57 = vsel %vm347_vm6, %v1502_v17, %v1494_v39  ;;  %1931 = vmatpush1.msra.mxu1 %v1553_v15  ;;  %v1516_v39 = vmul.f32 %v1505_v59, %v4671_v11  ;;  %v1469_v15 = vsel %vm325_vm7, %v5467_v37, %v5465_v8 }
 0x54a   : > { %v1517_v2 = vmul.f32 %v1510_v57, %v4668_v10  ;;  %v1518_v0 = vmul.f32 %v1506_v56, %v4671_v11  ;;  %v1710_v53 = vpop.permute.xlu0 %1709  ;;  %1932 = vmatprep.subr.mxu1 %v1552_v51  ;;  %v1464_v59 = vsel %vm325_vm7, %v5453_v49, %v5455_v50  ;;  %v1476_v56 = vmul.f32 %v1465_v4, %v4687_v28 }
 0x54b   : > { %1933 = vmatpush1.msra.mxu1 %v1551_v46  ;;  %v1463_v37 = vsel %vm325_vm7, %v5429_v30, %v5434_v48  ;;  %v1475_v57 = vmul.f32 %v1469_v15, %v4684_v26 }
 0x54c   : > { %v5558_v45 = vpop.permute.xlu1 %1671  ;;  %1934 = vmatprep.subr.mxu1 %v1518_v0  ;;  %v1472_v0 = vmul.f32 %v1463_v37, %v4687_v28 }
 0x54d   : > { %1935 = vmatpush1.msra.mxu1 %v1517_v2 }
 0x54e   : > { %v5570_v18 = vpop.permute.xlu0 %1669  ;;  %1936 = vmatprep.subr.mxu1 %v1516_v39  ;;  %v1725_v39 = vsel %vm472_vm0, %v5471_v24, %v5469_v52  ;;  %v1723_v24 = vsel %vm472_vm0, %v5444_v14, %v5439_v61 }
 0x54f   : > { %1937 = vmatpush1.msra.mxu1 %v1515_v3 }
 0x550   : > { %v1462_v29 = vpop.permute.xlu1 %1461  ;;  %1938 = vmatprep.subr.mxu1 %v1514_v16 }
 0x551   : > { %v1466_v9 = vsel %vm325_vm7, %v1454_v43, %v1462_v29  ;;  %v1470_v13 = vsel %vm325_vm7, %v1462_v29, %v1454_v43  ;;  %1939 = vmatpush1.msra.mxu1 %v1513_v41  ;;  %v1468_v43 = vsel %vm325_vm7, %v5455_v50, %v5453_v49  ;;  %v1474_v49 = vmul.f32 %v1464_v59, %v4687_v28 }
 0x552   : > { %v1477_v51 = vmul.f32 %v1470_v13, %v4684_v26  ;;  %v1478_v17 = vmul.f32 %v1466_v9, %v4687_v28  ;;  %v1666_v46 = vpop.permute.xlu0 %1665  ;;  %1940 = vmatprep.subr.mxu1 %v1512_v31  ;;  %v1473_v2 = vmul.f32 %v1468_v43, %v4684_v26  ;;  %v1724_v41 = vsel %vm472_vm0, %v5459_v25, %v5457_v60 }
 0x553   : > { %1941 = vmatpush1.msra.mxu1 %v1511_v34  ;;  %v1732_v31 = vmul.f32 %v1725_v39, %v4575_v23  ;;  %v1731_v29 = vmul.f32 %v1721_v32, %v4572_v22  ;;  %v1719_v34 = vsel %vm472_vm0, %v5439_v61, %v5444_v14  ;;  %v1730_v4 = vmul.f32 %v1724_v41, %v4575_v23 }
 0x554   : > { %v5598_v8 = vpop.permute.xlu1 %1635  ;;  %1942 = vmatprep.subr.mxu1 %v1478_v17  ;;  %v1728_v9 = vmul.f32 %v1723_v24, %v4575_v23  ;;  %v1727_v15 = vmul.f32 %v1719_v34, %v4572_v22  ;;  %v1681_v17 = vsel %vm450_vm2, %v5483_v19, %v5490_v7  ;;  %v1684_v37 = vsel %vm450_vm2, %v5520_v6, %v1666_v46 }
 0x555   : > { %1943 = vmatpush1.msra.mxu1 %v1477_v51  ;;  %v1685_v51 = vsel %vm450_vm2, %v5490_v7, %v5483_v19  ;;  %v1691_v19 = vmul.f32 %v1681_v17, %v4599_v35 }
 0x556   : > { %v1664_v50 = vpop.permute.xlu0 %1663  ;;  %1944 = vmatprep.subr.mxu1 %v1476_v56 }
 0x557   : > { %1945 = vmatpush1.msra.mxu1 %v1475_v57  ;;  %v1692_v57 = vmul.f32 %v1685_v51, %v4581_v27  ;;  %v1683_v7 = vsel %vm450_vm2, %v5558_v45, %v1664_v50 }
 0x558   : > { %v1718_v36 = vpop.permute.xlu1 %1717  ;;  %1946 = vmatprep.subr.mxu1 %v1474_v49  ;;  %v1690_v49 = vmul.f32 %v1684_v37, %v4581_v27 }
 0x559   : > { %v1722_v30 = vsel %vm472_vm0, %v1710_v53, %v1718_v36  ;;  %v1726_v48 = vsel %vm472_vm0, %v1718_v36, %v1710_v53  ;;  %1947 = vmatpush1.msra.mxu1 %v1473_v2  ;;  %v1720_v53 = vsel %vm472_vm0, %v5457_v60, %v5459_v25  ;;  %v1679_v2 = vsel %vm450_vm2, %v1664_v50, %v5558_v45 }
 0x55a   : > { %v1733_v3 = vmul.f32 %v1722_v30, %v4572_v22  ;;  %v1734_v33 = vmul.f32 %v1726_v48, %v4575_v23  ;;  %v1630_v16 = vpop.permute.xlu0 %1629  ;;  %1948 = vmatprep.subr.mxu1 %v1472_v0  ;;  %v1729_v25 = vmul.f32 %v1720_v53, %v4572_v22 }
 0x55b   : > { %1949 = vmatpush1.msra.mxu1 %v1471_v5  ;;  %v1687_v5 = vmul.f32 %v1679_v2, %v4599_v35 }
 0x55c   : > { %v1634_v52 = vpop.permute.xlu1 %1633  ;;  %1950 = vmatprep.subr.mxu1 %v1734_v33 }
 0x55d   : > { %1951 = vmatpush2.msra.mxu1 %v1733_v3 }
 0x55e   : > { %v1628_v60 = vpop.permute.xlu0 %1627  ;;  %1952 = vmatprep.subr.mxu1 %v1732_v31 }
 0x55f   : > { %1953 = vmatpush2.msra.mxu1 %v1731_v29  ;;  %v1645_v39 = vsel %vm428_vm3, %v5598_v8, %v1628_v60  ;;  %v1641_v50 = vsel %vm428_vm3, %v1628_v60, %v5598_v8 }
 0x560   : > { %v1678_v13 = vpop.permute.xlu1 %1677  ;;  %1954 = vmatprep.subr.mxu1 %v1730_v4  ;;  %v1652_v41 = vmul.f32 %v1645_v39, %v4607_v40  ;;  %v1651_v31 = vmul.f32 %v1641_v50, %v4614_v44 }
 0x561   : > { %v1682_v61 = vsel %vm450_vm2, %v5570_v18, %v1678_v13  ;;  %v1686_v14 = vsel %vm450_vm2, %v1678_v13, %v5570_v18  ;;  %1955 = vmatpush2.msra.mxu1 %v1729_v25  ;;  %v1680_v18 = vsel %vm450_vm2, %v1666_v46, %v5520_v6  ;;  %v1688_v6 = vmul.f32 %v1683_v7, %v4581_v27 }
 0x562   : > { %v1693_v59 = vmul.f32 %v1682_v61, %v4599_v35  ;;  %v1694_v43 = vmul.f32 %v1686_v14, %v4581_v27  ;;  %v1626_v56 = vpop.permute.xlu0 %1625  ;;  %1956 = vmatprep.subr.mxu1 %v1728_v9  ;;  %v1689_v36 = vmul.f32 %v1680_v18, %v4599_v35 }
 0x563   : > { %1957 = vmatpush2.msra.mxu1 %v1727_v15  ;;  %v1644_v33 = vsel %vm428_vm3, %v1634_v52, %v1626_v56 }
 0x564   : > { %v1632_v1 = vpop.permute.xlu1 %1631  ;;  %1958 = vmatprep.subr.mxu1 %v1694_v43  ;;  %v1650_v24 = vmul.f32 %v1644_v33, %v4607_v40  ;;  %v1613_v43 = vmul.f32 %v5337_v55, %v4622_v47  ;;  %v4346_v33 = vld [vmem:[%s7510_s2 + $0x168] sm:$0xff] }
 0x565   : > { %1959 = vmatpush2.msra.mxu1 %v1693_v59  ;;  %v1614_v59 = vmul.f32 %v5341_v38, %v4610_v42 }
 0x566   : > { %v1624_v0 = vpop.permute.xlu0 %1623  ;;  %1960 = vmatprep.subr.mxu1 %v1692_v57  ;;  %v7557_v57 = vld [vmem:[#allocation13_spill] sm:$0xff] }
 0x567   : > { %1961 = vmatpush2.msra.mxu1 %v1691_v19  ;;  %v1643_v8 = vsel %vm428_vm3, %v1632_v1, %v1624_v0  ;;  %v1639_v29 = vsel %vm428_vm3, %v1624_v0, %v1632_v1  ;;  %v1612_v18 = vmul.f32 %v7557_v57, %v4610_v42  ;;  %v7558_v1 = vld [vmem:[#allocation12_spill] sm:$0xff]  ;;  %v7559_v0 = vld [vmem:[#allocation11_spill] sm:$0xff] }
 0x568   : > { %v1638_v46 = vpop.permute.xlu1 %1637  ;;  %1962 = vmatprep.subr.mxu1 %v1690_v49  ;;  %v1647_v25 = vmul.f32 %v1639_v29, %v4614_v44  ;;  %v1611_v19 = vmul.f32 %v7558_v1, %v4622_v47  ;;  %v7563_v29 = vmov 0.0  }
 0x569   : > { %v1642_v30 = vsel %vm428_vm3, %v1630_v16, %v1638_v46  ;;  %v1646_v45 = vsel %vm428_vm3, %v1638_v46, %v1630_v16  ;;  %1963 = vmatpush2.msra.mxu1 %v1689_v36  ;;  %v1640_v16 = vsel %vm428_vm3, %v1626_v56, %v1634_v52  ;;  %v1648_v52 = vmul.f32 %v1643_v8, %v4607_v40  ;;  %v4349_v8 = vld [vmem:[%s7510_s2 + $0x180] sm:$0xff] }
 0x56a   : > { %v1653_v48 = vmul.f32 %v1642_v30, %v4614_v44  ;;  %v1654_v32 = vmul.f32 %v1646_v45, %v4607_v40  ;;  %v1750_v3 = vpop.permute.xlu0 %1749  ;;  %1964 = vmatprep.subr.mxu1 %v1688_v6  ;;  %v1649_v4 = vmul.f32 %v1640_v16, %v4614_v44  ;;  %v1610_v36 = vmul.f32 %v7559_v0, %v4610_v42  ;;  %v7560_v6 = vld [vmem:[#allocation10_spill] sm:$0xff]  ;;  %v7561_v30 = vld [vmem:[#allocation9_spill] sm:$0xff] }
 0x56b   : > { %1965 = vmatpush2.msra.mxu1 %v1687_v5  ;;  %v1609_v46 = vmul.f32 %v7560_v6, %v4622_v47  ;;  %v1608_v45 = vmul.f32 %v7561_v30, %v4610_v42 }
 0x56c   : > { %v1756_v53 = vpop.permute.xlu1 %1755  ;;  %1966 = vmatprep.subr.mxu1 %v1654_v32  ;;  %v7562_v32 = vld [vmem:[#allocation8_spill] sm:$0xff] }
 0x56d   : > { %1967 = vmatpush2.msra.mxu1 %v1653_v48 }
 0x56e   : > { %v1748_v34 = vpop.permute.xlu0 %1747  ;;  %1968 = vmatprep.subr.mxu1 %v1652_v41 }
 0x56f   : > { %1969 = vmatpush2.msra.mxu1 %v1651_v31  ;;  %v1765_v9 = vsel %vm494_vm1, %v1756_v53, %v1748_v34  ;;  %v1761_v51 = vsel %vm494_vm1, %v1748_v34, %v1756_v53  ;;  %v4350_v53 = vld [vmem:[%s7510_s2 + $0x188] sm:$0xff]  ;;  %v4348_v31 = vld [vmem:[%s7510_s2 + $0x178] sm:$0xff]  ;;  %v4351_v34 = vld [vmem:[%s7510_s2 + $0x190] sm:$0xff] }
 0x570   : > { %v1758_v60 = vpop.permute.xlu1 %1757  ;;  %1970 = vmatprep.subr.mxu1 %v1650_v24  ;;  %v1772_v56 = vmul.f32 %v1765_v9, %v4569_v21  ;;  %v1771_v7 = vmul.f32 %v1761_v51, %v4566_v20  ;;  %v4353_v24 = vld [vmem:[%s7510_s2 + $0x1a0] sm:$0xff]  ;;  %v4359_v9 = vld [vmem:[%s7510_s2 + $0x1d0] sm:$0xff]  ;;  %v4360_v51 = vld [vmem:[%s7510_s2 + $0x1d8] sm:$0xff] }
 0x571   : > { %v1762_v13 = vsel %vm494_vm1, %v1750_v3, %v1758_v60  ;;  %v1766_v15 = vsel %vm494_vm1, %v1758_v60, %v1750_v3  ;;  %1971 = vmatpush2.msra.mxu1 %v1649_v4  ;;  %v1607_v3 = vmul.f32 %v7562_v32, %v4622_v47  ;;  %v4352_v4 = vld [vmem:[%s7510_s2 + $0x198] sm:$0xff]  ;;  %v4354_v60 = vld [vmem:[%s7510_s2 + $0x1a8] sm:$0xff] }
 0x572   : > { %v1773_v61 = vmul.f32 %v1762_v13, %v4566_v20  ;;  %v1774_v14 = vmul.f32 %v1766_v15, %v4569_v21  ;;  %v1746_v17 = vpop.permute.xlu0 %1745  ;;  %1972 = vmatprep.subr.mxu1 %v1648_v52  ;;  %v4356_v52 = vld [vmem:[%s7510_s2 + $0x1b8] sm:$0xff]  ;;  %v4357_v13 = vld [vmem:[%s7510_s2 + $0x1c0] sm:$0xff]  ;;  %v4358_v15 = vld [vmem:[%s7510_s2 + $0x1c8] sm:$0xff] }
 0x573   : > { %1973 = vmatpush2.msra.mxu1 %v1647_v25  ;;  %v4355_v25 = vld [vmem:[%s7510_s2 + $0x1b0] sm:$0xff] }
 0x574   : > { %v1754_v37 = vpop.permute.xlu1 %1753  ;;  %1974 = vmatprep.subr.mxu1 %v1614_v59  ;;  %2037 = vmatprep.subr.mxu0 %v1774_v14 }
 0x575   : > { %v1760_v38 = vsel %vm494_vm1, %v1746_v17, %v1754_v37  ;;  %v1764_v49 = vsel %vm494_vm1, %v1754_v37, %v1746_v17  ;;  %1975 = vmatpush2.msra.mxu1 %v1613_v43  ;;  %2038 = vmatpush1.msra.mxu0 %v1773_v61 }
 0x576   : > { %v1769_v55 = vmul.f32 %v1760_v38, %v4566_v20  ;;  %v1770_v2 = vmul.f32 %v1764_v49, %v4569_v21  ;;  %1976 = vmatprep.subr.mxu1 %v1612_v18  ;;  %2039 = vmatprep.subr.mxu0 %v1772_v56  ;;  %v1744_v5 = vpop.permute.xlu0 %1743 }
 0x577   : > { %1977 = vmatpush2.msra.mxu1 %v1611_v19  ;;  %2040 = vmatpush1.msra.mxu0 %v1771_v7 }
 0x578   : > { %v1752_v39 = vpop.permute.xlu1 %1751  ;;  %1978 = vmatprep.subr.mxu1 %v1610_v36  ;;  %2041 = vmatprep.subr.mxu0 %v1770_v2 }
 0x579   : > { %v1759_v50 = vsel %vm494_vm1, %v1744_v5, %v1752_v39  ;;  %v1763_v48 = vsel %vm494_vm1, %v1752_v39, %v1744_v5  ;;  %1979 = vmatpush2.msra.mxu1 %v1609_v46  ;;  %2042 = vmatpush1.msra.mxu0 %v1769_v55 }
 0x57a   : > { %v1767_v41 = vmul.f32 %v1759_v50, %v4566_v20  ;;  %v1768_v16 = vmul.f32 %v1763_v48, %v4569_v21  ;;  %1980 = vmatprep.subr.mxu1 %v1608_v45 }
 0x57b   : > { %1981 = vmatpush2.msra.mxu1 %v1607_v3 }
 0x57c   : > { %1983 = vmatmul.mubr.f32.vlgmr.msra.gmra.mxu1 %v4346_v33  ;;  %2043 = vmatprep.subr.mxu0 %v1768_v16 }
 0x57d   : > { %2044 = vmatpush1.msra.mxu0 %v1767_v41  ;;  %1988 = vmatprep.mubr.f32.mxu1 %v4350_v53 }
 0x57e   : > { %4366 = vmatmul.mubr.msk.f32.vlgmr.msra.gmra.mxu0 %vm1902_vm11, %v4348_v31 }
 0x57f   : > { %2083 = vmatprep.mubr.f32.mxu0 %v7563_v29 }
 0x580   : > { %1989 = vmatmul.mubr.f32.gmra.mxu1 %v4349_v8 }
 0x581   : > { %1994 = vmatprep.mubr.f32.mxu1 %v4353_v24 }
 0x582   : > { %4367 = vmatmul.mubr.msk.f32.gmra.mxu0 %vm1902_vm11, %v4351_v34 }
 0x583   : > { %2089 = vmatprep.mubr.f32.mxu0 %v7563_v29  ;;  %v1880_v61 = vpop.permute.xlu0 %1879 }
 0x584   : > { %1995 = vmatmul.mubr.f32.gmra.mxu1 %v4352_v4 }
 0x585   : > { %2000 = vmatprep.mubr.f32.mxu1 %v4356_v52  ;;  %v1900_v30 = vpop.permute.xlu1 %1899 }
 0x586   : > { %4368 = vmatmul.mubr.msk.f32.gmra.mxu0 %vm1902_vm11, %v4354_v60 }
 0x587   : > { %2095 = vmatprep.mubr.f32.mxu0 %v7563_v29  ;;  %v1895_v48 = vpop.permute.xlu0 %1894 }
 0x588   : > { %2001 = vmatmul.mubr.f32.gmra.mxu1 %v4355_v25 }
 0x589   : > { %2006 = vmatprep.mubr.f32.mxu1 %v4359_v9 }
 0x58a   : > { %4369 = vmatmul.mubr.msk.f32.gmra.mxu0 %vm1902_vm11, %v4357_v13 }
 0x58b   : > { %2101 = vmatprep.mubr.f32.mxu0 %v7563_v29  ;;  %v1885_v34 = vpop.permute.xlu0 %1884 }
 0x58c   : > { %2007 = vmatmul.mubr.f32.gmra.mxu1 %v4358_v15  ;;  %v1890_v15 = vpop.permute.xlu1 %1889 }
 0x58d   : > { %2852 = vmatprep.mubr.f32.mxu1 %v7563_v29 }
 0x58e   : > { %4370 = vmatmul.mubr.msk.f32.gmra.mxu0 %vm1902_vm11, %v4360_v51 }
 0x63c   : > { %v1984_v14 = vpop.f32.mrf.mxu1 }
 0x63d   : > { %v1985_v17 = vadd.f32 %v1984_v14, %v1880_v61 }
 0x63e   : > { %v1986_v59 = vpop.f32.mrf.mxu1  ;;  %v2079_v43 = vpop.f32.mrf.mxu0 }
 0x63f   : > { %v1987_v56 = vadd.f32 %v1986_v59, %v1880_v61  ;;  %v2080_v37 = vadd.f32 %v2079_v43, %v1985_v17 }
 0x640   : > { %v1990_v57 = vpop.f32.mrf.mxu1  ;;  %v2081_v18 = vpop.f32.mrf.mxu0 }
 0x641   : > { %v5801_v1 = vmax.f32 %v2080_v37, 0.0  ;;  %v2082_v19 = vadd.f32 %v2081_v18, %v1987_v56  ;;  %v1991_v4 = vadd.f32 %v1990_v57, %v1885_v34 }
 0x642   : > { %v1992_v7 = vpop.f32.mrf.mxu1  ;;  %v2085_v38 = vpop.f32.mrf.mxu0 }
 0x643   : > { %7564 = vst [vmem:[#allocation13_spill] sm:$0xff] %v5801_v1  ;;  %v5803_v49 = vmax.f32 %v2082_v19, 0.0  ;;  %2288 = vrot.lane.b32.xlu1 %v5801_v1, %s4457_s28  ;;  %v1993_v52 = vadd.f32 %v1992_v7, %v1885_v34  ;;  %v2086_v60 = vadd.f32 %v2085_v38, %v1991_v4 }
 0x644   : > { %v1996_v55 = vpop.f32.mrf.mxu1  ;;  %v2087_v2 = vpop.f32.mrf.mxu0 }
 0x645   : > { %7565 = vst [vmem:[#allocation12_spill] sm:$0xff] %v5803_v49  ;;  %2298 = vrot.lane.b32.xlu0 %v5803_v49, %s4457_s28  ;;  %v2088_v25 = vadd.f32 %v2087_v2, %v1993_v52  ;;  %v5835_v9 = vmax.f32 %v2086_v60, 0.0  ;;  %v1997_v51 = vadd.f32 %v1996_v55, %v1890_v15 }
 0x646   : > { %v1998_v0 = vpop.f32.mrf.mxu1  ;;  %v2091_v36 = vpop.f32.mrf.mxu0 }
 0x647   : > { %2238 = vrot.lane.b32.xlu1 %v5801_v1, %s4458_s29  ;;  %7568 = vst [vmem:[#allocation9_spill] sm:$0xff] %v5835_v9  ;;  %v5839_v13 = vmax.f32 %v2088_v25, 0.0  ;;  %v1999_v61 = vadd.f32 %v1998_v0, %v1890_v15  ;;  %v2092_v14 = vadd.f32 %v2091_v36, %v1997_v51  ;;  %v4372_v15 = vld [vmem:[%s7510_s2 + $0x1e8] sm:$0xff] }
 0x648   : > { %v2002_v6 = vpop.f32.mrf.mxu1  ;;  %v2093_v46 = vpop.f32.mrf.mxu0  ;;  %2763 = vmatprep.mubr.f32.mxu0 %v4372_v15 }
 0x649   : > { %2248 = vrot.lane.b32.xlu0 %v5803_v49, %s4458_s29  ;;  %7569 = vst [vmem:[#allocation8_spill] sm:$0xff] %v5839_v13  ;;  %v2094_v17 = vadd.f32 %v2093_v46, %v1999_v61  ;;  %v5863_v59 = vmax.f32 %v2092_v14, 0.0  ;;  %v2003_v56 = vadd.f32 %v2002_v6, %v1895_v48 }
 0x64a   : > { %v2004_v5 = vpop.f32.mrf.mxu1  ;;  %v2097_v39 = vpop.f32.mrf.mxu0 }
 0x64b   : > { %2188 = vrot.lane.b32.xlu1 %v5801_v1, %s4459_s30  ;;  %7570 = vst [vmem:[#allocation14_spill] sm:$0xff] %v5863_v59  ;;  %v5867_v43 = vmax.f32 %v2094_v17, 0.0  ;;  %v2005_v37 = vadd.f32 %v2004_v5, %v1895_v48  ;;  %v2098_v57 = vadd.f32 %v2097_v39, %v2003_v56 }
 0x64c   : > { %v2008_v45 = vpop.f32.mrf.mxu1  ;;  %v2099_v50 = vpop.f32.mrf.mxu0 }
 0x64d   : > { %v2009_v32 = vadd.f32 %v2008_v45, %v1900_v30  ;;  %2198 = vrot.lane.b32.xlu0 %v5803_v49, %s4459_s30  ;;  %7571 = vst [vmem:[#allocation15_spill] sm:$0xff] %v5867_v43  ;;  %v2100_v18 = vadd.f32 %v2099_v50, %v2005_v37  ;;  %v5887_v19 = vmax.f32 %v2098_v57, 0.0  ;;  %v4386_v37 = vld [vmem:[%s7511_s3 + $0xb8] sm:$0xff] }
 0x64e   : > { %v2010_v3 = vpop.f32.mrf.mxu1  ;;  %v2103_v33 = vpop.f32.mrf.mxu0 }
 0x64f   : > { %v2011_v41 = vadd.f32 %v2010_v3, %v1900_v30  ;;  %v2104_v16 = vadd.f32 %v2103_v33, %v2009_v32  ;;  %2138 = vrot.lane.b32.xlu1 %v5801_v1, %s4461_s5  ;;  %7572 = vst [vmem:[#allocation16_spill] sm:$0xff] %v5887_v19  ;;  %v5891_v7 = vmax.f32 %v2100_v18, 0.0  ;;  %v4385_v18 = vld [vmem:[%s7511_s3 + $0xb0] sm:$0xff] }
 0x650   : > { %v2105_v53 = vpop.f32.mrf.mxu0 }
 0x651   : > { %v5819_v31 = vmax.f32 %v2104_v16, 0.0  ;;  %v2106_v8 = vadd.f32 %v2105_v53, %v2011_v41  ;;  %2148 = vrot.lane.b32.xlu0 %v5803_v49, %s4461_s5  ;;  %7573 = vst [vmem:[#allocation17_spill] sm:$0xff] %v5891_v7 }
 0x653   : > { %7566 = vst [vmem:[#allocation11_spill] sm:$0xff] %v5819_v31  ;;  %v5823_v24 = vmax.f32 %v2106_v8, 0.0  ;;  %2408 = vrot.lane.b32.xlu1 %v5801_v1, %s4455_s26 }
 0x655   : > { %7567 = vst [vmem:[#allocation10_spill] sm:$0xff] %v5823_v24  ;;  %2418 = vrot.lane.b32.xlu0 %v5803_v49, %s4455_s26 }
 0x657   : > { %2358 = vrot.lane.b32.xlu1 %v5801_v1, %s4456_s27 }
 0x659   : > { %2368 = vrot.lane.b32.xlu0 %v5803_v49, %s4456_s27 }
 0x65b   : > { %2508 = vrot.lane.b32.xlu1 %v5801_v1, %s4454_s25 }
 0x65d   : > { %2518 = vrot.lane.b32.xlu0 %v5803_v49, %s4454_s25 }
 0x65f   : > { %2240 = vrot.lane.b32.xlu1 %v5835_v9, %s4458_s29 }
 0x661   : > { %2250 = vrot.lane.b32.xlu0 %v5839_v13, %s4458_s29 }
 0x663   : > { %2190 = vrot.lane.b32.xlu1 %v5835_v9, %s4459_s30 }
 0x665   : > { %2200 = vrot.lane.b32.xlu0 %v5839_v13, %s4459_s30 }
 0x667   : > { %2140 = vrot.lane.b32.xlu1 %v5835_v9, %s4461_s5 }
 0x669   : > { %2150 = vrot.lane.b32.xlu0 %v5839_v13, %s4461_s5 }
 0x66b   : > { %2410 = vrot.lane.b32.xlu1 %v5835_v9, %s4455_s26 }
 0x66d   : > { %2420 = vrot.lane.b32.xlu0 %v5839_v13, %s4455_s26 }
 0x66f   : > { %2360 = vrot.lane.b32.xlu1 %v5835_v9, %s4456_s27 }
 0x671   : > { %2370 = vrot.lane.b32.xlu0 %v5839_v13, %s4456_s27 }
 0x673   : > { %2510 = vrot.lane.b32.xlu1 %v5835_v9, %s4454_s25 }
 0x675   : > { %2520 = vrot.lane.b32.xlu0 %v5839_v13, %s4454_s25 }
 0x677   : > { %2242 = vrot.lane.b32.xlu1 %v5863_v59, %s4458_s29 }
 0x679   : > { %2252 = vrot.lane.b32.xlu0 %v5867_v43, %s4458_s29 }
 0x67b   : > { %2192 = vrot.lane.b32.xlu1 %v5863_v59, %s4459_s30 }
 0x67d   : > { %2202 = vrot.lane.b32.xlu0 %v5867_v43, %s4459_s30 }
 0x67f   : > { %2142 = vrot.lane.b32.xlu1 %v5863_v59, %s4461_s5 }
 0x681   : > { %2152 = vrot.lane.b32.xlu0 %v5867_v43, %s4461_s5 }
 0x683   : > { %2362 = vrot.lane.b32.xlu1 %v5863_v59, %s4456_s27 }
 0x685   : > { %2372 = vrot.lane.b32.xlu0 %v5867_v43, %s4456_s27 }
 0x687   : > { %2512 = vrot.lane.b32.xlu1 %v5863_v59, %s4454_s25 }
 0x689   : > { %2522 = vrot.lane.b32.xlu0 %v5867_v43, %s4454_s25 }
 0x68b   : > { %2244 = vrot.lane.b32.xlu1 %v5887_v19, %s4458_s29 }
 0x68d   : > { %2254 = vrot.lane.b32.xlu0 %v5891_v7, %s4458_s29 }
 0x68f   : > { %2194 = vrot.lane.b32.xlu1 %v5887_v19, %s4459_s30 }
 0x691   : > { %2204 = vrot.lane.b32.xlu0 %v5891_v7, %s4459_s30 }
 0x693   : > { %2144 = vrot.lane.b32.xlu1 %v5887_v19, %s4461_s5 }
 0x695   : > { %2154 = vrot.lane.b32.xlu0 %v5891_v7, %s4461_s5 }
 0x697   : > { %2364 = vrot.lane.b32.xlu1 %v5887_v19, %s4456_s27 }
 0x699   : > { %2374 = vrot.lane.b32.xlu0 %v5891_v7, %s4456_s27 }
 0x69b   : > { %2514 = vrot.lane.b32.xlu1 %v5887_v19, %s4454_s25 }
 0x69d   : > { %2524 = vrot.lane.b32.xlu0 %v5891_v7, %s4454_s25 }
 0x69f   : > { %2246 = vrot.lane.b32.xlu1 %v5819_v31, %s4458_s29 }
 0x6a1   : > { %2256 = vrot.lane.b32.xlu0 %v5823_v24, %s4458_s29 }
 0x6a3   : > { %2464 = vrot.lane.b32.xlu1 %v5887_v19, %s4453_s24 }
 0x6a5   : > { %2474 = vrot.lane.b32.xlu0 %v5891_v7, %s4453_s24 }
 0x6a7   : > { %2196 = vrot.lane.b32.xlu1 %v5819_v31, %s4459_s30 }
 0x6a9   : > { %2472 = vrot.lane.b32.xlu0 %v5867_v43, %s4453_s24 }
 0x6ab   : > { %2146 = vrot.lane.b32.xlu1 %v5819_v31, %s4461_s5 }
 0x6ad   : > { %2206 = vrot.lane.b32.xlu0 %v5823_v24, %s4459_s30 }
 0x6af   : > { %2366 = vrot.lane.b32.xlu1 %v5819_v31, %s4456_s27 }
 0x6b1   : > { %2470 = vrot.lane.b32.xlu0 %v5839_v13, %s4453_s24 }
 0x6b3   : > { %2516 = vrot.lane.b32.xlu1 %v5819_v31, %s4454_s25 }
 0x6b5   : > { %2156 = vrot.lane.b32.xlu0 %v5823_v24, %s4461_s5  ;;  %v2289_v38 = vpop.permute.xlu1 %2288 }
 0x6b7   : > { %v2299_v55 = vpop.permute.xlu0 %2298  ;;  %2466 = vrot.lane.b32.xlu1 %v5819_v31, %s4453_s24 }
 0x6b8   : > { %v2308_v2 = vsel %vm391_vm4, %v2289_v38, %v2299_v55  ;;  %v2313_v0 = vsel %vm391_vm4, %v2299_v55, %v2289_v38  ;;  %v4384_v55 = vld [vmem:[%s7511_s3 + $0xa8] sm:$0xff] }
 0x6b9   : > { %v2318_v36 = vmul.f32 %v2313_v0, %v4640_v58  ;;  %v2319_v6 = vmul.f32 %v2308_v2, %v4634_v54  ;;  %2304 = vrot.lane.b32.xlu0 %v5891_v7, %s4457_s28  ;;  %v5947_v46 = vpop.permute.xlu1 %2238  ;;  %v4383_v0 = vld [vmem:[%s7511_s3 + $0xa0] sm:$0xff] }
 0x6bb   : > { %v5949_v5 = vpop.permute.xlu0 %2248  ;;  %2462 = vrot.lane.b32.xlu1 %v5863_v59, %s4453_s24  ;;  %2699 = vmatprep.subr.mxu0 %v2319_v6 }
 0x6bc   : > { %2700 = vmatpush1.msra.mxu0 %v2318_v36 }
 0x6bd   : > { %2468 = vrot.lane.b32.xlu0 %v5803_v49, %s4453_s24  ;;  %v5955_v39 = vpop.permute.xlu1 %2188 }
 0x6bf   : > { %v5957_v30 = vpop.permute.xlu0 %2198  ;;  %2296 = vrot.lane.b32.xlu1 %v5819_v31, %s4457_s28 }
 0x6c1   : > { %2302 = vrot.lane.b32.xlu0 %v5867_v43, %s4457_s28  ;;  %v5963_v45 = vpop.permute.xlu1 %2138 }
 0x6c3   : > { %v5965_v50 = vpop.permute.xlu0 %2148  ;;  %2460 = vrot.lane.b32.xlu1 %v5835_v9, %s4453_s24 }
 0x6c5   : > { %2376 = vrot.lane.b32.xlu0 %v5823_v24, %s4456_s27  ;;  %v5971_v48 = vpop.permute.xlu1 %2408 }
 0x6c7   : > { %v5973_v32 = vpop.permute.xlu0 %2418  ;;  %2294 = vrot.lane.b32.xlu1 %v5887_v19, %s4457_s28 }
 0x6c9   : > { %2526 = vrot.lane.b32.xlu0 %v5823_v24, %s4454_s25  ;;  %v5979_v3 = vpop.permute.xlu1 %2358 }
 0x6cb   : > { %v5981_v33 = vpop.permute.xlu0 %2368  ;;  %2458 = vrot.lane.b32.xlu1 %v5801_v1, %s4453_s24 }
 0x6cd   : > { %2300 = vrot.lane.b32.xlu0 %v5839_v13, %s4457_s28  ;;  %v2509_v41 = vpop.permute.xlu1 %2508 }
 0x6cf   : > { %v2519_v16 = vpop.permute.xlu0 %2518  ;;  %2292 = vrot.lane.b32.xlu1 %v5863_v59, %s4457_s28 }
 0x6d0   : > { %v2528_v53 = vsel %vm494_vm1, %v2509_v41, %v2519_v16  ;;  %v2533_v8 = vsel %vm494_vm1, %v2519_v16, %v2509_v41 }
 0x6d1   : > { %v5994_v34 = vmul.f32 %v2528_v53, %v4566_v20  ;;  %v5997_v4 = vmul.f32 %v2533_v8, %v4569_v21  ;;  %2476 = vrot.lane.b32.xlu0 %v5823_v24, %s4453_s24  ;;  %v6001_v52 = vpop.permute.xlu1 %2240 }
 0x6d3   : > { %7574 = vst [vmem:[#allocation18_spill] sm:$0xff] %v5994_v34  ;;  %7575 = vst [vmem:[#allocation19_spill] sm:$0xff] %v5997_v4  ;;  %v6003_v60 = vpop.permute.xlu0 %2250  ;;  %2416 = vrot.lane.b32.xlu1 %v5819_v31, %s4455_s26 }
 0x6d5   : > { %2424 = vrot.lane.b32.xlu0 %v5891_v7, %s4455_s26  ;;  %v6009_v25 = vpop.permute.xlu1 %2190 }
 0x6d7   : > { %v6014_v51 = vpop.permute.xlu0 %2200  ;;  %2290 = vrot.lane.b32.xlu1 %v5835_v9, %s4457_s28 }
 0x6d9   : > { %2306 = vrot.lane.b32.xlu0 %v5823_v24, %s4457_s28  ;;  %v6020_v61 = vpop.permute.xlu1 %2140 }
 0x6db   : > { %v6022_v14 = vpop.permute.xlu0 %2150  ;;  %2414 = vrot.lane.b32.xlu1 %v5887_v19, %s4455_s26 }
 0x6dd   : > { %2426 = vrot.lane.b32.xlu0 %v5823_v24, %s4455_s26  ;;  %v6028_v17 = vpop.permute.xlu1 %2410 }
 0x6df   : > { %v6030_v56 = vpop.permute.xlu0 %2420  ;;  %2412 = vrot.lane.b32.xlu1 %v5863_v59, %s4455_s26 }
 0x6e1   : > { %2422 = vrot.lane.b32.xlu0 %v5867_v43, %s4455_s26  ;;  %v6039_v57 = vpop.permute.xlu1 %2360 }
 0x6e3   : > { %v6044_v38 = vpop.permute.xlu0 %2370  ;;  %2683 = vperm.xlu1 %4442, %v4386_v37  }
 0x6e5   : > { %2678 = vperm.xlu0 %4441, %v4385_v18   ;;  %v2511_v2 = vpop.permute.xlu1 %2510 }
 0x6e7   : > { %v2521_v36 = vpop.permute.xlu0 %2520  ;;  %2673 = vperm.xlu1 %4442, %v4384_v55  }
 0x6e8   : > { %v2529_v6 = vsel %vm494_vm1, %v2511_v2, %v2521_v36  ;;  %v2534_v41 = vsel %vm494_vm1, %v2521_v36, %v2511_v2 }
 0x6e9   : > { %v6057_v16 = vmul.f32 %v2529_v6, %v4566_v20  ;;  %v6060_v53 = vmul.f32 %v2534_v41, %v4569_v21  ;;  %2668 = vperm.xlu0 %4441, %v4383_v0   ;;  %v2243_v8 = vpop.permute.xlu1 %2242 }
 0x6eb   : > { %7576 = vst [vmem:[#allocation20_spill] sm:$0xff] %v6057_v16  ;;  %7577 = vst [vmem:[#allocation21_spill] sm:$0xff] %v6060_v53  ;;  %v2253_v15 = vpop.permute.xlu0 %2252 }
 0x6ec   : > { %v2260_v42 = vsel %vm369_vm5, %v2243_v8, %v2253_v15 }
 0x6ed   : > { %v6062_v37 = vpop.permute.xlu1 %2192 }
 0x6ef   : > { %v6064_v18 = vpop.permute.xlu0 %2202 }
 0x6f1   : > { %v6066_v55 = vpop.permute.xlu1 %2142 }
 0x6f3   : > { %v6068_v29 = vpop.permute.xlu0 %2152 }
 0x6f5   : > { %v6070_v54 = vpop.permute.xlu1 %2362 }
 0x6f7   : > { %v6072_v2 = vpop.permute.xlu0 %2372 }
 0x6f9   : > { %v2513_v36 = vpop.permute.xlu1 %2512 }
 0x6fb   : > { %v2523_v6 = vpop.permute.xlu0 %2522 }
 0x6fc   : > { %v2530_v41 = vsel %vm494_vm1, %v2513_v36, %v2523_v6  ;;  %v2535_v0 = vsel %vm494_vm1, %v2523_v6, %v2513_v36 }
 0x6fd   : > { %v6079_v58 = vmul.f32 %v2530_v41, %v4566_v20  ;;  %v6082_v49 = vmul.f32 %v2535_v0, %v4569_v21  ;;  %v2245_v9 = vpop.permute.xlu1 %2244 }
 0x6ff   : > { %7578 = vst [vmem:[#allocation22_spill] sm:$0xff] %v6079_v58  ;;  %7579 = vst [vmem:[#allocation23_spill] sm:$0xff] %v6082_v49  ;;  %v2255_v1 = vpop.permute.xlu0 %2254  ;;  %v2265_v49 = vsel %vm369_vm5, %v2253_v15, %v2243_v8 }
 0x700   : > { %v2261_v47 = vsel %vm369_vm5, %v2245_v9, %v2255_v1 }
 0x701   : > { %v2195_v13 = vpop.permute.xlu1 %2194 }
 0x703   : > { %v2205_v59 = vpop.permute.xlu0 %2204 }
 0x705   : > { %v6084_v34 = vpop.permute.xlu1 %2144 }
 0x707   : > { %v6086_v43 = vpop.permute.xlu0 %2154 }
 0x709   : > { %v6088_v4 = vpop.permute.xlu1 %2364 }
 0x70b   : > { %v6090_v19 = vpop.permute.xlu0 %2374 }
 0x70d   : > { %v2515_v16 = vpop.permute.xlu1 %2514 }
 0x70f   : > { %v2525_v36 = vpop.permute.xlu0 %2524 }
 0x710   : > { %v2531_v6 = vsel %vm494_vm1, %v2515_v16, %v2525_v36  ;;  %v2536_v41 = vsel %vm494_vm1, %v2525_v36, %v2515_v16  ;;  %v2266_v16 = vsel %vm369_vm5, %v2255_v1, %v2245_v9  ;;  %v2259_v1 = vsel %vm369_vm5, %v6001_v52, %v6003_v60 }
 0x711   : > { %v6097_v0 = vmul.f32 %v2531_v6, %v4566_v20  ;;  %v6100_v7 = vmul.f32 %v2536_v41, %v4569_v21  ;;  %v2247_v53 = vpop.permute.xlu1 %2246  ;;  %v2273_v9 = vmul.f32 %v2260_v42, %v4653_v63  ;;  %v2263_v42 = vsel %vm369_vm5, %v5949_v5, %v5947_v46 }
 0x713   : > { %7580 = vst [vmem:[#allocation24_spill] sm:$0xff] %v6097_v0  ;;  %7581 = vst [vmem:[#allocation25_spill] sm:$0xff] %v6100_v7  ;;  %v2257_v31 = vpop.permute.xlu0 %2256  ;;  %v2275_v0 = vmul.f32 %v2261_v47, %v4653_v63  ;;  %v2264_v47 = vsel %vm369_vm5, %v6003_v60, %v6001_v52  ;;  %v2271_v52 = vmul.f32 %v2259_v1, %v4653_v63 }
 0x714   : > { %v2262_v58 = vsel %vm369_vm5, %v2247_v53, %v2257_v31  ;;  %v2267_v24 = vsel %vm369_vm5, %v2257_v31, %v2247_v53  ;;  %v2274_v31 = vmul.f32 %v2266_v16, %v4650_v62  ;;  %v2272_v16 = vmul.f32 %v2265_v49, %v4650_v62 }
 0x715   : > { %v2276_v36 = vmul.f32 %v2267_v24, %v4650_v62  ;;  %v2277_v6 = vmul.f32 %v2262_v58, %v4653_v63  ;;  %v2465_v41 = vpop.permute.xlu1 %2464  ;;  %v2268_v49 = vmul.f32 %v2263_v42, %v4650_v62  ;;  %v2214_v42 = vsel %vm347_vm6, %v6014_v51, %v6009_v25 }
 0x717   : > { %v2475_v7 = vpop.permute.xlu0 %2474  ;;  %2701 = vmatprep.subr.mxu0 %v2277_v6 }
 0x718   : > { %v2481_v58 = vsel %vm472_vm0, %v2465_v41, %v2475_v7  ;;  %v2486_v24 = vsel %vm472_vm0, %v2475_v7, %v2465_v41  ;;  %2702 = vmatpush1.msra.mxu0 %v2276_v36  ;;  %v2258_v7 = vsel %vm369_vm5, %v5947_v46, %v5949_v5  ;;  %v2211_v46 = vsel %vm347_vm6, %v2195_v13, %v2205_v59 }
 0x719   : > { %v6132_v53 = vmul.f32 %v2481_v58, %v4572_v22  ;;  %v6135_v8 = vmul.f32 %v2486_v24, %v4575_v23  ;;  %v2197_v15 = vpop.permute.xlu1 %2196  ;;  %2703 = vmatprep.subr.mxu0 %v2275_v0  ;;  %v2270_v0 = vmul.f32 %v2264_v47, %v4650_v62  ;;  %v2269_v36 = vmul.f32 %v2258_v7, %v4653_v63 }
 0x71a   : > { %2704 = vmatpush1.msra.mxu0 %v2274_v31  ;;  %v2216_v31 = vsel %vm347_vm6, %v2205_v59, %v2195_v13  ;;  %v2225_v7 = vmul.f32 %v2211_v46, %v4671_v11  ;;  %v2209_v13 = vsel %vm347_vm6, %v6009_v25, %v6014_v51 }
 0x71b   : > { %v6147_v60 = vpop.permute.xlu0 %2472  ;;  %2705 = vmatprep.subr.mxu0 %v2273_v9  ;;  %v2210_v9 = vsel %vm347_vm6, %v6062_v37, %v6064_v18  ;;  %v2224_v59 = vmul.f32 %v2216_v31, %v4668_v10  ;;  %v2221_v25 = vmul.f32 %v2209_v13, %v4671_v11  ;;  %v2166_v31 = vsel %vm325_vm7, %v6086_v43, %v6084_v34 }
 0x71c   : > { %2706 = vmatpush1.msra.mxu0 %v2272_v16  ;;  %v2174_v13 = vmul.f32 %v2166_v31, %v4684_v26 }
 0x71d   : > { %v2147_v6 = vpop.permute.xlu1 %2146  ;;  %2707 = vmatprep.subr.mxu0 %v2271_v52  ;;  %v2208_v52 = vsel %vm347_vm6, %v5955_v39, %v5957_v30 }
 0x71e   : > { %2708 = vmatpush1.msra.mxu0 %v2270_v0  ;;  %v2219_v46 = vmul.f32 %v2208_v52, %v4671_v11 }
 0x71f   : > { %v2207_v41 = vpop.permute.xlu0 %2206  ;;  %2709 = vmatprep.subr.mxu0 %v2269_v36  ;;  %v2213_v36 = vsel %vm347_vm6, %v5957_v30, %v5955_v39  ;;  %v2161_v30 = vsel %vm325_vm7, %v6084_v34, %v6086_v43 }
 0x720   : > { %v2212_v5 = vsel %vm347_vm6, %v2197_v15, %v2207_v41  ;;  %v2217_v1 = vsel %vm347_vm6, %v2207_v41, %v2197_v15  ;;  %2710 = vmatpush1.msra.mxu0 %v2268_v49  ;;  %v2215_v15 = vsel %vm347_vm6, %v6064_v18, %v6062_v37  ;;  %v2223_v37 = vmul.f32 %v2210_v9, %v4671_v11 }
 0x721   : > { %v2226_v58 = vmul.f32 %v2217_v1, %v4668_v10  ;;  %v2227_v24 = vmul.f32 %v2212_v5, %v4671_v11  ;;  %v6162_v47 = vpop.permute.xlu1 %2366  ;;  %v2222_v0 = vmul.f32 %v2215_v15, %v4668_v10  ;;  %v2220_v49 = vmul.f32 %v2214_v42, %v4668_v10 }
 0x722   : > { %v2218_v39 = vmul.f32 %v2213_v36, %v4668_v10  ;;  %v2165_v15 = vsel %vm325_vm7, %v6068_v29, %v6066_v55  ;;  %v2175_v43 = vmul.f32 %v2161_v30, %v4687_v28 }
 0x723   : > { %v6173_v16 = vpop.permute.xlu0 %2470  ;;  %2711 = vmatprep.subr.mxu0 %v2227_v24  ;;  %v2172_v36 = vmul.f32 %v2165_v15, %v4684_v26 }
 0x724   : > { %2712 = vmatpush1.msra.mxu0 %v2226_v58 }
 0x725   : > { %v6185_v18 = vpop.permute.xlu1 %2516  ;;  %2713 = vmatprep.subr.mxu0 %v2225_v7  ;;  %v2159_v7 = vsel %vm325_vm7, %v6020_v61, %v6022_v14 }
 0x726   : > { %2714 = vmatpush1.msra.mxu0 %v2224_v59 }
 0x727   : > { %v2157_v51 = vpop.permute.xlu0 %2156  ;;  %2715 = vmatprep.subr.mxu0 %v2223_v37 }
 0x728   : > { %v2162_v41 = vsel %vm325_vm7, %v2147_v6, %v2157_v51  ;;  %2716 = vmatpush1.msra.mxu0 %v2222_v0  ;;  %v2167_v5 = vsel %vm325_vm7, %v2157_v51, %v2147_v6  ;;  %v2160_v6 = vsel %vm325_vm7, %v6066_v55, %v6068_v29  ;;  %v2164_v29 = vsel %vm325_vm7, %v6022_v14, %v6020_v61 }
 0x729   : > { %v6203_v1 = vpop.permute.xlu1 %2466  ;;  %2717 = vmatprep.subr.mxu0 %v2221_v25  ;;  %v2177_v58 = vmul.f32 %v2162_v41, %v4687_v28  ;;  %v2176_v9 = vmul.f32 %v2167_v5, %v4684_v26  ;;  %v2173_v55 = vmul.f32 %v2160_v6, %v4687_v28  ;;  %v2163_v61 = vsel %vm325_vm7, %v5965_v50, %v5963_v45 }
 0x72a   : > { %2718 = vmatpush1.msra.mxu0 %v2220_v49  ;;  %v2171_v14 = vmul.f32 %v2159_v7, %v4687_v28  ;;  %v2170_v51 = vmul.f32 %v2164_v29, %v4684_v26  ;;  %v2434_v49 = vsel %vm450_vm2, %v6030_v56, %v6028_v17  ;;  %v2433_v5 = vsel %vm450_vm2, %v5973_v32, %v5971_v48 }
 0x72b   : > { %v6215_v24 = vpop.permute.xlu0 %2304  ;;  %2719 = vmatprep.subr.mxu0 %v2219_v46  ;;  %v2168_v46 = vmul.f32 %v2163_v61, %v4684_v26  ;;  %v2441_v30 = vmul.f32 %v2434_v49, %v4581_v27  ;;  %v2439_v6 = vmul.f32 %v2433_v5, %v4581_v27  ;;  %v2381_v7 = vsel %vm428_vm3, %v6088_v4, %v6090_v19 }
 0x72c   : > { %2720 = vmatpush1.msra.mxu0 %v2218_v39  ;;  %v2428_v39 = vsel %vm450_vm2, %v5971_v48, %v5973_v32  ;;  %v2385_v29 = vsel %vm428_vm3, %v6072_v2, %v6070_v54 }
 0x72d   : > { %v2463_v34 = vpop.permute.xlu1 %2462  ;;  %2721 = vmatprep.subr.mxu0 %v2177_v58  ;;  %v2438_v15 = vmul.f32 %v2428_v39, %v4599_v35 }
 0x72e   : > { %v2480_v59 = vsel %vm472_vm0, %v2463_v34, %v6147_v60  ;;  %v2485_v42 = vsel %vm472_vm0, %v6147_v60, %v2463_v34  ;;  %2722 = vmatpush1.msra.mxu0 %v2176_v9  ;;  %v2158_v60 = vsel %vm325_vm7, %v5963_v45, %v5965_v50  ;;  %v2429_v45 = vsel %vm450_vm2, %v6028_v17, %v6030_v56 }
 0x72f   : > { %v6244_v37 = vmul.f32 %v2480_v59, %v4572_v22  ;;  %v6247_v52 = vmul.f32 %v2485_v42, %v4575_v23  ;;  %v6249_v0 = vpop.permute.xlu0 %2468  ;;  %2723 = vmatprep.subr.mxu0 %v2175_v43  ;;  %v2169_v41 = vmul.f32 %v2158_v60, %v4687_v28  ;;  %v2440_v17 = vmul.f32 %v2429_v45, %v4599_v35 }
 0x730   : > { %2724 = vmatpush1.msra.mxu0 %v2174_v13  ;;  %v2386_v43 = vsel %vm428_vm3, %v6090_v19, %v6088_v4  ;;  %v2394_v60 = vmul.f32 %v2381_v7, %v4614_v44 }
 0x731   : > { %v6261_v25 = vpop.permute.xlu1 %2296  ;;  %2725 = vmatprep.subr.mxu0 %v2173_v55  ;;  %v2395_v19 = vmul.f32 %v2386_v43, %v4607_v40  ;;  %v2384_v55 = vsel %vm428_vm3, %v6044_v38, %v6039_v57  ;;  %v7587_v43 = vld [vmem:[#allocation22_spill] sm:$0xff] }
 0x732   : > { %2726 = vmatpush1.msra.mxu0 %v2172_v36 }
 0x733   : > { %v6273_v50 = vpop.permute.xlu0 %2302  ;;  %2727 = vmatprep.subr.mxu0 %v2171_v14 }
 0x734   : > { %2728 = vmatpush1.msra.mxu0 %v2170_v51 }
 0x735   : > { %v2461_v31 = vpop.permute.xlu1 %2460  ;;  %2729 = vmatprep.subr.mxu0 %v2169_v41  ;;  %v2383_v41 = vsel %vm428_vm3, %v5981_v33, %v5979_v3 }
 0x736   : > { %v2479_v56 = vsel %vm472_vm0, %v2461_v31, %v6173_v16  ;;  %v2484_v58 = vsel %vm472_vm0, %v6173_v16, %v2461_v31  ;;  %2730 = vmatpush1.msra.mxu0 %v2168_v46  ;;  %v2389_v5 = vmul.f32 %v2383_v41, %v4607_v40  ;;  %v7597_v41 = vld [vmem:[#allocation14_spill] sm:$0xff] }
 0x737   : > { %v6294_v9 = vmul.f32 %v2479_v56, %v4572_v22  ;;  %v6297_v48 = vmul.f32 %v2484_v58, %v4575_v23  ;;  %v2377_v32 = vpop.permute.xlu0 %2376  ;;  %2731 = vmatprep.subr.mxu0 %v2441_v30  ;;  %v7582_v30 = vld [vmem:[#allocation25_spill] sm:$0xff]  ;;  %v7585_v56 = vld [vmem:[#allocation4_spill] sm:$0xff]  ;;  %v7586_v58 = vld [vmem:[#allocation10_spill] sm:$0xff] }
 0x738   : > { %v2382_v16 = vsel %vm428_vm3, %v6162_v47, %v2377_v32  ;;  %v2387_v34 = vsel %vm428_vm3, %v2377_v32, %v6162_v47  ;;  %2732 = vmatpush2.msra.mxu0 %v2440_v17  ;;  %v2380_v47 = vsel %vm428_vm3, %v6070_v54, %v6072_v2  ;;  %v2379_v54 = vsel %vm428_vm3, %v6039_v57, %v6044_v38  ;;  %v7584_v17 = vld [vmem:[#allocation23_spill] sm:$0xff] }
 0x739   : > { %v2396_v13 = vmul.f32 %v2382_v16, %v4614_v44  ;;  %v2397_v59 = vmul.f32 %v2387_v34, %v4607_v40  ;;  %v6316_v42 = vpop.permute.xlu1 %2294  ;;  %2733 = vmatprep.subr.mxu0 %v2439_v6  ;;  %v2393_v2 = vmul.f32 %v2385_v29, %v4607_v40  ;;  %v2378_v57 = vsel %vm428_vm3, %v5979_v3, %v5981_v33  ;;  %v7583_v3 = vld [vmem:[#allocation24_spill] sm:$0xff]  ;;  %v7588_v16 = vld [vmem:[#allocation5_spill] sm:$0xff]  ;;  %v7589_v34 = vld [vmem:[#allocation11_spill] sm:$0xff] }
 0x73a   : > { %2734 = vmatpush2.msra.mxu0 %v2438_v15  ;;  %v2391_v38 = vmul.f32 %v2384_v55, %v4607_v40  ;;  %v2390_v46 = vmul.f32 %v2379_v54, %v4614_v44  ;;  %v2388_v31 = vmul.f32 %v2378_v57, %v4614_v44  ;;  %v2347_v6 = vmul.f32 %v7586_v58, %v7585_v56  ;;  %v7592_v55 = vld [vmem:[#allocation20_spill] sm:$0xff]  ;;  %v7595_v54 = vld [vmem:[#allocation15_spill] sm:$0xff] }
 0x73b   : > { %v2527_v4 = vpop.permute.xlu0 %2526  ;;  %2735 = vmatprep.subr.mxu0 %v2397_v59  ;;  %v2346_v7 = vmul.f32 %v7589_v34, %v7588_v16 }
 0x73c   : > { %v2532_v36 = vsel %vm494_vm1, %v6185_v18, %v2527_v4  ;;  %v2537_v61 = vsel %vm494_vm1, %v2527_v4, %v6185_v18  ;;  %2736 = vmatpush2.msra.mxu0 %v2396_v13  ;;  %v2392_v18 = vmul.f32 %v2380_v47, %v4614_v44  ;;  %v7590_v47 = vld [vmem:[#allocation21_spill] sm:$0xff] }
 0x73d   : > { %v2546_v14 = vmul.f32 %v2532_v36, %v4566_v20  ;;  %v2547_v51 = vmul.f32 %v2537_v61, %v4569_v21  ;;  %v2459_v49 = vpop.permute.xlu1 %2458  ;;  %2737 = vmatprep.subr.mxu0 %v2395_v19  ;;  %v7591_v19 = vld [vmem:[#allocation17_spill] sm:$0xff]  ;;  %v7594_v61 = vld [vmem:[#allocation19_spill] sm:$0xff] }
 0x73e   : > { %2738 = vmatpush2.msra.mxu0 %v2394_v60  ;;  %v2345_v4 = vmul.f32 %v7591_v19, %v7585_v56 }
 0x73f   : > { %v6355_v45 = vpop.permute.xlu0 %2300  ;;  %2739 = vmatprep.subr.mxu0 %v2393_v2  ;;  %2794 = vmatprep.subr.mxu1 %v2547_v51  ;;  %v2343_v2 = vmul.f32 %v7595_v54, %v7585_v56  ;;  %v7596_v51 = vld [vmem:[#allocation18_spill] sm:$0xff] }
 0x740   : > { %2740 = vmatpush2.msra.mxu0 %v2392_v18  ;;  %2795 = vmatpush1.msra.mxu1 %v2546_v14  ;;  %v2316_v14 = vsel %vm391_vm4, %v6215_v24, %v6316_v42  ;;  %v2342_v18 = vmul.f32 %v7597_v41, %v7588_v16  ;;  %v4371_v41 = vld [vmem:[%s7510_s2 + $0x1e0] sm:$0xff] }
 0x741   : > { %v2293_v39 = vpop.permute.xlu1 %2292  ;;  %2741 = vmatprep.subr.mxu0 %v2391_v38  ;;  %2796 = vmatprep.subr.mxu1 %v7582_v30  ;;  %v7598_v38 = vld [vmem:[#allocation8_spill] sm:$0xff] }
 0x742   : > { %2742 = vmatpush2.msra.mxu0 %v2390_v46  ;;  %2797 = vmatpush1.msra.mxu1 %v7583_v3  ;;  %v2341_v46 = vmul.f32 %v7598_v38, %v7585_v56  ;;  %v7600_v3 = vld [vmem:[#allocation9_spill] sm:$0xff]  ;;  %v4375_v38 = vld [vmem:[%s7510_s2 + $0x200] sm:$0xff] }
 0x743   : > { %v2477_v33 = vpop.permute.xlu0 %2476  ;;  %2743 = vmatprep.subr.mxu0 %v2389_v5  ;;  %2798 = vmatprep.subr.mxu1 %v7584_v17  ;;  %v7599_v5 = vld [vmem:[#allocation13_spill] sm:$0xff]  ;;  %v7601_v17 = vld [vmem:[#allocation12_spill] sm:$0xff] }
 0x744   : > { %v2482_v32 = vsel %vm472_vm0, %v6203_v1, %v2477_v33  ;;  %v2487_v15 = vsel %vm472_vm0, %v2477_v33, %v6203_v1  ;;  %2744 = vmatpush2.msra.mxu0 %v2388_v31  ;;  %2799 = vmatpush1.msra.mxu1 %v7587_v43  ;;  %v7593_v1 = vld [vmem:[#allocation16_spill] sm:$0xff]  ;;  %v2338_v30 = vmul.f32 %v7599_v5, %v7588_v16  ;;  %v4374_v5 = vld [vmem:[%s7510_s2 + $0x1f8] sm:$0xff] }
 0x745   : > { %v2496_v13 = vmul.f32 %v2482_v32, %v4572_v22  ;;  %v2497_v59 = vmul.f32 %v2487_v15, %v4575_v23  ;;  %v2417_v29 = vpop.permute.xlu1 %2416  ;;  %2745 = vmatprep.subr.mxu0 %v2347_v6  ;;  %2800 = vmatprep.subr.mxu1 %v7590_v47  ;;  %v2344_v60 = vmul.f32 %v7593_v1, %v7588_v16  ;;  %v7602_v6 = vld [vmem:[#allocation7_spill] sm:$0xff] }
 0x746   : > { %2746 = vmatpush2.msra.mxu0 %v2346_v7  ;;  %2801 = vmatpush1.msra.mxu1 %v7592_v55  ;;  %v2311_v31 = vsel %vm391_vm4, %v6316_v42, %v6215_v24  ;;  %v2340_v33 = vmul.f32 %v7600_v3, %v7588_v16  ;;  %v2339_v58 = vmul.f32 %v7601_v17, %v7585_v56  ;;  %v4376_v3 = vld [vmem:[%s7510_s2 + $0x208] sm:$0xff]  ;;  %v4381_v17 = vld [vmem:[%s7510_s2 + $0x230] sm:$0xff] }
 0x747   : > { %v2425_v36 = vpop.permute.xlu0 %2424  ;;  %2747 = vmatprep.subr.mxu0 %v2345_v4  ;;  %2802 = vmatprep.subr.mxu1 %v7594_v61  ;;  %v2324_v32 = vmul.f32 %v2316_v14, %v7602_v6  ;;  %v2478_v15 = vsel %vm472_vm0, %v2459_v49, %v6249_v0  ;;  %v2483_v43 = vsel %vm472_vm0, %v6249_v0, %v2459_v49  ;;  %v7603_v0 = vld [vmem:[#allocation6_spill] sm:$0xff] }
 0x748   : > { %2748 = vmatpush2.msra.mxu0 %v2344_v60  ;;  %2803 = vmatpush1.msra.mxu1 %v7596_v51  ;;  %v2310_v24 = vsel %vm391_vm4, %v2293_v39, %v6273_v50  ;;  %v2325_v49 = vmul.f32 %v2311_v31, %v7603_v0  ;;  %v2488_v47 = vmul.f32 %v2478_v15, %v4572_v22  ;;  %v7604_v31 = vmov 0.0   ;;  %v4382_v15 = vld [vmem:[%s7510_s2 + $0x238] sm:$0xff] }
 0x749   : > { %v2291_v57 = vpop.permute.xlu1 %2290  ;;  %2749 = vmatprep.subr.mxu0 %v2343_v2  ;;  %2804 = vmatprep.subr.mxu1 %v2497_v59  ;;  %v2489_v19 = vmul.f32 %v2483_v43, %v4575_v23 }
 0x74a   : > { %2750 = vmatpush2.msra.mxu0 %v2342_v18  ;;  %2805 = vmatpush1.msra.mxu1 %v2496_v13  ;;  %v2309_v4 = vsel %vm391_vm4, %v2291_v57, %v6355_v45 }
 0x74b   : > { %v2307_v34 = vpop.permute.xlu0 %2306  ;;  %2751 = vmatprep.subr.mxu0 %v2341_v46  ;;  %2806 = vmatprep.subr.mxu1 %v6135_v8  ;;  %v4373_v46 = vld [vmem:[%s7510_s2 + $0x1f0] sm:$0xff] }
 0x74c   : > { %v2312_v42 = vsel %vm391_vm4, %v6261_v25, %v2307_v34  ;;  %v2317_v7 = vsel %vm391_vm4, %v2307_v34, %v6261_v25  ;;  %2752 = vmatpush2.msra.mxu0 %v2340_v33  ;;  %2807 = vmatpush1.msra.mxu1 %v6132_v53  ;;  %v2315_v25 = vsel %vm391_vm4, %v6273_v50, %v2293_v39  ;;  %v4377_v33 = vld [vmem:[%s7510_s2 + $0x210] sm:$0xff] }
 0x74d   : > { %v2326_v13 = vmul.f32 %v2317_v7, %v7602_v6  ;;  %v2327_v8 = vmul.f32 %v2312_v42, %v7603_v0  ;;  %v2415_v59 = vpop.permute.xlu1 %2414  ;;  %2753 = vmatprep.subr.mxu0 %v2339_v58  ;;  %2808 = vmatprep.subr.mxu1 %v6247_v52  ;;  %v2323_v53 = vmul.f32 %v2310_v24, %v7603_v0  ;;  %v4379_v58 = vld [vmem:[%s7510_s2 + $0x220] sm:$0xff] }
 0x74e   : > { %2754 = vmatpush2.msra.mxu0 %v2338_v30  ;;  %2809 = vmatpush1.msra.mxu1 %v6244_v37  ;;  %v2314_v52 = vsel %vm391_vm4, %v6355_v45, %v2291_v57  ;;  %v2436_v50 = vsel %vm450_vm2, %v2425_v36, %v2415_v59  ;;  %v2431_v1 = vsel %vm450_vm2, %v2415_v59, %v2425_v36  ;;  %v4378_v30 = vld [vmem:[%s7510_s2 + $0x218] sm:$0xff] }
 0x74f   : > { %v2427_v55 = vpop.permute.xlu0 %2426  ;;  %2755 = vmatprep.subr.mxu0 %v2327_v8  ;;  %2810 = vmatprep.subr.mxu1 %v6297_v48  ;;  %v2322_v48 = vmul.f32 %v2315_v25, %v7602_v6  ;;  %v2320_v61 = vmul.f32 %v2314_v52, %v7602_v6  ;;  %v2445_v54 = vmul.f32 %v2436_v50, %v4581_v27 }
 0x750   : > { %v2432_v37 = vsel %vm450_vm2, %v2417_v29, %v2427_v55  ;;  %v2437_v39 = vsel %vm450_vm2, %v2427_v55, %v2417_v29  ;;  %2756 = vmatpush2.msra.mxu0 %v2326_v13  ;;  %2811 = vmatpush1.msra.mxu1 %v6294_v9  ;;  %v2321_v29 = vmul.f32 %v2309_v4, %v7603_v0 }
 0x751   : > { %v2446_v45 = vmul.f32 %v2432_v37, %v4599_v35  ;;  %v2447_v60 = vmul.f32 %v2437_v39, %v4581_v27  ;;  %2757 = vmatprep.subr.mxu0 %v2325_v49  ;;  %2812 = vmatprep.subr.mxu1 %v2489_v19  ;;  %v2413_v9 = vpop.permute.xlu1 %2412  ;;  %v2444_v36 = vmul.f32 %v2431_v1, %v4599_v35 }
 0x752   : > { %2758 = vmatpush2.msra.mxu0 %v2324_v32  ;;  %2813 = vmatpush1.msra.mxu1 %v2488_v47  ;;  %v4380_v32 = vld [vmem:[%s7510_s2 + $0x228] sm:$0xff] }
 0x753   : > { %v2423_v2 = vpop.permute.xlu0 %2422  ;;  %2759 = vmatprep.subr.mxu0 %v2323_v53  ;;  %2814 = vmatprep.subr.mxu1 %v2447_v60 }
 0x754   : > { %v2430_v14 = vsel %vm450_vm2, %v2413_v9, %v2423_v2  ;;  %v2435_v51 = vsel %vm450_vm2, %v2423_v2, %v2413_v9  ;;  %2760 = vmatpush2.msra.mxu0 %v2322_v48  ;;  %2815 = vmatpush1.msra.mxu1 %v2446_v45 }
 0x755   : > { %v2442_v18 = vmul.f32 %v2430_v14, %v4599_v35  ;;  %v2443_v57 = vmul.f32 %v2435_v51, %v4581_v27  ;;  %2761 = vmatprep.subr.mxu0 %v2321_v29  ;;  %2816 = vmatprep.subr.mxu1 %v2445_v54 }
 0x756   : > { %2817 = vmatpush1.msra.mxu1 %v2444_v36  ;;  %2762 = vmatpush2.msra.mxu0 %v2320_v61 }
 0x757   : > { %2764 = vmatmul.mubr.f32.vlgmr.msra.gmra.mxu0 %v4371_v41  ;;  %2818 = vmatprep.subr.mxu1 %v2443_v57 }
 0x758   : > { %2819 = vmatpush1.msra.mxu1 %v2442_v18  ;;  %2769 = vmatprep.mubr.f32.mxu0 %v4375_v38 }
 0x759   : > { %4387 = vmatmul.mubr.msk.f32.vlgmr.msra.gmra.mxu1 %vm2686_vm12, %v4373_v46 }
 0x75a   : > { %2858 = vmatprep.mubr.f32.mxu1 %v7604_v31 }
 0x75b   : > { %2770 = vmatmul.mubr.f32.gmra.mxu0 %v4374_v5 }
 0x75c   : > { %2775 = vmatprep.mubr.f32.mxu0 %v4378_v30 }
 0x75d   : > { %4388 = vmatmul.mubr.msk.f32.gmra.mxu1 %vm2686_vm12, %v4376_v3 }
 0x75e   : > { %2864 = vmatprep.mubr.f32.mxu1 %v7604_v31  ;;  %v2684_v37 = vpop.permute.xlu1 %2683 }
 0x75f   : > { %2776 = vmatmul.mubr.f32.gmra.mxu0 %v4377_v33 }
 0x760   : > { %2781 = vmatprep.mubr.f32.mxu0 %v4381_v17  ;;  %v2679_v43 = vpop.permute.xlu0 %2678 }
 0x761   : > { %4389 = vmatmul.mubr.msk.f32.gmra.mxu1 %vm2686_vm12, %v4379_v58 }
 0x762   : > { %2870 = vmatprep.mubr.f32.mxu1 %v7604_v31  ;;  %v2674_v2 = vpop.permute.xlu1 %2673 }
 0x763   : > { %2782 = vmatmul.mubr.f32.gmra.mxu0 %v4380_v32 }
 0x764   : > { %3494 = vmatprep.mubr.f32.mxu0 %v7604_v31  ;;  %v2669_v34 = vpop.permute.xlu0 %2668 }
 0x765   : > { %4390 = vmatmul.mubr.msk.f32.gmra.mxu1 %vm2686_vm12, %v4382_v15 }
 0x817   : > { %v2765_v24 = vpop.f32.mrf.mxu0 }
 0x818   : > { %v2766_v42 = vadd.f32 %v2765_v24, %v2669_v34 }
 0x819   : > { %v2767_v7 = vpop.f32.mrf.mxu0  ;;  %v2854_v49 = vpop.f32.mrf.mxu1 }
 0x81a   : > { %v2768_v13 = vadd.f32 %v2767_v7, %v2669_v34  ;;  %v2855_v8 = vadd.f32 %v2854_v49, %v2766_v42  ;;  %v4392_v34 = vld [vmem:[%s7510_s2 + $0x260] sm:$0xff] }
 0x81b   : > { %v2771_v59 = vpop.f32.mrf.mxu0  ;;  %v2856_v47 = vpop.f32.mrf.mxu1  ;;  %3411 = vmatprep.mubr.f32.mxu1 %v4392_v34 }
 0x81c   : > { %v6503_v19 = vmax.f32 %v2855_v8, 0.0  ;;  %v2857_v25 = vadd.f32 %v2856_v47, %v2768_v13  ;;  %v2772_v14 = vadd.f32 %v2771_v59, %v2674_v2  ;;  %v4400_v8 = vld [vmem:[%s7511_s3 + $0xc8] sm:$0xff]  ;;  %v4402_v47 = vld [vmem:[%s7511_s3 + $0xd8] sm:$0xff] }
 0x81d   : > { %v2773_v53 = vpop.f32.mrf.mxu0  ;;  %v2860_v4 = vpop.f32.mrf.mxu1 }
 0x81e   : > { %7605 = vst [vmem:[#allocation25_spill] sm:$0xff] %v6503_v19  ;;  %v6505_v52 = vmax.f32 %v2857_v25, 0.0  ;;  %3021 = vrot.lane.b32.xlu1 %v6503_v19, %s4457_s28  ;;  %v2774_v18 = vadd.f32 %v2773_v53, %v2674_v2  ;;  %v2861_v38 = vadd.f32 %v2860_v4, %v2772_v14  ;;  %v4401_v53 = vld [vmem:[%s7511_s3 + $0xd0] sm:$0xff] }
 0x81f   : > { %v2777_v55 = vpop.f32.mrf.mxu0  ;;  %v2862_v50 = vpop.f32.mrf.mxu1 }
 0x820   : > { %7606 = vst [vmem:[#allocation24_spill] sm:$0xff] %v6505_v52  ;;  %3029 = vrot.lane.b32.xlu0 %v6505_v52, %s4457_s28  ;;  %v2863_v46 = vadd.f32 %v2862_v50, %v2774_v18  ;;  %v6529_v5 = vmax.f32 %v2861_v38, 0.0  ;;  %v2778_v3 = vadd.f32 %v2777_v55, %v2679_v43 }
 0x821   : > { %v2779_v39 = vpop.f32.mrf.mxu0  ;;  %v2866_v1 = vpop.f32.mrf.mxu1 }
 0x822   : > { %2981 = vrot.lane.b32.xlu1 %v6503_v19, %s4458_s29  ;;  %7607 = vst [vmem:[#allocation23_spill] sm:$0xff] %v6529_v5  ;;  %v6533_v30 = vmax.f32 %v2863_v46, 0.0  ;;  %v2780_v33 = vadd.f32 %v2779_v39, %v2679_v43  ;;  %v2867_v17 = vadd.f32 %v2866_v1, %v2778_v3 }
 0x823   : > { %v2783_v45 = vpop.f32.mrf.mxu0  ;;  %v2868_v60 = vpop.f32.mrf.mxu1 }
 0x824   : > { %v2784_v48 = vadd.f32 %v2783_v45, %v2684_v37  ;;  %2989 = vrot.lane.b32.xlu0 %v6505_v52, %s4458_s29  ;;  %7608 = vst [vmem:[#allocation4_spill] sm:$0xff] %v6533_v30  ;;  %v2869_v58 = vadd.f32 %v2868_v60, %v2780_v33  ;;  %v6553_v32 = vmax.f32 %v2867_v17, 0.0 }
 0x825   : > { %v2785_v61 = vpop.f32.mrf.mxu0  ;;  %v2872_v29 = vpop.f32.mrf.mxu1 }
 0x826   : > { %v2786_v54 = vadd.f32 %v2785_v61, %v2684_v37  ;;  %v2873_v9 = vadd.f32 %v2872_v29, %v2784_v48  ;;  %2941 = vrot.lane.b32.xlu1 %v6503_v19, %s4459_s30  ;;  %7609 = vst [vmem:[#allocation10_spill] sm:$0xff] %v6553_v32  ;;  %v6557_v15 = vmax.f32 %v2869_v58, 0.0 }
 0x827   : > { %v2874_v36 = vpop.f32.mrf.mxu1 }
 0x828   : > { %v6517_v51 = vmax.f32 %v2873_v9, 0.0  ;;  %v2875_v41 = vadd.f32 %v2874_v36, %v2786_v54  ;;  %2949 = vrot.lane.b32.xlu0 %v6505_v52, %s4459_s30  ;;  %7610 = vst [vmem:[#allocation22_spill] sm:$0xff] %v6557_v15 }
 0x82a   : > { %v6521_v57 = vmax.f32 %v2875_v41, 0.0  ;;  %2901 = vrot.lane.b32.xlu1 %v6503_v19, %s4461_s5 }
 0x82c   : > { %2909 = vrot.lane.b32.xlu0 %v6505_v52, %s4461_s5 }
 0x82e   : > { %3157 = vrot.lane.b32.xlu1 %v6503_v19, %s4453_s24 }
 0x830   : > { %3165 = vrot.lane.b32.xlu0 %v6505_v52, %s4453_s24 }
 0x832   : > { %3023 = vrot.lane.b32.xlu1 %v6529_v5, %s4457_s28 }
 0x834   : > { %3031 = vrot.lane.b32.xlu0 %v6533_v30, %s4457_s28 }
 0x836   : > { %2983 = vrot.lane.b32.xlu1 %v6529_v5, %s4458_s29 }
 0x838   : > { %2991 = vrot.lane.b32.xlu0 %v6533_v30, %s4458_s29 }
 0x83a   : > { %2943 = vrot.lane.b32.xlu1 %v6529_v5, %s4459_s30 }
 0x83c   : > { %2951 = vrot.lane.b32.xlu0 %v6533_v30, %s4459_s30 }
 0x83e   : > { %2903 = vrot.lane.b32.xlu1 %v6529_v5, %s4461_s5 }
 0x840   : > { %2911 = vrot.lane.b32.xlu0 %v6533_v30, %s4461_s5 }
 0x842   : > { %3159 = vrot.lane.b32.xlu1 %v6529_v5, %s4453_s24 }
 0x844   : > { %3167 = vrot.lane.b32.xlu0 %v6533_v30, %s4453_s24 }
 0x846   : > { %3025 = vrot.lane.b32.xlu1 %v6553_v32, %s4457_s28 }
 0x848   : > { %3033 = vrot.lane.b32.xlu0 %v6557_v15, %s4457_s28 }
 0x84a   : > { %2985 = vrot.lane.b32.xlu1 %v6553_v32, %s4458_s29 }
 0x84c   : > { %2993 = vrot.lane.b32.xlu0 %v6557_v15, %s4458_s29 }
 0x84e   : > { %2945 = vrot.lane.b32.xlu1 %v6553_v32, %s4459_s30 }
 0x850   : > { %2953 = vrot.lane.b32.xlu0 %v6557_v15, %s4459_s30 }
 0x852   : > { %2905 = vrot.lane.b32.xlu1 %v6553_v32, %s4461_s5 }
 0x854   : > { %2913 = vrot.lane.b32.xlu0 %v6557_v15, %s4461_s5 }
 0x856   : > { %3161 = vrot.lane.b32.xlu1 %v6553_v32, %s4453_s24 }
 0x858   : > { %3169 = vrot.lane.b32.xlu0 %v6557_v15, %s4453_s24 }
 0x85a   : > { %3027 = vrot.lane.b32.xlu1 %v6517_v51, %s4457_s28 }
 0x85c   : > { %3035 = vrot.lane.b32.xlu0 %v6521_v57, %s4457_s28 }
 0x85e   : > { %3121 = vrot.lane.b32.xlu1 %v6553_v32, %s4455_s26 }
 0x860   : > { %3129 = vrot.lane.b32.xlu0 %v6557_v15, %s4455_s26 }
 0x862   : > { %2987 = vrot.lane.b32.xlu1 %v6517_v51, %s4458_s29 }
 0x864   : > { %2995 = vrot.lane.b32.xlu0 %v6521_v57, %s4458_s29 }
 0x866   : > { %2947 = vrot.lane.b32.xlu1 %v6517_v51, %s4459_s30 }
 0x868   : > { %3127 = vrot.lane.b32.xlu0 %v6533_v30, %s4455_s26 }
 0x86a   : > { %2907 = vrot.lane.b32.xlu1 %v6517_v51, %s4461_s5 }
 0x86c   : > { %2955 = vrot.lane.b32.xlu0 %v6521_v57, %s4459_s30 }
 0x86e   : > { %3163 = vrot.lane.b32.xlu1 %v6517_v51, %s4453_s24 }
 0x870   : > { %3125 = vrot.lane.b32.xlu0 %v6505_v52, %s4455_s26 }
 0x872   : > { %3123 = vrot.lane.b32.xlu1 %v6517_v51, %s4455_s26 }
 0x874   : > { %2915 = vrot.lane.b32.xlu0 %v6521_v57, %s4461_s5 }
 0x876   : > { %3119 = vrot.lane.b32.xlu1 %v6529_v5, %s4455_s26 }
 0x878   : > { %3089 = vrot.lane.b32.xlu0 %v6557_v15, %s4456_s27 }
 0x87a   : > { %3117 = vrot.lane.b32.xlu1 %v6503_v19, %s4455_s26 }
 0x87c   : > { %3171 = vrot.lane.b32.xlu0 %v6521_v57, %s4453_s24 }
 0x87e   : > { %3083 = vrot.lane.b32.xlu1 %v6517_v51, %s4456_s27 }
 0x880   : > { %3087 = vrot.lane.b32.xlu0 %v6533_v30, %s4456_s27 }
 0x882   : > { %3081 = vrot.lane.b32.xlu1 %v6553_v32, %s4456_s27 }
 0x884   : > { %3131 = vrot.lane.b32.xlu0 %v6521_v57, %s4455_s26 }
 0x886   : > { %3079 = vrot.lane.b32.xlu1 %v6529_v5, %s4456_s27 }
 0x888   : > { %3085 = vrot.lane.b32.xlu0 %v6505_v52, %s4456_s27 }
 0x88a   : > { %3077 = vrot.lane.b32.xlu1 %v6503_v19, %s4456_s27 }
 0x88c   : > { %3091 = vrot.lane.b32.xlu0 %v6521_v57, %s4456_s27 }
 0x88e   : > { %3203 = vrot.lane.b32.xlu1 %v6517_v51, %s4454_s25 }
 0x890   : > { %3209 = vrot.lane.b32.xlu0 %v6557_v15, %s4454_s25  ;;  %v6635_v43 = vpop.permute.xlu1 %3021 }
 0x892   : > { %v6640_v24 = vpop.permute.xlu0 %3029  ;;  %3201 = vrot.lane.b32.xlu1 %v6553_v32, %s4454_s25 }
 0x894   : > { %3211 = vrot.lane.b32.xlu0 %v6521_v57, %s4454_s25  ;;  %v6646_v42 = vpop.permute.xlu1 %2981 }
 0x896   : > { %v6648_v7 = vpop.permute.xlu0 %2989  ;;  %3199 = vrot.lane.b32.xlu1 %v6529_v5, %s4454_s25 }
 0x898   : > { %3207 = vrot.lane.b32.xlu0 %v6533_v30, %s4454_s25  ;;  %v6654_v49 = vpop.permute.xlu1 %2941 }
 0x89a   : > { %v6656_v13 = vpop.permute.xlu0 %2949  ;;  %3197 = vrot.lane.b32.xlu1 %v6503_v19, %s4454_s25 }
 0x89c   : > { %3205 = vrot.lane.b32.xlu0 %v6505_v52, %s4454_s25  ;;  %v6665_v59 = vpop.permute.xlu1 %2901 }
 0x89e   : > { %v6670_v25 = vpop.permute.xlu0 %2909  ;;  %3325 = vperm.xlu1 %4442, %v4400_v8  }
 0x8a0   : > { %3335 = vperm.xlu0 %4441, %v4402_v47   ;;  %v3158_v4 = vpop.permute.xlu1 %3157 }
 0x8a2   : > { %v3166_v55 = vpop.permute.xlu0 %3165  ;;  %3330 = vperm.xlu1 %4442, %v4401_v53  }
 0x8a3   : > { %v3173_v50 = vsel %vm472_vm0, %v3158_v4, %v3166_v55  ;;  %v3177_v37 = vsel %vm472_vm0, %v3166_v55, %v3158_v4 }
 0x8a4   : > { %v6680_v39 = vmul.f32 %v3173_v50, %v4572_v22  ;;  %v6683_v1 = vmul.f32 %v3177_v37, %v4575_v23  ;;  %v3024_v45 = vpop.permute.xlu1 %3023 }
 0x8a6   : > { %v3032_v60 = vpop.permute.xlu0 %3031 }
 0x8a7   : > { %v3038_v5 = vsel %vm391_vm4, %v3024_v45, %v3032_v60  ;;  %v3042_v30 = vsel %vm391_vm4, %v3032_v60, %v3024_v45 }
 0x8a8   : > { %v6685_v48 = vpop.permute.xlu1 %2983  ;;  %v3048_v45 = vmul.f32 %v3038_v5, %v7603_v0 }
 0x8aa   : > { %v6687_v61 = vpop.permute.xlu0 %2991 }
 0x8ac   : > { %v6689_v29 = vpop.permute.xlu1 %2943 }
 0x8ae   : > { %v6691_v54 = vpop.permute.xlu0 %2951 }
 0x8b0   : > { %v6693_v9 = vpop.permute.xlu1 %2903 }
 0x8b2   : > { %v6695_v2 = vpop.permute.xlu0 %2911 }
 0x8b4   : > { %v3160_v36 = vpop.permute.xlu1 %3159 }
 0x8b6   : > { %v3168_v14 = vpop.permute.xlu0 %3167 }
 0x8b7   : > { %v3174_v41 = vsel %vm472_vm0, %v3160_v36, %v3168_v14  ;;  %v3178_v18 = vsel %vm472_vm0, %v3168_v14, %v3160_v36 }
 0x8b8   : > { %v6702_v38 = vmul.f32 %v3174_v41, %v4572_v22  ;;  %v6705_v46 = vmul.f32 %v3178_v18, %v4575_v23  ;;  %v3026_v3 = vpop.permute.xlu1 %3025 }
 0x8ba   : > { %v3034_v33 = vpop.permute.xlu0 %3033 }
 0x8bb   : > { %v3039_v31 = vsel %vm391_vm4, %v3026_v3, %v3034_v33 }
 0x8bc   : > { %v2986_v17 = vpop.permute.xlu1 %2985  ;;  %v3050_v32 = vmul.f32 %v3039_v31, %v7603_v0  ;;  %v3047_v31 = vmul.f32 %v3042_v30, %v7602_v6 }
 0x8be   : > { %v2994_v58 = vpop.permute.xlu0 %2993 }
 0x8bf   : > { %v3003_v30 = vsel %vm369_vm5, %v2994_v58, %v2986_v17 }
 0x8c0   : > { %v6707_v34 = vpop.permute.xlu1 %2945 }
 0x8c2   : > { %v6709_v8 = vpop.permute.xlu0 %2953 }
 0x8c4   : > { %v6711_v47 = vpop.permute.xlu1 %2905 }
 0x8c6   : > { %v6713_v53 = vpop.permute.xlu0 %2913 }
 0x8c8   : > { %v3162_v4 = vpop.permute.xlu1 %3161 }
 0x8ca   : > { %v3170_v55 = vpop.permute.xlu0 %3169 }
 0x8cb   : > { %v3175_v50 = vsel %vm472_vm0, %v3162_v4, %v3170_v55  ;;  %v3179_v37 = vsel %vm472_vm0, %v3170_v55, %v3162_v4  ;;  %v3043_v4 = vsel %vm391_vm4, %v3034_v33, %v3026_v3  ;;  %v3041_v3 = vsel %vm391_vm4, %v6640_v24, %v6635_v43 }
 0x8cc   : > { %v6720_v36 = vmul.f32 %v3175_v50, %v4572_v22  ;;  %v6723_v14 = vmul.f32 %v3179_v37, %v4575_v23  ;;  %v3028_v41 = vpop.permute.xlu1 %3027 }
 0x8ce   : > { %v3036_v18 = vpop.permute.xlu0 %3035 }
 0x8cf   : > { %v3040_v19 = vsel %vm391_vm4, %v3028_v41, %v3036_v18  ;;  %v3044_v52 = vsel %vm391_vm4, %v3036_v18, %v3028_v41  ;;  %v3045_v18 = vmul.f32 %v3041_v3, %v7602_v6  ;;  %v3009_v3 = vmul.f32 %v3003_v30, %v4650_v62 }
 0x8d0   : > { %v3051_v55 = vmul.f32 %v3044_v52, %v7602_v6  ;;  %v3052_v50 = vmul.f32 %v3040_v19, %v7603_v0  ;;  %v6735_v37 = vpop.permute.xlu1 %3121  ;;  %v3037_v52 = vsel %vm391_vm4, %v6635_v43, %v6640_v24  ;;  %v3049_v19 = vmul.f32 %v3043_v4, %v7602_v6 }
 0x8d1   : > { %v3046_v33 = vmul.f32 %v3037_v52, %v7603_v0  ;;  %v2999_v4 = vsel %vm369_vm5, %v2986_v17, %v2994_v58  ;;  %v3002_v52 = vsel %vm369_vm5, %v6687_v61, %v6685_v48  ;;  %v2997_v58 = vsel %vm369_vm5, %v6646_v42, %v6648_v7 }
 0x8d2   : > { %v6742_v15 = vpop.permute.xlu0 %3129  ;;  %3347 = vmatprep.subr.mxu1 %v3052_v50  ;;  %v2998_v50 = vsel %vm369_vm5, %v6685_v48, %v6687_v61 }
 0x8d3   : > { %3348 = vmatpush1.msra.mxu1 %v3051_v55  ;;  %v3008_v48 = vmul.f32 %v2998_v50, %v4653_v63 }
 0x8d4   : > { %v2988_v60 = vpop.permute.xlu1 %2987  ;;  %3349 = vmatprep.subr.mxu1 %v3050_v32 }
 0x8d5   : > { %3350 = vmatpush1.msra.mxu1 %v3049_v19  ;;  %v3010_v19 = vmul.f32 %v2999_v4, %v4653_v63  ;;  %v2963_v4 = vsel %vm347_vm6, %v6709_v8, %v6707_v34 }
 0x8d6   : > { %v2996_v41 = vpop.permute.xlu0 %2995  ;;  %3351 = vmatprep.subr.mxu1 %v3048_v45  ;;  %v3001_v45 = vsel %vm369_vm5, %v6648_v7, %v6646_v42  ;;  %v2969_v50 = vmul.f32 %v2963_v4, %v4668_v10  ;;  %v2921_v4 = vsel %vm325_vm7, %v6670_v25, %v6665_v59 }
 0x8d7   : > { %v3000_v55 = vsel %vm369_vm5, %v2988_v60, %v2996_v41  ;;  %v3004_v5 = vsel %vm369_vm5, %v2996_v41, %v2988_v60  ;;  %3352 = vmatpush1.msra.mxu1 %v3047_v31  ;;  %v3007_v60 = vmul.f32 %v3002_v52, %v4650_v62  ;;  %v3006_v31 = vmul.f32 %v2997_v58, %v4653_v63 }
 0x8d8   : > { %v3011_v32 = vmul.f32 %v3004_v5, %v4650_v62  ;;  %v3012_v43 = vmul.f32 %v3000_v55, %v4653_v63  ;;  %v2948_v24 = vpop.permute.xlu1 %2947  ;;  %3353 = vmatprep.subr.mxu1 %v3046_v33  ;;  %v3005_v41 = vmul.f32 %v3001_v45, %v4650_v62  ;;  %v2961_v52 = vsel %vm347_vm6, %v6656_v13, %v6654_v49 }
 0x8d9   : > { %3354 = vmatpush1.msra.mxu1 %v3045_v18  ;;  %v2959_v18 = vsel %vm347_vm6, %v6707_v34, %v6709_v8  ;;  %v2957_v8 = vsel %vm347_vm6, %v6654_v49, %v6656_v13  ;;  %v2965_v45 = vmul.f32 %v2961_v52, %v4668_v10 }
 0x8da   : > { %v6776_v17 = vpop.permute.xlu0 %3127  ;;  %3355 = vmatprep.subr.mxu1 %v3012_v43  ;;  %v2962_v43 = vsel %vm347_vm6, %v6691_v54, %v6689_v29  ;;  %v2966_v58 = vmul.f32 %v2957_v8, %v4671_v11 }
 0x8db   : > { %3356 = vmatpush1.msra.mxu1 %v3011_v32  ;;  %v2958_v32 = vsel %vm347_vm6, %v6689_v29, %v6691_v54 }
 0x8dc   : > { %v2908_v61 = vpop.permute.xlu1 %2907  ;;  %3357 = vmatprep.subr.mxu1 %v3010_v19  ;;  %v2968_v29 = vmul.f32 %v2958_v32, %v4671_v11  ;;  %v2967_v19 = vmul.f32 %v2962_v43, %v4668_v10  ;;  %v2925_v43 = vmul.f32 %v2921_v4, %v4684_v26 }
 0x8dd   : > { %3358 = vmatpush1.msra.mxu1 %v3009_v3 }
 0x8de   : > { %v2956_v33 = vpop.permute.xlu0 %2955  ;;  %3359 = vmatprep.subr.mxu1 %v3008_v48  ;;  %v2919_v48 = vsel %vm325_vm7, %v6711_v47, %v6713_v53 }
 0x8df   : > { %v2960_v42 = vsel %vm347_vm6, %v2948_v24, %v2956_v33  ;;  %v2964_v7 = vsel %vm347_vm6, %v2956_v33, %v2948_v24  ;;  %3360 = vmatpush1.msra.mxu1 %v3007_v60  ;;  %v2970_v24 = vmul.f32 %v2959_v18, %v4671_v11  ;;  %v2923_v60 = vsel %vm325_vm7, %v6713_v53, %v6711_v47 }
 0x8e0   : > { %v2971_v55 = vmul.f32 %v2964_v7, %v4668_v10  ;;  %v2972_v5 = vmul.f32 %v2960_v42, %v4671_v11  ;;  %v3164_v30 = vpop.permute.xlu1 %3163  ;;  %3361 = vmatprep.subr.mxu1 %v3006_v31  ;;  %v2918_v18 = vsel %vm325_vm7, %v6693_v9, %v6695_v2  ;;  %v2930_v42 = vmul.f32 %v2919_v48, %v4687_v28 }
 0x8e1   : > { %3362 = vmatpush1.msra.mxu1 %v3005_v41  ;;  %v2917_v53 = vsel %vm325_vm7, %v6665_v59, %v6670_v25  ;;  %v2929_v7 = vmul.f32 %v2923_v60, %v4684_v26 }
 0x8e2   : > { %v6814_v34 = vpop.permute.xlu0 %3125  ;;  %3363 = vmatprep.subr.mxu1 %v2972_v5  ;;  %v2926_v5 = vmul.f32 %v2917_v53, %v4687_v28 }
 0x8e3   : > { %3364 = vmatpush1.msra.mxu1 %v2971_v55 }
 0x8e4   : > { %v3124_v54 = vpop.permute.xlu1 %3123  ;;  %3365 = vmatprep.subr.mxu1 %v2970_v24 }
 0x8e5   : > { %3366 = vmatpush1.msra.mxu1 %v2969_v50 }
 0x8e6   : > { %v2916_v3 = vpop.permute.xlu0 %2915  ;;  %3367 = vmatprep.subr.mxu1 %v2968_v29 }
 0x8e7   : > { %v2920_v49 = vsel %vm325_vm7, %v2908_v61, %v2916_v3  ;;  %v2924_v13 = vsel %vm325_vm7, %v2916_v3, %v2908_v61  ;;  %3368 = vmatpush1.msra.mxu1 %v2967_v19  ;;  %v2922_v61 = vsel %vm325_vm7, %v6695_v2, %v6693_v9  ;;  %v2928_v9 = vmul.f32 %v2918_v18, %v4687_v28 }
 0x8e8   : > { %v2931_v31 = vmul.f32 %v2924_v13, %v4684_v26  ;;  %v2932_v33 = vmul.f32 %v2920_v49, %v4687_v28  ;;  %v3120_v41 = vpop.permute.xlu1 %3119  ;;  %3369 = vmatprep.subr.mxu1 %v2966_v58  ;;  %v2927_v55 = vmul.f32 %v2922_v61, %v4684_v26 }
 0x8e9   : > { %3370 = vmatpush1.msra.mxu1 %v2965_v45  ;;  %v3138_v48 = vsel %vm450_vm2, %v6776_v17, %v3120_v41 }
 0x8ea   : > { %v6852_v47 = vpop.permute.xlu0 %3089  ;;  %3371 = vmatprep.subr.mxu1 %v2932_v33  ;;  %v3144_v49 = vmul.f32 %v3138_v48, %v4581_v27  ;;  %v3067_v48 = vmul.f32 %v6517_v51, %v7588_v16 }
 0x8eb   : > { %3372 = vmatpush1.msra.mxu1 %v2931_v31 }
 0x8ec   : > { %v3118_v2 = vpop.permute.xlu1 %3117  ;;  %3373 = vmatprep.subr.mxu1 %v2930_v42 }
 0x8ed   : > { %3374 = vmatpush1.msra.mxu1 %v2929_v7 }
 0x8ee   : > { %v3172_v32 = vpop.permute.xlu0 %3171  ;;  %3375 = vmatprep.subr.mxu1 %v2928_v9 }
 0x8ef   : > { %v3176_v24 = vsel %vm472_vm0, %v3164_v30, %v3172_v32  ;;  %v3180_v8 = vsel %vm472_vm0, %v3172_v32, %v3164_v30  ;;  %3376 = vmatpush1.msra.mxu1 %v2927_v55  ;;  %v3139_v30 = vsel %vm450_vm2, %v6742_v15, %v6735_v37 }
 0x8f0   : > { %v3187_v59 = vmul.f32 %v3176_v24, %v4572_v22  ;;  %v3188_v25 = vmul.f32 %v3180_v8, %v4575_v23  ;;  %v3084_v50 = vpop.permute.xlu1 %3083  ;;  %3377 = vmatprep.subr.mxu1 %v2926_v5 }
 0x8f1   : > { %3378 = vmatpush1.msra.mxu1 %v2925_v43 }
 0x8f2   : > { %v3088_v52 = vpop.permute.xlu0 %3087  ;;  %3379 = vmatprep.subr.mxu1 %v3188_v25 }
 0x8f3   : > { %3380 = vmatpush2.msra.mxu1 %v3187_v59 }
 0x8f4   : > { %v3082_v29 = vpop.permute.xlu1 %3081  ;;  %3381 = vmatprep.subr.mxu1 %v6723_v14 }
 0x8f5   : > { %3382 = vmatpush2.msra.mxu1 %v6720_v36  ;;  %v3135_v36 = vsel %vm450_vm2, %v6735_v37, %v6742_v15  ;;  %v3095_v61 = vsel %vm428_vm3, %v3082_v29, %v6852_v47 }
 0x8f6   : > { %v3132_v19 = vpop.permute.xlu0 %3131  ;;  %3383 = vmatprep.subr.mxu1 %v6705_v46  ;;  %v3145_v37 = vmul.f32 %v3135_v36, %v4599_v35  ;;  %v3105_v5 = vmul.f32 %v3095_v61, %v4614_v44 }
 0x8f7   : > { %v3136_v58 = vsel %vm450_vm2, %v3124_v54, %v3132_v19  ;;  %v3140_v3 = vsel %vm450_vm2, %v3132_v19, %v3124_v54  ;;  %3384 = vmatpush2.msra.mxu1 %v6702_v38  ;;  %v3146_v38 = vmul.f32 %v3139_v30, %v4581_v27  ;;  %v3134_v54 = vsel %vm450_vm2, %v3120_v41, %v6776_v17 }
 0x8f8   : > { %v3147_v46 = vmul.f32 %v3136_v58, %v4599_v35  ;;  %v3148_v14 = vmul.f32 %v3140_v3, %v4581_v27  ;;  %v3080_v45 = vpop.permute.xlu1 %3079  ;;  %3385 = vmatprep.subr.mxu1 %v6683_v1  ;;  %v3137_v1 = vsel %vm450_vm2, %v6814_v34, %v3118_v2  ;;  %v3143_v60 = vmul.f32 %v3134_v54, %v4599_v35  ;;  %v7611_v54 = vld [vmem:[#allocation22_spill] sm:$0xff] }
 0x8f9   : > { %3386 = vmatpush2.msra.mxu1 %v6680_v39  ;;  %v3133_v39 = vsel %vm450_vm2, %v3118_v2, %v6814_v34  ;;  %v3142_v17 = vmul.f32 %v3137_v1, %v4581_v27  ;;  %v3099_v41 = vsel %vm428_vm3, %v6852_v47, %v3082_v29  ;;  %v3098_v4 = vsel %vm428_vm3, %v3088_v52, %v3080_v45 }
 0x8fa   : > { %v3086_v15 = vpop.permute.xlu0 %3085  ;;  %3387 = vmatprep.subr.mxu1 %v3148_v14  ;;  %v3141_v33 = vmul.f32 %v3133_v39, %v4599_v35  ;;  %v3106_v9 = vmul.f32 %v3099_v41, %v4607_v40  ;;  %v3094_v2 = vsel %vm428_vm3, %v3080_v45, %v3088_v52  ;;  %v3104_v32 = vmul.f32 %v3098_v4, %v4607_v40  ;;  %v4391_v4 = vld [vmem:[%s7510_s2 + $0x258] sm:$0xff] }
 0x8fb   : > { %3388 = vmatpush2.msra.mxu1 %v3147_v46  ;;  %v3103_v8 = vmul.f32 %v3094_v2, %v4614_v44  ;;  %v3068_v45 = vmul.f32 %v6521_v57, %v7585_v56  ;;  %v7612_v57 = vld [vmem:[#allocation10_spill] sm:$0xff] }
 0x8fc   : > { %v3078_v13 = vpop.permute.xlu1 %3077  ;;  %3389 = vmatprep.subr.mxu1 %v3146_v38 }
 0x8fd   : > { %3390 = vmatpush2.msra.mxu1 %v3145_v37  ;;  %v3097_v47 = vsel %vm428_vm3, %v3086_v15, %v3078_v13  ;;  %v3093_v43 = vsel %vm428_vm3, %v3078_v13, %v3086_v15  ;;  %v3066_v15 = vmul.f32 %v7611_v54, %v7585_v56  ;;  %v7613_v13 = vld [vmem:[#allocation4_spill] sm:$0xff] }
 0x8fe   : > { %v3092_v31 = vpop.permute.xlu0 %3091  ;;  %3391 = vmatprep.subr.mxu1 %v3144_v49  ;;  %v3101_v30 = vmul.f32 %v3093_v43, %v4614_v44  ;;  %v3065_v49 = vmul.f32 %v7612_v57, %v7588_v16  ;;  %v7617_v43 = vmov 0.0  }
 0x8ff   : > { %v3096_v18 = vsel %vm428_vm3, %v3084_v50, %v3092_v31  ;;  %v3100_v34 = vsel %vm428_vm3, %v3092_v31, %v3084_v50  ;;  %3392 = vmatpush2.msra.mxu1 %v3143_v60  ;;  %v3102_v50 = vmul.f32 %v3097_v47, %v4607_v40  ;;  %v3064_v60 = vmul.f32 %v7613_v13, %v7585_v56  ;;  %v4394_v47 = vld [vmem:[%s7510_s2 + $0x270] sm:$0xff] }
 0x900   : > { %v3107_v42 = vmul.f32 %v3096_v18, %v4614_v44  ;;  %v3108_v53 = vmul.f32 %v3100_v34, %v4607_v40  ;;  %v3204_v7 = vpop.permute.xlu1 %3203  ;;  %3393 = vmatprep.subr.mxu1 %v3142_v17  ;;  %v7614_v17 = vld [vmem:[#allocation23_spill] sm:$0xff]  ;;  %v7615_v18 = vld [vmem:[#allocation24_spill] sm:$0xff] }
 0x901   : > { %3394 = vmatpush2.msra.mxu1 %v3141_v33  ;;  %v3063_v31 = vmul.f32 %v7614_v17, %v7588_v16  ;;  %v3062_v34 = vmul.f32 %v7615_v18, %v7585_v56 }
 0x902   : > { %v3210_v55 = vpop.permute.xlu0 %3209  ;;  %3395 = vmatprep.subr.mxu1 %v3108_v53  ;;  %v7616_v53 = vld [vmem:[#allocation25_spill] sm:$0xff] }
 0x903   : > { %3396 = vmatpush2.msra.mxu1 %v3107_v42 }
 0x904   : > { %v3202_v24 = vpop.permute.xlu1 %3201  ;;  %3397 = vmatprep.subr.mxu1 %v3106_v9 }
 0x905   : > { %v3215_v59 = vsel %vm494_vm1, %v3202_v24, %v3210_v55  ;;  %v3219_v25 = vsel %vm494_vm1, %v3210_v55, %v3202_v24  ;;  %3398 = vmatpush2.msra.mxu1 %v3105_v5  ;;  %v4395_v55 = vld [vmem:[%s7510_s2 + $0x278] sm:$0xff]  ;;  %v4393_v5 = vld [vmem:[%s7510_s2 + $0x268] sm:$0xff]  ;;  %v4396_v24 = vld [vmem:[%s7510_s2 + $0x280] sm:$0xff] }
 0x906   : > { %v3225_v52 = vmul.f32 %v3215_v59, %v4566_v20  ;;  %v3226_v29 = vmul.f32 %v3219_v25, %v4569_v21  ;;  %v3212_v19 = vpop.permute.xlu0 %3211  ;;  %3399 = vmatprep.subr.mxu1 %v3104_v32  ;;  %v4398_v32 = vld [vmem:[%s7510_s2 + $0x290] sm:$0xff]  ;;  %v4399_v59 = vld [vmem:[%s7510_s2 + $0x298] sm:$0xff] }
 0x907   : > { %v3216_v58 = vsel %vm494_vm1, %v3204_v7, %v3212_v19  ;;  %v3220_v3 = vsel %vm494_vm1, %v3212_v19, %v3204_v7  ;;  %3400 = vmatpush2.msra.mxu1 %v3103_v8  ;;  %v3061_v7 = vmul.f32 %v7616_v53, %v7588_v16  ;;  %v4397_v8 = vld [vmem:[%s7510_s2 + $0x288] sm:$0xff] }
 0x908   : > { %v3227_v36 = vmul.f32 %v3216_v58, %v4566_v20  ;;  %v3228_v46 = vmul.f32 %v3220_v3, %v4569_v21  ;;  %v3200_v14 = vpop.permute.xlu1 %3199  ;;  %3401 = vmatprep.subr.mxu1 %v3102_v50 }
 0x909   : > { %3402 = vmatpush2.msra.mxu1 %v3101_v30 }
 0x90a   : > { %v3208_v38 = vpop.permute.xlu0 %3207  ;;  %3403 = vmatprep.subr.mxu1 %v3068_v45  ;;  %3454 = vmatprep.subr.mxu0 %v3228_v46 }
 0x90b   : > { %v3214_v37 = vsel %vm494_vm1, %v3200_v14, %v3208_v38  ;;  %v3218_v1 = vsel %vm494_vm1, %v3208_v38, %v3200_v14  ;;  %3404 = vmatpush2.msra.mxu1 %v3067_v48  ;;  %3455 = vmatpush1.msra.mxu0 %v3227_v36 }
 0x90c   : > { %v3223_v39 = vmul.f32 %v3214_v37, %v4566_v20  ;;  %v3224_v51 = vmul.f32 %v3218_v1, %v4569_v21  ;;  %3405 = vmatprep.subr.mxu1 %v3066_v15  ;;  %3456 = vmatprep.subr.mxu0 %v3226_v29  ;;  %v3198_v33 = vpop.permute.xlu1 %3197 }
 0x90d   : > { %3406 = vmatpush2.msra.mxu1 %v3065_v49  ;;  %3457 = vmatpush1.msra.mxu0 %v3225_v52 }
 0x90e   : > { %v3206_v41 = vpop.permute.xlu0 %3205  ;;  %3407 = vmatprep.subr.mxu1 %v3064_v60  ;;  %3458 = vmatprep.subr.mxu0 %v3224_v51 }
 0x90f   : > { %v3213_v61 = vsel %vm494_vm1, %v3198_v33, %v3206_v41  ;;  %v3217_v42 = vsel %vm494_vm1, %v3206_v41, %v3198_v33  ;;  %3408 = vmatpush2.msra.mxu1 %v3063_v31  ;;  %3459 = vmatpush1.msra.mxu0 %v3223_v39 }
 0x910   : > { %v3221_v9 = vmul.f32 %v3213_v61, %v4566_v20  ;;  %v3222_v2 = vmul.f32 %v3217_v42, %v4569_v21  ;;  %3409 = vmatprep.subr.mxu1 %v3062_v34 }
 0x911   : > { %3410 = vmatpush2.msra.mxu1 %v3061_v7  ;;  %v4407_v7 = vld [vmem:[%s7510_s2 + $0x2d8] sm:$0xff] }
 0x912   : > { %3412 = vmatmul.mubr.f32.vlgmr.msra.gmra.mxu1 %v4391_v4  ;;  %3460 = vmatprep.subr.mxu0 %v3222_v2  ;;  %v4411_v4 = vld [vmem:[%s7511_s3 + $0xf8] sm:$0xff] }
 0x913   : > { %3461 = vmatpush1.msra.mxu0 %v3221_v9  ;;  %3417 = vmatprep.mubr.f32.mxu1 %v4395_v55  ;;  %v4410_v9 = vld [vmem:[%s7511_s3 + $0xf0] sm:$0xff] }
 0x914   : > { %4403 = vmatmul.mubr.msk.f32.vlgmr.msra.gmra.mxu0 %vm1902_vm11, %v4393_v5 }
 0x915   : > { %3500 = vmatprep.mubr.f32.mxu0 %v7617_v43 }
 0x916   : > { %3418 = vmatmul.mubr.f32.gmra.mxu1 %v4394_v47 }
 0x917   : > { %3423 = vmatprep.mubr.f32.mxu1 %v4398_v32 }
 0x918   : > { %4404 = vmatmul.mubr.msk.f32.gmra.mxu0 %vm1902_vm11, %v4396_v24 }
 0x919   : > { %3506 = vmatprep.mubr.f32.mxu0 %v7617_v43  ;;  %v3326_v25 = vpop.permute.xlu1 %3325 }
 0x91a   : > { %3424 = vmatmul.mubr.f32.gmra.mxu1 %v4397_v8 }
 0x91b   : > { %v3336_v38 = vpop.permute.xlu0 %3335 }
 0x91c   : > { %4405 = vmatmul.mubr.msk.f32.gmra.mxu0 %vm1902_vm11, %v4399_v59 }
 0x91d   : > { %v3331_v33 = vpop.permute.xlu1 %3330  ;;  %4412 = vmatprep.mubr.msk.f32.mxu0 %vm1321_vm10, %v4407_v7 }
 0x9d2   : > { %v3413_v50 = vpop.f32.mrf.mxu1 }
 0x9d3   : > { %v3414_v52 = vadd.f32 %v3413_v50, %v3326_v25 }
 0x9d4   : > { %v3415_v29 = vpop.f32.mrf.mxu1  ;;  %v3496_v19 = vpop.f32.mrf.mxu0 }
 0x9d5   : > { %v3416_v30 = vadd.f32 %v3415_v29, %v3326_v25  ;;  %v3497_v58 = vadd.f32 %v3496_v19, %v3414_v52 }
 0x9d6   : > { %v3419_v3 = vpop.f32.mrf.mxu1  ;;  %v3498_v36 = vpop.f32.mrf.mxu0 }
 0x9d7   : > { %v7006_v46 = vmax.f32 %v3497_v58, 0.0  ;;  %v3499_v14 = vadd.f32 %v3498_v36, %v3416_v30  ;;  %v3420_v41 = vadd.f32 %v3419_v3, %v3331_v33 }
 0x9d8   : > { %v3421_v45 = vpop.f32.mrf.mxu1  ;;  %v3502_v48 = vpop.f32.mrf.mxu0 }
 0x9d9   : > { %v7008_v54 = vmax.f32 %v3499_v14, 0.0  ;;  %3663 = vrot.lane.b32.xlu0 %v7006_v46, %s4456_s27  ;;  %v3422_v18 = vadd.f32 %v3421_v45, %v3331_v33  ;;  %v3503_v34 = vadd.f32 %v3502_v48, %v3420_v41  ;;  %v3651_v58 = vmul.f32 %v7006_v46, %v7588_v16 }
 0x9da   : > { %v3425_v15 = vpop.f32.mrf.mxu1  ;;  %v3504_v37 = vpop.f32.mrf.mxu0 }
 0x9db   : > { %v3426_v1 = vadd.f32 %v3425_v15, %v3336_v38  ;;  %3669 = vrot.lane.b32.xlu1 %v7008_v54, %s4456_s27  ;;  %v3505_v61 = vadd.f32 %v3504_v37, %v3422_v18  ;;  %v3515_v42 = vmax.f32 %v3503_v34, 0.0  ;;  %v3652_v30 = vmul.f32 %v7008_v54, %v7585_v56 }
 0x9dc   : > { %v3427_v57 = vpop.f32.mrf.mxu1  ;;  %v3508_v49 = vpop.f32.mrf.mxu0 }
 0x9dd   : > { %v3428_v39 = vadd.f32 %v3427_v57, %v3336_v38  ;;  %v3509_v51 = vadd.f32 %v3508_v49, %v3426_v1  ;;  %3621 = vrot.lane.b32.xlu0 %v7006_v46, %s4457_s28  ;;  %v3516_v53 = vmax.f32 %v3505_v61, 0.0  ;;  %v3653_v29 = vmul.f32 %v3515_v42, %v7588_v16 }
 0x9de   : > { %v3510_v13 = vpop.f32.mrf.mxu0 }
 0x9df   : > { %v7016_v60 = vmax.f32 %v3509_v51, 0.0  ;;  %v3511_v17 = vadd.f32 %v3510_v13, %v3428_v39  ;;  %3627 = vrot.lane.b32.xlu1 %v7008_v54, %s4457_s28  ;;  %v3654_v52 = vmul.f32 %v3516_v53, %v7585_v56 }
 0x9e1   : > { %v7020_v31 = vmax.f32 %v3511_v17, 0.0  ;;  %3591 = vrot.lane.b32.xlu0 %v7006_v46, %s4458_s29  ;;  %v3655_v25 = vmul.f32 %v7016_v60, %v7588_v16 }
 0x9e3   : > { %3597 = vrot.lane.b32.xlu1 %v7008_v54, %s4458_s29  ;;  %v3656_v59 = vmul.f32 %v7020_v31, %v7585_v56 }
 0x9e5   : > { %3561 = vrot.lane.b32.xlu0 %v7006_v46, %s4459_s30 }
 0x9e7   : > { %3567 = vrot.lane.b32.xlu1 %v7008_v54, %s4459_s30 }
 0x9e9   : > { %3531 = vrot.lane.b32.xlu0 %v7006_v46, %s4461_s5 }
 0x9eb   : > { %3537 = vrot.lane.b32.xlu1 %v7008_v54, %s4461_s5 }
 0x9ed   : > { %3753 = vrot.lane.b32.xlu0 %v7006_v46, %s4454_s25 }
 0x9ef   : > { %3759 = vrot.lane.b32.xlu1 %v7008_v54, %s4454_s25 }
 0x9f1   : > { %3623 = vrot.lane.b32.xlu0 %v3515_v42, %s4457_s28 }
 0x9f3   : > { %3629 = vrot.lane.b32.xlu1 %v3516_v53, %s4457_s28 }
 0x9f5   : > { %3593 = vrot.lane.b32.xlu0 %v3515_v42, %s4458_s29 }
 0x9f7   : > { %3599 = vrot.lane.b32.xlu1 %v3516_v53, %s4458_s29 }
 0x9f9   : > { %3563 = vrot.lane.b32.xlu0 %v3515_v42, %s4459_s30 }
 0x9fb   : > { %3569 = vrot.lane.b32.xlu1 %v3516_v53, %s4459_s30 }
 0x9fd   : > { %3533 = vrot.lane.b32.xlu0 %v3515_v42, %s4461_s5 }
 0x9ff   : > { %3539 = vrot.lane.b32.xlu1 %v3516_v53, %s4461_s5 }
 0xa01   : > { %3755 = vrot.lane.b32.xlu0 %v3515_v42, %s4454_s25 }
 0xa03   : > { %3761 = vrot.lane.b32.xlu1 %v3516_v53, %s4454_s25 }
 0xa05   : > { %3725 = vrot.lane.b32.xlu0 %v3515_v42, %s4453_s24 }
 0xa07   : > { %3731 = vrot.lane.b32.xlu1 %v3516_v53, %s4453_s24 }
 0xa09   : > { %3625 = vrot.lane.b32.xlu0 %v7016_v60, %s4457_s28 }
 0xa0b   : > { %3631 = vrot.lane.b32.xlu1 %v7020_v31, %s4457_s28 }
 0xa0d   : > { %3595 = vrot.lane.b32.xlu0 %v7016_v60, %s4458_s29 }
 0xa0f   : > { %3601 = vrot.lane.b32.xlu1 %v7020_v31, %s4458_s29 }
 0xa11   : > { %3723 = vrot.lane.b32.xlu0 %v7006_v46, %s4453_s24 }
 0xa13   : > { %3729 = vrot.lane.b32.xlu1 %v7008_v54, %s4453_s24 }
 0xa15   : > { %3565 = vrot.lane.b32.xlu0 %v7016_v60, %s4459_s30 }
 0xa17   : > { %3571 = vrot.lane.b32.xlu1 %v7020_v31, %s4459_s30 }
 0xa19   : > { %3535 = vrot.lane.b32.xlu0 %v7016_v60, %s4461_s5 }
 0xa1b   : > { %3541 = vrot.lane.b32.xlu1 %v7020_v31, %s4461_s5 }
 0xa1d   : > { %3757 = vrot.lane.b32.xlu0 %v7016_v60, %s4454_s25 }
 0xa1f   : > { %3701 = vrot.lane.b32.xlu1 %v3516_v53, %s4455_s26 }
 0xa21   : > { %3727 = vrot.lane.b32.xlu0 %v7016_v60, %s4453_s24 }
 0xa23   : > { %3763 = vrot.lane.b32.xlu1 %v7020_v31, %s4454_s25 }
 0xa25   : > { %3697 = vrot.lane.b32.xlu0 %v7016_v60, %s4455_s26 }
 0xa27   : > { %3733 = vrot.lane.b32.xlu1 %v7020_v31, %s4453_s24 }
 0xa29   : > { %3695 = vrot.lane.b32.xlu0 %v3515_v42, %s4455_s26 }
 0xa2b   : > { %3699 = vrot.lane.b32.xlu1 %v7008_v54, %s4455_s26 }
 0xa2d   : > { %3693 = vrot.lane.b32.xlu0 %v7006_v46, %s4455_s26 }
 0xa2f   : > { %3703 = vrot.lane.b32.xlu1 %v7020_v31, %s4455_s26 }
 0xa31   : > { %3667 = vrot.lane.b32.xlu0 %v7016_v60, %s4456_s27 }
 0xa33   : > { %3673 = vrot.lane.b32.xlu1 %v7020_v31, %s4456_s27 }
 0xa35   : > { %3665 = vrot.lane.b32.xlu0 %v3515_v42, %s4456_s27 }
 0xa37   : > { %3671 = vrot.lane.b32.xlu1 %v3516_v53, %s4456_s27 }
 0xa39   : > { %3852 = vperm.xlu0 %4441, %v4411_v4  }
 0xa3b   : > { %3847 = vperm.xlu1 %4442, %v4410_v9  }
 0xa4b   : > { %v3664_v2 = vpop.permute.xlu0 %3663 }
 0xa4d   : > { %v3670_v55 = vpop.permute.xlu1 %3669 }
 0xa4e   : > { %v3675_v5 = vsel %vm428_vm3, %v3664_v2, %v3670_v55  ;;  %v3678_v47 = vsel %vm428_vm3, %v3670_v55, %v3664_v2 }
 0xa4f   : > { %v3681_v32 = vmul.f32 %v3675_v5, %v4614_v44  ;;  %v3682_v43 = vmul.f32 %v3678_v47, %v4607_v40  ;;  %v3622_v24 = vpop.permute.xlu0 %3621 }
 0xa51   : > { %v3628_v8 = vpop.permute.xlu1 %3627  ;;  %3861 = vmatprep.subr.mxu0 %v3682_v43 }
 0xa52   : > { %3862 = vmatpush1.msra.mxu0 %v3681_v32 }
 0xa53   : > { %v7114_v50 = vpop.permute.xlu0 %3591  ;;  %3863 = vmatprep.subr.mxu0 %v3656_v59 }
 0xa54   : > { %3864 = vmatpush1.msra.mxu0 %v3655_v25 }
 0xa55   : > { %v7118_v19 = vpop.permute.xlu1 %3597  ;;  %3865 = vmatprep.subr.mxu0 %v3654_v52 }
 0xa56   : > { %3866 = vmatpush1.msra.mxu0 %v3653_v29 }
 0xa57   : > { %v7124_v3 = vpop.permute.xlu0 %3561  ;;  %3867 = vmatprep.subr.mxu0 %v3652_v30  ;;  %v3633_v30 = vsel %vm391_vm4, %v3622_v24, %v3628_v8 }
 0xa58   : > { %3868 = vmatpush1.msra.mxu0 %v3651_v58  ;;  %v3636_v58 = vsel %vm391_vm4, %v3628_v8, %v3622_v24 }
 0xa59   : > { %v7126_v36 = vpop.permute.xlu1 %3567 }
 0xa5b   : > { %v7128_v14 = vpop.permute.xlu0 %3531 }
 0xa5d   : > { %v7130_v45 = vpop.permute.xlu1 %3537 }
 0xa5f   : > { %v3754_v48 = vpop.permute.xlu0 %3753 }
 0xa61   : > { %v3760_v38 = vpop.permute.xlu1 %3759 }
 0xa62   : > { %v3765_v15 = vsel %vm494_vm1, %v3754_v48, %v3760_v38  ;;  %v3768_v54 = vsel %vm494_vm1, %v3760_v38, %v3754_v48 }
 0xa63   : > { %v7137_v46 = vmul.f32 %v3765_v15, %v4566_v20  ;;  %v7140_v37 = vmul.f32 %v3768_v54, %v4569_v21  ;;  %v3624_v1 = vpop.permute.xlu0 %3623 }
 0xa65   : > { %v3630_v57 = vpop.permute.xlu1 %3629 }
 0xa66   : > { %v3634_v47 = vsel %vm391_vm4, %v3624_v1, %v3630_v57  ;;  %v3637_v59 = vsel %vm391_vm4, %v3630_v57, %v3624_v1  ;;  %v3640_v1 = vmul.f32 %v3633_v30, %v7603_v0 }
 0xa67   : > { %v3594_v49 = vpop.permute.xlu0 %3593  ;;  %v3642_v48 = vmul.f32 %v3634_v47, %v7603_v0  ;;  %v3641_v15 = vmul.f32 %v3637_v59, %v7602_v6 }
 0xa69   : > { %v3600_v39 = vpop.permute.xlu1 %3599 }
 0xa6a   : > { %v3604_v24 = vsel %vm369_vm5, %v3594_v49, %v3600_v39  ;;  %v3607_v8 = vsel %vm369_vm5, %v3600_v39, %v3594_v49  ;;  %v3606_v49 = vsel %vm369_vm5, %v7118_v19, %v7114_v50 }
 0xa6b   : > { %v7142_v51 = vpop.permute.xlu0 %3563  ;;  %v3612_v39 = vmul.f32 %v3604_v24, %v4653_v63 }
 0xa6d   : > { %v7144_v13 = vpop.permute.xlu1 %3569 }
 0xa6f   : > { %v7146_v60 = vpop.permute.xlu0 %3533 }
 0xa71   : > { %v7148_v17 = vpop.permute.xlu1 %3539 }
 0xa73   : > { %v3756_v31 = vpop.permute.xlu0 %3755 }
 0xa75   : > { %v3762_v33 = vpop.permute.xlu1 %3761 }
 0xa76   : > { %v3766_v41 = vsel %vm494_vm1, %v3756_v31, %v3762_v33  ;;  %v3769_v18 = vsel %vm494_vm1, %v3762_v33, %v3756_v31  ;;  %v3639_v33 = vmul.f32 %v3636_v58, %v7602_v6 }
 0xa77   : > { %v7155_v34 = vmul.f32 %v3766_v41, %v4566_v20  ;;  %v7158_v61 = vmul.f32 %v3769_v18, %v4569_v21  ;;  %v3726_v42 = vpop.permute.xlu0 %3725 }
 0xa79   : > { %v3732_v53 = vpop.permute.xlu1 %3731 }
 0xa7a   : > { %v3736_v7 = vsel %vm472_vm0, %v3726_v42, %v3732_v53  ;;  %v3739_v4 = vsel %vm472_vm0, %v3732_v53, %v3726_v42  ;;  %v3603_v42 = vsel %vm369_vm5, %v7114_v50, %v7118_v19  ;;  %v3574_v50 = vsel %vm347_vm6, %v7142_v51, %v7144_v13 }
 0xa7b   : > { %v7165_v9 = vmul.f32 %v3736_v7, %v4572_v22  ;;  %v7168_v2 = vmul.f32 %v3739_v4, %v4575_v23  ;;  %v3626_v55 = vpop.permute.xlu0 %3625 }
 0xa7d   : > { %v3632_v5 = vpop.permute.xlu1 %3631 }
 0xa7e   : > { %v3635_v32 = vsel %vm391_vm4, %v3626_v55, %v3632_v5  ;;  %v3638_v43 = vsel %vm391_vm4, %v3632_v5, %v3626_v55 }
 0xa7f   : > { %v3643_v25 = vmul.f32 %v3638_v43, %v7602_v6  ;;  %v3644_v52 = vmul.f32 %v3635_v32, %v7603_v0  ;;  %v3596_v29 = vpop.permute.xlu0 %3595  ;;  %v3611_v32 = vmul.f32 %v3607_v8, %v4650_v62  ;;  %v3610_v43 = vmul.f32 %v3603_v42, %v4653_v63 }
 0xa81   : > { %v3602_v38 = vpop.permute.xlu1 %3601  ;;  %3869 = vmatprep.subr.mxu0 %v3644_v52 }
 0xa82   : > { %v3605_v54 = vsel %vm369_vm5, %v3596_v29, %v3602_v38  ;;  %3870 = vmatpush1.msra.mxu0 %v3643_v25  ;;  %v3608_v57 = vsel %vm369_vm5, %v3602_v38, %v3596_v29  ;;  %v3609_v25 = vmul.f32 %v3606_v49, %v4650_v62  ;;  %v3577_v29 = vsel %vm347_vm6, %v7144_v13, %v7142_v51 }
 0xa83   : > { %v3724_v31 = vpop.permute.xlu0 %3723  ;;  %3871 = vmatprep.subr.mxu0 %v3642_v48  ;;  %v3614_v41 = vmul.f32 %v3605_v54, %v4653_v63  ;;  %v3613_v53 = vmul.f32 %v3608_v57, %v4650_v62  ;;  %v3573_v38 = vsel %vm347_vm6, %v7124_v3, %v7126_v36  ;;  %v3582_v54 = vmul.f32 %v3574_v50, %v4671_v11 }
 0xa84   : > { %3872 = vmatpush1.msra.mxu0 %v3641_v15  ;;  %v3576_v15 = vsel %vm347_vm6, %v7126_v36, %v7124_v3  ;;  %v3581_v13 = vmul.f32 %v3577_v29, %v4668_v10  ;;  %v3580_v57 = vmul.f32 %v3573_v38, %v4671_v11  ;;  %v3544_v3 = vsel %vm325_vm7, %v7146_v60, %v7148_v17 }
 0xa85   : > { %v3730_v18 = vpop.permute.xlu1 %3729  ;;  %3873 = vmatprep.subr.mxu0 %v3640_v1  ;;  %v3579_v24 = vmul.f32 %v3576_v15, %v4668_v10  ;;  %v3547_v36 = vsel %vm325_vm7, %v7148_v17, %v7146_v60 }
 0xa86   : > { %v3735_v7 = vsel %vm472_vm0, %v3724_v31, %v3730_v18  ;;  %v3738_v4 = vsel %vm472_vm0, %v3730_v18, %v3724_v31  ;;  %3874 = vmatpush1.msra.mxu0 %v3639_v33  ;;  %v3543_v18 = vsel %vm325_vm7, %v7128_v14, %v7130_v45  ;;  %v3551_v17 = vmul.f32 %v3547_v36, %v4684_v26 }
 0xa87   : > { %v7212_v55 = vmul.f32 %v3735_v7, %v4572_v22  ;;  %v7215_v5 = vmul.f32 %v3738_v4, %v4575_v23  ;;  %v3566_v47 = vpop.permute.xlu0 %3565  ;;  %3875 = vmatprep.subr.mxu0 %v3614_v41  ;;  %v3552_v7 = vmul.f32 %v3544_v3, %v4687_v28  ;;  %v3550_v4 = vmul.f32 %v3543_v18, %v4687_v28 }
 0xa88   : > { %3876 = vmatpush1.msra.mxu0 %v3613_v53  ;;  %v3546_v53 = vsel %vm325_vm7, %v7130_v45, %v7128_v14 }
 0xa89   : > { %v3572_v59 = vpop.permute.xlu1 %3571  ;;  %3877 = vmatprep.subr.mxu0 %v3612_v39  ;;  %v3549_v39 = vmul.f32 %v3546_v53, %v4684_v26  ;;  %v4406_v53 = vld [vmem:[%s7510_s2 + $0x2d0] sm:$0xff] }
 0xa8a   : > { %v3575_v19 = vsel %vm347_vm6, %v3566_v47, %v3572_v59  ;;  %v3578_v52 = vsel %vm347_vm6, %v3572_v59, %v3566_v47  ;;  %3878 = vmatpush1.msra.mxu0 %v3611_v32 }
 0xa8b   : > { %v3583_v30 = vmul.f32 %v3578_v52, %v4668_v10  ;;  %v3584_v58 = vmul.f32 %v3575_v19, %v4671_v11  ;;  %v3536_v48 = vpop.permute.xlu0 %3535  ;;  %3879 = vmatprep.subr.mxu0 %v3610_v43 }
 0xa8c   : > { %3880 = vmatpush1.msra.mxu0 %v3609_v25 }
 0xa8d   : > { %v3542_v51 = vpop.permute.xlu1 %3541  ;;  %3881 = vmatprep.subr.mxu0 %v3584_v58 }
 0xa8e   : > { %v3545_v1 = vsel %vm325_vm7, %v3536_v48, %v3542_v51  ;;  %3882 = vmatpush1.msra.mxu0 %v3583_v30  ;;  %v3548_v31 = vsel %vm325_vm7, %v3542_v51, %v3536_v48 }
 0xa8f   : > { %v3758_v33 = vpop.permute.xlu0 %3757  ;;  %3883 = vmatprep.subr.mxu0 %v3582_v54  ;;  %v3554_v8 = vmul.f32 %v3545_v1, %v4687_v28  ;;  %v3553_v42 = vmul.f32 %v3548_v31, %v4684_v26 }
 0xa90   : > { %3884 = vmatpush1.msra.mxu0 %v3581_v13 }
 0xa91   : > { %v3702_v41 = vpop.permute.xlu1 %3701  ;;  %3885 = vmatprep.subr.mxu0 %v3580_v57 }
 0xa92   : > { %3886 = vmatpush1.msra.mxu0 %v3579_v24 }
 0xa93   : > { %v3728_v60 = vpop.permute.xlu0 %3727  ;;  %3887 = vmatprep.subr.mxu0 %v3554_v8 }
 0xa94   : > { %3888 = vmatpush1.msra.mxu0 %v3553_v42 }
 0xa95   : > { %v3764_v49 = vpop.permute.xlu1 %3763  ;;  %3889 = vmatprep.subr.mxu0 %v3552_v7  ;;  %v4409_v7 = vld [vmem:[%s7510_s2 + $0x2f0] sm:$0xff] }
 0xa96   : > { %v3767_v47 = vsel %vm494_vm1, %v3758_v33, %v3764_v49  ;;  %v3770_v32 = vsel %vm494_vm1, %v3764_v49, %v3758_v33  ;;  %3890 = vmatpush1.msra.mxu0 %v3551_v17 }
 0xa97   : > { %v3775_v14 = vmul.f32 %v3767_v47, %v4566_v20  ;;  %v3776_v45 = vmul.f32 %v3770_v32, %v4569_v21  ;;  %v3698_v43 = vpop.permute.xlu0 %3697  ;;  %3891 = vmatprep.subr.mxu0 %v3550_v4 }
 0xa98   : > { %3892 = vmatpush1.msra.mxu0 %v3549_v39 }
 0xa99   : > { %v3734_v59 = vpop.permute.xlu1 %3733  ;;  %3903 = vmatprep.subr.mxu0 %v3776_v45 }
 0xa9a   : > { %v3737_v25 = vsel %vm472_vm0, %v3728_v60, %v3734_v59  ;;  %v3740_v50 = vsel %vm472_vm0, %v3734_v59, %v3728_v60  ;;  %3904 = vmatpush2.msra.mxu0 %v3775_v14  ;;  %v4408_v60 = vld [vmem:[%s7510_s2 + $0x2e8] sm:$0xff] }
 0xa9b   : > { %v3745_v19 = vmul.f32 %v3737_v25, %v4572_v22  ;;  %v3746_v52 = vmul.f32 %v3740_v50, %v4575_v23  ;;  %v3696_v29 = vpop.permute.xlu0 %3695  ;;  %3905 = vmatprep.subr.mxu0 %v7158_v61 }
 0xa9c   : > { %v3706_v30 = vsel %vm450_vm2, %v3696_v29, %v3702_v41  ;;  %v3709_v58 = vsel %vm450_vm2, %v3702_v41, %v3696_v29  ;;  %3906 = vmatpush2.msra.mxu0 %v7155_v34 }
 0xa9d   : > { %v3713_v48 = vmul.f32 %v3706_v30, %v4599_v35  ;;  %v3714_v38 = vmul.f32 %v3709_v58, %v4581_v27  ;;  %v3700_v15 = vpop.permute.xlu1 %3699  ;;  %3907 = vmatprep.subr.mxu0 %v7140_v37 }
 0xa9e   : > { %3908 = vmatpush2.msra.mxu0 %v7137_v46 }
 0xa9f   : > { %v3694_v54 = vpop.permute.xlu0 %3693  ;;  %3909 = vmatprep.subr.mxu0 %v3746_v52 }
 0xaa0   : > { %v3705_v61 = vsel %vm450_vm2, %v3694_v54, %v3700_v15  ;;  %v3708_v51 = vsel %vm450_vm2, %v3700_v15, %v3694_v54  ;;  %3910 = vmatpush2.msra.mxu0 %v3745_v19 }
 0xaa1   : > { %v3711_v34 = vmul.f32 %v3705_v61, %v4599_v35  ;;  %v3712_v13 = vmul.f32 %v3708_v51, %v4581_v27  ;;  %v3704_v1 = vpop.permute.xlu1 %3703  ;;  %3911 = vmatprep.subr.mxu0 %v7168_v2 }
 0xaa2   : > { %v3707_v37 = vsel %vm450_vm2, %v3698_v43, %v3704_v1  ;;  %v3710_v46 = vsel %vm450_vm2, %v3704_v1, %v3698_v43  ;;  %3912 = vmatpush2.msra.mxu0 %v7165_v9 }
 0xaa3   : > { %v3715_v57 = vmul.f32 %v3707_v37, %v4599_v35  ;;  %v3716_v31 = vmul.f32 %v3710_v46, %v4581_v27  ;;  %v3668_v33 = vpop.permute.xlu0 %3667  ;;  %3913 = vmatprep.subr.mxu0 %v7215_v5 }
 0xaa4   : > { %3914 = vmatpush2.msra.mxu0 %v7212_v55 }
 0xaa5   : > { %v3674_v24 = vpop.permute.xlu1 %3673  ;;  %3915 = vmatprep.subr.mxu0 %v3716_v31 }
 0xaa6   : > { %v3680_v2 = vsel %vm428_vm3, %v3674_v24, %v3668_v33  ;;  %3916 = vmatpush2.msra.mxu0 %v3715_v57  ;;  %v3677_v3 = vsel %vm428_vm3, %v3668_v33, %v3674_v24 }
 0xaa7   : > { %3917 = vmatprep.subr.mxu0 %v3714_v38  ;;  %v3686_v9 = vmul.f32 %v3680_v2, %v4607_v40  ;;  %v3666_v36 = vpop.permute.xlu0 %3665  ;;  %v3685_v5 = vmul.f32 %v3677_v3, %v4614_v44 }
 0xaa8   : > { %3918 = vmatpush2.msra.mxu0 %v3713_v48 }
 0xaa9   : > { %v3672_v8 = vpop.permute.xlu1 %3671  ;;  %3919 = vmatprep.subr.mxu0 %v3712_v13 }
 0xaaa   : > { %v3676_v55 = vsel %vm428_vm3, %v3666_v36, %v3672_v8  ;;  %v3679_v41 = vsel %vm428_vm3, %v3672_v8, %v3666_v36  ;;  %3920 = vmatpush2.msra.mxu0 %v3711_v34 }
 0xaab   : > { %v3683_v18 = vmul.f32 %v3676_v55, %v4614_v44  ;;  %v3684_v42 = vmul.f32 %v3679_v41, %v4607_v40  ;;  %3921 = vmatprep.subr.mxu0 %v3686_v9 }
 0xaac   : > { %3922 = vmatpush2.msra.mxu0 %v3685_v5 }
 0xaad   : > { %3923 = vmatprep.subr.mxu0 %v3684_v42 }
 0xaae   : > { %3924 = vmatpush2.msra.mxu0 %v3683_v18 }
 0xaaf   : > { %3926 = vmatmul.mubr.f32.vlgmr.msra.gmra.mxu0 %v4406_v53 }
 0xab0   : > { %4413 = vmatprep.mubr.msk.f32.mxu0 %vm1321_vm10, %v4409_v7 }
 0xab3   : > { %3932 = vmatmul.mubr.f32.gmra.mxu0 %v4408_v60 }
 0xab4   : > { %v3853_v14 = vpop.permute.xlu0 %3852 }
 0xab6   : > { %v3848_v17 = vpop.permute.xlu1 %3847 }
 0xb6f   : > { %v3927_v4 = vpop.f32.mrf.mxu0 }
 0xb70   : > { %v3928_v49 = vadd.f32 %v3927_v4, %v3848_v17 }
 0xb71   : > { %v3929_v39 = vpop.f32.mrf.mxu0 }
 0xb72   : > { %v3930_v47 = vadd.f32 %v3929_v39, %v3848_v17  ;;  %4074 = vrot.lane.b32.xlu0 %v3928_v49, %s4453_s24  ;;  %v7334_v32 = vmul.f32 %v3928_v49, %v7588_v16 }
 0xb73   : > { %v3933_v45 = vpop.f32.mrf.mxu0 }
 0xb74   : > { %v3934_v43 = vadd.f32 %v3933_v45, %v3853_v14  ;;  %4078 = vrot.lane.b32.xlu1 %v3930_v47, %s4453_s24  ;;  %v7338_v59 = vmul.f32 %v3930_v47, %v7585_v56 }
 0xb75   : > { %v3935_v25 = vpop.f32.mrf.mxu0 }
 0xb76   : > { %v3936_v50 = vadd.f32 %v3935_v25, %v3853_v14  ;;  %4054 = vrot.lane.b32.xlu0 %v3928_v49, %s4455_s26  ;;  %v7342_v19 = vmul.f32 %v3934_v43, %v7588_v16  ;;  %v4416_v16 = vld [vmem:[%s7511_s3 + $0x118] sm:$0xff] }
 0xb78   : > { %4058 = vrot.lane.b32.xlu1 %v3930_v47, %s4455_s26  ;;  %v7346_v52 = vmul.f32 %v3936_v50, %v7585_v56  ;;  %v4415_v56 = vld [vmem:[%s7510_s2 + $0x350] sm:$0xff] }
 0xb79   : > { %4417 = vmatprep.mubr.msk.f32.mxu1 %vm870_vm9, %v4415_v56 }
 0xb7a   : > { %4034 = vrot.lane.b32.xlu0 %v3928_v49, %s4456_s27 }
 0xb7c   : > { %4038 = vrot.lane.b32.xlu1 %v3930_v47, %s4456_s27 }
 0xb7e   : > { %4006 = vrot.lane.b32.xlu0 %v3928_v49, %s4457_s28 }
 0xb80   : > { %4010 = vrot.lane.b32.xlu1 %v3930_v47, %s4457_s28 }
 0xb82   : > { %3986 = vrot.lane.b32.xlu0 %v3928_v49, %s4458_s29 }
 0xb84   : > { %3990 = vrot.lane.b32.xlu1 %v3930_v47, %s4458_s29 }
 0xb86   : > { %3966 = vrot.lane.b32.xlu0 %v3928_v49, %s4459_s30 }
 0xb88   : > { %3970 = vrot.lane.b32.xlu1 %v3930_v47, %s4459_s30 }
 0xb8a   : > { %4076 = vrot.lane.b32.xlu0 %v3934_v43, %s4453_s24 }
 0xb8c   : > { %4080 = vrot.lane.b32.xlu1 %v3936_v50, %s4453_s24 }
 0xb8e   : > { %4056 = vrot.lane.b32.xlu0 %v3934_v43, %s4455_s26 }
 0xb90   : > { %4060 = vrot.lane.b32.xlu1 %v3936_v50, %s4455_s26 }
 0xb92   : > { %4036 = vrot.lane.b32.xlu0 %v3934_v43, %s4456_s27 }
 0xb94   : > { %4040 = vrot.lane.b32.xlu1 %v3936_v50, %s4456_s27 }
 0xb96   : > { %3946 = vrot.lane.b32.xlu0 %v3928_v49, %s4461_s5 }
 0xb98   : > { %3950 = vrot.lane.b32.xlu1 %v3930_v47, %s4461_s5 }
 0xb9a   : > { %4008 = vrot.lane.b32.xlu0 %v3934_v43, %s4457_s28 }
 0xb9c   : > { %4012 = vrot.lane.b32.xlu1 %v3936_v50, %s4457_s28 }
 0xb9e   : > { %3988 = vrot.lane.b32.xlu0 %v3934_v43, %s4458_s29 }
 0xba0   : > { %3992 = vrot.lane.b32.xlu1 %v3936_v50, %s4458_s29 }
 0xba2   : > { %3968 = vrot.lane.b32.xlu0 %v3934_v43, %s4459_s30 }
 0xba4   : > { %3972 = vrot.lane.b32.xlu1 %v3936_v50, %s4459_s30 }
 0xba6   : > { %3948 = vrot.lane.b32.xlu0 %v3934_v43, %s4461_s5 }
 0xba8   : > { %3952 = vrot.lane.b32.xlu1 %v3936_v50, %s4461_s5 }
 0xbaa   : > { %4096 = vrot.lane.b32.xlu0 %v3934_v43, %s4454_s25 }
 0xbac   : > { %4100 = vrot.lane.b32.xlu1 %v3936_v50, %s4454_s25 }
 0xbae   : > { %4094 = vrot.lane.b32.xlu0 %v3928_v49, %s4454_s25 }
 0xbb0   : > { %4098 = vrot.lane.b32.xlu1 %v3930_v47, %s4454_s25 }
 0xbb2   : > { %4157 = vperm.xlu0 %4441, %v4416_v16  }
 0xbe4   : > { %v4075_v29 = vpop.permute.xlu0 %4074 }
 0xbe6   : > { %v4079_v30 = vpop.permute.xlu1 %4078 }
 0xbe7   : > { %v4082_v58 = vsel %vm472_vm0, %v4075_v29, %v4079_v30  ;;  %v4084_v48 = vsel %vm472_vm0, %v4079_v30, %v4075_v29 }
 0xbe8   : > { %v4086_v38 = vmul.f32 %v4082_v58, %v4572_v22  ;;  %v4087_v15 = vmul.f32 %v4084_v48, %v4575_v23  ;;  %v4055_v54 = vpop.permute.xlu0 %4054 }
 0xbea   : > { %v4059_v61 = vpop.permute.xlu1 %4058 }
 0xbeb   : > { %v4062_v51 = vsel %vm450_vm2, %v4055_v54, %v4059_v61  ;;  %v4064_v34 = vsel %vm450_vm2, %v4059_v61, %v4055_v54 }
 0xbec   : > { %v4066_v13 = vmul.f32 %v4062_v51, %v4599_v35  ;;  %v4067_v1 = vmul.f32 %v4064_v34, %v4581_v27  ;;  %v4035_v37 = vpop.permute.xlu0 %4034 }
 0xbee   : > { %v4039_v46 = vpop.permute.xlu1 %4038 }
 0xbef   : > { %v4042_v57 = vsel %vm428_vm3, %v4035_v37, %v4039_v46  ;;  %v4044_v31 = vsel %vm428_vm3, %v4039_v46, %v4035_v37 }
 0xbf0   : > { %v4046_v33 = vmul.f32 %v4042_v57, %v4614_v44  ;;  %v4047_v24 = vmul.f32 %v4044_v31, %v4607_v40  ;;  %v4007_v2 = vpop.permute.xlu0 %4006 }
 0xbf2   : > { %v4011_v3 = vpop.permute.xlu1 %4010 }
 0xbf3   : > { %v4014_v9 = vsel %vm391_vm4, %v4007_v2, %v4011_v3  ;;  %v4016_v36 = vsel %vm391_vm4, %v4011_v3, %v4007_v2 }
 0xbf4   : > { %v7406_v8 = vmul.f32 %v4016_v36, %v7602_v6  ;;  %v7409_v5 = vmul.f32 %v4014_v9, %v7603_v0  ;;  %v3987_v55 = vpop.permute.xlu0 %3986 }
 0xbf6   : > { %v3991_v41 = vpop.permute.xlu1 %3990 }
 0xbf7   : > { %v3994_v18 = vsel %vm369_vm5, %v3987_v55, %v3991_v41  ;;  %v3996_v42 = vsel %vm369_vm5, %v3991_v41, %v3987_v55 }
 0xbf8   : > { %v7416_v53 = vmul.f32 %v3996_v42, %v4650_v62  ;;  %v7419_v7 = vmul.f32 %v3994_v18, %v4653_v63  ;;  %v3967_v60 = vpop.permute.xlu0 %3966 }
 0xbfa   : > { %v3971_v17 = vpop.permute.xlu1 %3970 }
 0xbfb   : > { %v3974_v4 = vsel %vm347_vm6, %v3967_v60, %v3971_v17  ;;  %v3976_v49 = vsel %vm347_vm6, %v3971_v17, %v3967_v60 }
 0xbfc   : > { %v7426_v39 = vmul.f32 %v3976_v49, %v4668_v10  ;;  %v7429_v47 = vmul.f32 %v3974_v4, %v4671_v11  ;;  %v4077_v14 = vpop.permute.xlu0 %4076 }
 0xbfe   : > { %v4081_v45 = vpop.permute.xlu1 %4080 }
 0xbff   : > { %v4083_v43 = vsel %vm472_vm0, %v4077_v14, %v4081_v45  ;;  %v4085_v25 = vsel %vm472_vm0, %v4081_v45, %v4077_v14 }
 0xc00   : > { %v4088_v50 = vmul.f32 %v4083_v43, %v4572_v22  ;;  %v4089_v56 = vmul.f32 %v4085_v25, %v4575_v23  ;;  %v4057_v16 = vpop.permute.xlu0 %4056 }
 0xc02   : > { %v4061_v29 = vpop.permute.xlu1 %4060  ;;  %4163 = vmatprep.subr.mxu1 %v4089_v56 }
 0xc03   : > { %v4063_v30 = vsel %vm450_vm2, %v4057_v16, %v4061_v29  ;;  %v4065_v58 = vsel %vm450_vm2, %v4061_v29, %v4057_v16  ;;  %4164 = vmatpush1.msra.mxu1 %v4088_v50 }
 0xc04   : > { %v4068_v48 = vmul.f32 %v4063_v30, %v4599_v35  ;;  %v4069_v54 = vmul.f32 %v4065_v58, %v4581_v27  ;;  %v4037_v61 = vpop.permute.xlu0 %4036  ;;  %4165 = vmatprep.subr.mxu1 %v4087_v15 }
 0xc05   : > { %4166 = vmatpush1.msra.mxu1 %v4086_v38 }
 0xc06   : > { %v4041_v22 = vpop.permute.xlu1 %4040  ;;  %4167 = vmatprep.subr.mxu1 %v4069_v54 }
 0xc07   : > { %v4043_v23 = vsel %vm428_vm3, %v4037_v61, %v4041_v22  ;;  %v4045_v51 = vsel %vm428_vm3, %v4041_v22, %v4037_v61  ;;  %4168 = vmatpush1.msra.mxu1 %v4068_v48 }
 0xc08   : > { %v4048_v34 = vmul.f32 %v4043_v23, %v4614_v44  ;;  %v4049_v37 = vmul.f32 %v4045_v51, %v4607_v40  ;;  %v3947_v46 = vpop.permute.xlu0 %3946  ;;  %4169 = vmatprep.subr.mxu1 %v4067_v1 }
 0xc09   : > { %4170 = vmatpush1.msra.mxu1 %v4066_v13 }
 0xc0a   : > { %v3951_v27 = vpop.permute.xlu1 %3950  ;;  %4171 = vmatprep.subr.mxu1 %v4049_v37 }
 0xc0b   : > { %v3954_v35 = vsel %vm325_vm7, %v3947_v46, %v3951_v27  ;;  %v3956_v38 = vsel %vm325_vm7, %v3951_v27, %v3947_v46  ;;  %4172 = vmatpush1.msra.mxu1 %v4048_v34 }
 0xc0c   : > { %v3958_v15 = vmul.f32 %v3956_v38, %v4684_v26  ;;  %v3959_v57 = vmul.f32 %v3954_v35, %v4687_v28  ;;  %v4009_v31 = vpop.permute.xlu0 %4008  ;;  %4173 = vmatprep.subr.mxu1 %v4047_v24 }
 0xc0d   : > { %4174 = vmatpush1.msra.mxu1 %v4046_v33 }
 0xc0e   : > { %v4013_v40 = vpop.permute.xlu1 %4012  ;;  %4175 = vmatprep.subr.mxu1 %v7346_v52 }
 0xc0f   : > { %v4015_v44 = vsel %vm391_vm4, %v4009_v31, %v4013_v40  ;;  %v4017_v13 = vsel %vm391_vm4, %v4013_v40, %v4009_v31  ;;  %4176 = vmatpush1.msra.mxu1 %v7342_v19 }
 0xc10   : > { %v4020_v1 = vmul.f32 %v4017_v13, %v7602_v6  ;;  %v4021_v2 = vmul.f32 %v4015_v44, %v7603_v0  ;;  %v3989_v3 = vpop.permute.xlu0 %3988  ;;  %4177 = vmatprep.subr.mxu1 %v7338_v59 }
 0xc11   : > { %4178 = vmatpush1.msra.mxu1 %v7334_v32 }
 0xc12   : > { %v3993_v33 = vpop.permute.xlu1 %3992  ;;  %4179 = vmatprep.subr.mxu1 %v4021_v2 }
 0xc13   : > { %v3995_v52 = vsel %vm369_vm5, %v3989_v3, %v3993_v33  ;;  %v3997_v24 = vsel %vm369_vm5, %v3993_v33, %v3989_v3  ;;  %4180 = vmatpush1.msra.mxu1 %v4020_v1 }
 0xc14   : > { %v4000_v19 = vmul.f32 %v3997_v24, %v4650_v62  ;;  %v4001_v6 = vmul.f32 %v3995_v52, %v4653_v63  ;;  %v3969_v9 = vpop.permute.xlu0 %3968  ;;  %4181 = vmatprep.subr.mxu1 %v7409_v5 }
 0xc15   : > { %4182 = vmatpush1.msra.mxu1 %v7406_v8 }
 0xc16   : > { %v3973_v0 = vpop.permute.xlu1 %3972  ;;  %4183 = vmatprep.subr.mxu1 %v4001_v6 }
 0xc17   : > { %v3975_v32 = vsel %vm347_vm6, %v3969_v9, %v3973_v0  ;;  %v3977_v59 = vsel %vm347_vm6, %v3973_v0, %v3969_v9  ;;  %4184 = vmatpush1.msra.mxu1 %v4000_v19 }
 0xc18   : > { %v3980_v36 = vmul.f32 %v3977_v59, %v4668_v10  ;;  %v3981_v62 = vmul.f32 %v3975_v32, %v4671_v11  ;;  %v3949_v55 = vpop.permute.xlu0 %3948  ;;  %4185 = vmatprep.subr.mxu1 %v7419_v7 }
 0xc19   : > { %4186 = vmatpush1.msra.mxu1 %v7416_v53 }
 0xc1a   : > { %v3953_v63 = vpop.permute.xlu1 %3952  ;;  %4187 = vmatprep.subr.mxu1 %v3981_v62 }
 0xc1b   : > { %v3955_v8 = vsel %vm325_vm7, %v3949_v55, %v3953_v63  ;;  %v3957_v5 = vsel %vm325_vm7, %v3953_v63, %v3949_v55  ;;  %4188 = vmatpush1.msra.mxu1 %v3980_v36 }
 0xc1c   : > { %v3960_v41 = vmul.f32 %v3957_v5, %v4684_v26  ;;  %v3961_v10 = vmul.f32 %v3955_v8, %v4687_v28  ;;  %v4097_v18 = vpop.permute.xlu0 %4096  ;;  %4189 = vmatprep.subr.mxu1 %v7429_v47  ;;  %v4414_v47 = vld [vmem:[%s7510_s2 + $0x348] sm:$0xff] }
 0xc1d   : > { %4190 = vmatpush1.msra.mxu1 %v7426_v39 }
 0xc1e   : > { %v4101_v11 = vpop.permute.xlu1 %4100  ;;  %4191 = vmatprep.subr.mxu1 %v3961_v10 }
 0xc1f   : > { %v4103_v42 = vsel %vm494_vm1, %v4097_v18, %v4101_v11  ;;  %v4105_v53 = vsel %vm494_vm1, %v4101_v11, %v4097_v18  ;;  %4192 = vmatpush1.msra.mxu1 %v3960_v41 }
 0xc20   : > { %v4108_v7 = vmul.f32 %v4103_v42, %v4566_v20  ;;  %v4109_v26 = vmul.f32 %v4105_v53, %v4569_v21  ;;  %4193 = vmatprep.subr.mxu1 %v3959_v57  ;;  %v4095_v28 = vpop.permute.xlu0 %4094 }
 0xc21   : > { %4194 = vmatpush1.msra.mxu1 %v3958_v15 }
 0xc22   : > { %v4099_v60 = vpop.permute.xlu1 %4098  ;;  %4223 = vmatprep.subr.mxu1 %v4109_v26 }
 0xc23   : > { %v4102_v17 = vsel %vm494_vm1, %v4095_v28, %v4099_v60  ;;  %v4104_v4 = vsel %vm494_vm1, %v4099_v60, %v4095_v28  ;;  %4224 = vmatpush2.msra.mxu1 %v4108_v7 }
 0xc24   : > { %v4106_v49 = vmul.f32 %v4102_v17, %v4566_v20  ;;  %v4107_v39 = vmul.f32 %v4104_v4, %v4569_v21 }
 0xc26   : > { %4225 = vmatprep.subr.mxu1 %v4107_v39 }
 0xc27   : > { %4226 = vmatpush2.msra.mxu1 %v4106_v49 }
 0xc28   : > { %4228 = vmatmul.mubr.f32.vlgmr.msra.gmra.mxu1 %v4414_v47 }
 0xc2d   : > { %v4158_v14 = vpop.permute.xlu0 %4157 }
 0xce8   : > { %v4229_v45 = vpop.f32.mrf.mxu1 }
 0xce9   : > { %v4230_v43 = vadd.f32 %v4229_v45, %v4158_v14 }
 0xcea   : > { %v4231_v25 = vpop.f32.mrf.mxu1 }
 0xceb   : > { %4234 = vst [vmem:[#allocation2 + $0x30] sm:$0xff] %v4230_v43  ;;  %v4232_v12 = vadd.f32 %v4231_v25, %v4158_v14 }
 0xced   : > { %4235 = vst [vmem:[#allocation2] sm:$0xff] %v4232_v12 }
 0xcf2   : > { %v4236_v50 = vld [vmem:[#allocation2 + $0x30] sm:$0xf] }
 0xcf4   : > { %v4237_v56 = vld [vmem:[#allocation2] sm:$0xf] }
 0xcf5   : > { %v4240_v20 = vcombine.low %v4236_v50, %v4237_v56 }
 0xcf7   : > { %4242 = vst [vmem:[%s4501_s23] sm:$0xff] %v4240_v20 }
 0xcf8 PF: > { %s14_s15 = sadd.s32 1, %s4450_s15  }
 0xcf9   : > { %p11_p4 = scmp.ge.s32.totalorder %s14_s15, 4  }
 0xcfb   :  { %13 = sbr.rel (!%p11_p4) target bundleno = 1 (0x1), region = 92 }

</bundles_post_ra>
